<compile_context>
chip_gen: v5e
topology: v5e:2x2
jax: 0.10.0
libtpu: 0.0.40
codegen_flags: <defaults>
</compile_context>

<pallas_src>
import jax
import jax.numpy as jnp
from jax.experimental import pallas as pl
from jax.experimental.pallas import tpu as pltpu


# --------------------------- kernel 1: fused convs ---------------------------

def _fused_conv_kernel(xpad_ref, w1_ref, b1_ref, w2_ref, b2_ref, w3_ref, b3_ref,
                       feat_ref, pad1_ref, pad2_ref):
    # One grid step = one board.  xpad_ref: (1, H+2, W+2, C_in) zero-padded.
    H = xpad_ref.shape[1] - 2
    W = xpad_ref.shape[2] - 2
    M = H * W

    def conv3x3_relu(src_ref, w_ref, b_ref):
        # src_ref: (1, H+2, W+2, c_in) zero-padded; w_ref: (9, c_in, c_out) bf16.
        c_in = src_ref.shape[-1]
        c_out = w_ref.shape[-1]
        acc = jnp.zeros((M, c_out), jnp.float32)
        for t in range(9):                       # static unroll: 9 shifted GEMMs
            dy, dx = t // 3, t % 3
            tap = src_ref[:, dy:dy + H, dx:dx + W, :]          # (1, H, W, c_in)
            tap2d = tap.reshape(M, c_in).astype(jnp.bfloat16)  # tile-aligned reshape
            acc = acc + jnp.dot(tap2d, w_ref[t],
                                preferred_element_type=jnp.float32)
        return jnp.maximum(acc + b_ref[...], 0.0)              # (M, c_out) f32

    # conv1
    y1 = conv3x3_relu(xpad_ref, w1_ref, b1_ref)                # (M, 64)
    pad1_ref[...] = jnp.zeros_like(pad1_ref)                   # zero borders
    pad1_ref[:, 1:1 + H, 1:1 + W, :] = y1.reshape(1, H, W, 64)

    # conv2
    y2 = conv3x3_relu(pad1_ref, w2_ref, b2_ref)                # (M, 128)
    pad2_ref[...] = jnp.zeros_like(pad2_ref)
    pad2_ref[:, 1:1 + H, 1:1 + W, :] = y2.reshape(1, H, W, 128)

    # conv3 -> lane-dense (M, 256) feature slab, rows in (h, w) order
    feat_ref[...] = conv3x3_relu(pad2_ref, w3_ref, b3_ref)     # (M, 256)


def fused_convs(xpad, params):
    """xpad: (B, H+2, W+2, C_in) f32 -> (B*H*W, 256) f32 conv3 activations."""
    B, Hp2, Wp2, C_in = xpad.shape
    H, W = Hp2 - 2, Wp2 - 2
    w1, b1 = params["conv1"]
    w2, b2 = params["conv2"]
    w3, b3 = params["conv3"]

    flops = 2 * B * H * W * 9 * (C_in * 64 + 64 * 128 + 128 * 256)
    bytes_accessed = (xpad.size * 4 + (w1.size + w2.size + w3.size) * 2
                      + (b1.size + b2.size + b3.size) * 4 + B * H * W * 256 * 4)

    return pl.pallas_call(
        _fused_conv_kernel,
        out_shape=jax.ShapeDtypeStruct((B * H * W, 256), jnp.float32),
        grid_spec=pltpu.PrefetchScalarGridSpec(
            num_scalar_prefetch=0,
            grid=(B,),
            in_specs=[
                pl.BlockSpec((1, Hp2, Wp2, C_in), lambda b: (b, 0, 0, 0)),
                pl.BlockSpec(w1.shape, lambda b: (0, 0, 0)),
                pl.BlockSpec(b1.shape, lambda b: (0, 0)),
                pl.BlockSpec(w2.shape, lambda b: (0, 0, 0)),
                pl.BlockSpec(b2.shape, lambda b: (0, 0)),
                pl.BlockSpec(w3.shape, lambda b: (0, 0, 0)),
                pl.BlockSpec(b3.shape, lambda b: (0, 0)),
            ],
            out_specs=pl.BlockSpec((H * W, 256), lambda b: (b, 0)),
            scratch_shapes=[
                pltpu.VMEM((1, Hp2, Wp2, 64), jnp.float32),    # padded act of conv1
                pltpu.VMEM((1, Hp2, Wp2, 128), jnp.float32),   # padded act of conv2
            ],
        ),
        compiler_params=pltpu.CompilerParams(
            dimension_semantics=("parallel",),
            vmem_limit_bytes=32 * 1024 * 1024,
        ),
        cost_estimate=pl.CostEstimate(flops=flops, transcendentals=0,
                                      bytes_accessed=bytes_accessed),
    )(xpad, w1, b1, w2, b2, w3, b3)


# ----------------------- kernel 2: FC + mask (K-tiled) -----------------------

def _fc_masked_logits_kernel(feat_ref, w_ref, b_ref, mask_ref, out_ref, acc_ref):
    k = pl.program_id(0)

    @pl.when(k == 0)
    def _init():
        acc_ref[...] = jnp.zeros_like(acc_ref)

    acc_ref[...] += jnp.dot(feat_ref[...].astype(jnp.bfloat16), w_ref[...],
                            preferred_element_type=jnp.float32)

    @pl.when(k == pl.num_programs(0) - 1)
    def _finalize():
        logits = acc_ref[...] + b_ref[...]
        # large-negative instead of -inf: categorical-safe, no NaN if a row is
        # fully masked (matches softmax(masked_fill) semantics up to underflow).
        out_ref[...] = jnp.where(mask_ref[...] == 0.0, jnp.float32(-1e30), logits)


def fc_masked_logits(feat, w_fc, b_fc, mask):
    """feat: (B, 256*H*W) f32, w_fc: (256*H*W, H*W) bf16 -> masked logits (B, H*W)."""
    B, K = feat.shape
    N = w_fc.shape[1]
    tk = 2048
    while K % tk != 0:            # K is a multiple of 256, so tk lands on >= 256
        tk //= 2
    n_k = K // tk

    flops = 2 * B * K * N
    bytes_accessed = feat.size * 4 + w_fc.size * 2 + (b_fc.size + mask.size + B * N) * 4

    return pl.pallas_call(
        _fc_masked_logits_kernel,
        out_shape=jax.ShapeDtypeStruct((B, N), jnp.float32),
        grid_spec=pltpu.PrefetchScalarGridSpec(
            num_scalar_prefetch=0,
            grid=(n_k,),
            in_specs=[
                pl.BlockSpec((B, tk), lambda k: (0, k)),
                pl.BlockSpec((tk, N), lambda k: (k, 0)),
                pl.BlockSpec((1, N), lambda k: (0, 0)),
                pl.BlockSpec((B, N), lambda k: (0, 0)),
            ],
            out_specs=pl.BlockSpec((B, N), lambda k: (0, 0)),
            scratch_shapes=[pltpu.VMEM((B, N), jnp.float32)],
        ),
        compiler_params=pltpu.CompilerParams(
            dimension_semantics=("arbitrary",),
            vmem_limit_bytes=32 * 1024 * 1024,
        ),
        cost_estimate=pl.CostEstimate(flops=flops, transcendentals=0,
                                      bytes_accessed=bytes_accessed),
    )(feat, w_fc, b_fc, mask)


# -------------------------------- parameters ---------------------------------

def init_convnet_params(key, in_channels, height, width):
    def uniform(k, shape, bound, dtype=jnp.float32):
        return jax.random.uniform(k, shape, jnp.float32, -bound, bound).astype(dtype)

    keys = jax.random.split(key, 8)

    def conv_init(kw, kb, c_in, c_out):
        bound = float((c_in * 9) ** -0.5)     # PyTorch-style 1/sqrt(fan_in)
        # Tap-major (9, c_in, c_out) bf16.  From a torch Conv2d weight Wt of shape
        # (c_out, c_in, 3, 3): jnp.transpose(Wt, (2, 3, 1, 0)).reshape(9, c_in, c_out).
        return (uniform(kw, (9, c_in, c_out), bound, jnp.bfloat16),
                uniform(kb, (1, c_out), bound))

    params = {
        "conv1": conv_init(keys[0], keys[1], in_channels, 64),
        "conv2": conv_init(keys[2], keys[3], 64, 128),
        "conv3": conv_init(keys[4], keys[5], 128, 256),
    }
    fc_in = 256 * height * width
    fc_out = height * width
    bound = float(fc_in ** -0.5)
    # fc weight stored (fc_in, fc_out) bf16 with rows in NHWC-flatten (h, w, c) order,
    # so no runtime transpose is needed.  From torch fc1.weight Wf (fc_out, 256*H*W):
    #   Wf.T.reshape(256, H, W, fc_out).transpose(1, 2, 0, 3).reshape(fc_in, fc_out)
    params["fc1"] = (uniform(keys[6], (fc_in, fc_out), bound, jnp.bfloat16),
                     uniform(keys[7], (1, fc_out), bound))
    return params


# ---------------------------------- forward ----------------------------------

def convnet_forward(params, x_nchw, sample_key, height, width):
    B = x_nchw.shape[0]
    is_in_game = x_nchw[:, -1, :, :]                       # (B, H, W)

    # tiny glue: NCHW -> NHWC + zero pad (input is a few KB)
    x = jnp.transpose(x_nchw, (0, 2, 3, 1))
    xpad = jnp.pad(x, ((0, 0), (1, 1), (1, 1), (0, 0)))

    feat2d = fused_convs(xpad, params)                     # (B*H*W, 256), VMEM-fused convs
    feat = feat2d.reshape(B, height * width * 256)         # contiguous, layout-free reshape

    w_fc, b_fc = params["fc1"]
    mask = is_in_game.reshape(B, height * width)
    masked_logits = fc_masked_logits(feat, w_fc, b_fc, mask)   # (B, H*W)

    # TODO(synk): torch.multinomial(softmax(logits), 1) is replaced by
    # jax.random.categorical on masked logits — distributionally equivalent,
    # not bit-identical to torch's RNG stream.
    coord_idx = jax.random.categorical(sample_key, masked_logits, axis=-1)
    coord_idx = coord_idx.reshape(B, 1)
    x_coords = coord_idx // width
    y_coords = coord_idx % width
    return jnp.stack((x_coords, y_coords), axis=-1)        # (B, 1, 2)


# ------------------------------------ main ------------------------------------

if __name__ == "__main__":
    B, C_in, H, W = 2, 4, 8, 8

    root = jax.random.PRNGKey(0)
    k_x, k_mask, k_sample, k_param = jax.random.split(root, 4)

    x = jax.random.normal(k_x, (B, C_in, H, W), jnp.float32)
    # last channel is the 0/1 "is_in_game" board; ensure at least one valid cell
    in_game = jax.random.bernoulli(k_mask, 0.7, (B, H, W)).astype(jnp.float32)
    in_game = in_game.at[:, 0, 0].set(1.0)
    x = x.at[:, -1, :, :].set(in_game)

    params = init_convnet_params(k_param, C_in, H, W)

    fwd = jax.jit(convnet_forward, static_argnames=("height", "width"))
    coords = fwd(params, x, k_sample, height=H, width=W)
    coords = jax.block_until_ready(coords)

    assert coords.shape == (B, 1, 2)
    assert bool(jnp.all(coords >= 0)) and bool(jnp.all(coords < max(H, W)))
    print("KERNEL_OK")
</pallas_src>

<mosaic_0001>
module attributes {stable_mosaic.version = 11 : i64} {
  func.func @_fc_masked_logits_kernel(%arg0: i32, %arg1: memref<2x2048xf32, #tpu.memory_space<vmem>>, %arg2: memref<2048x64xbf16, #tpu.memory_space<vmem>>, %arg3: memref<1x64xf32, #tpu.memory_space<vmem>>, %arg4: memref<2x64xf32, #tpu.memory_space<vmem>>, %arg5: memref<2x64xf32, #tpu.memory_space<vmem>>, %arg6: memref<2x64xf32, #tpu.memory_space<vmem>>) attributes {dimension_semantics = [#tpu.dimension_semantics<arbitrary>], iteration_bounds = array<i64: 8>, scalar_prefetch = 0 : i64, scratch_operands = 1 : i64, tpu.core_type = #tpu.core_type<tc>, window_params = [{transform_indices = @transform_0, window_bounds = array<i64: 2, 2048>}, {transform_indices = @transform_1, window_bounds = array<i64: 2048, 64>}, {pipeline_mode = #tpu.pipeline_mode<synchronous>, transform_indices = @transform_2, window_bounds = array<i64: 1, 64>}, {pipeline_mode = #tpu.pipeline_mode<synchronous>, transform_indices = @transform_3, window_bounds = array<i64: 2, 64>}, {pipeline_mode = #tpu.pipeline_mode<synchronous>, transform_indices = @transform_4, window_bounds = array<i64: 2, 64>}]} {
    %c0_i32 = arith.constant 0 : i32
    %0 = arith.cmpi eq, %arg0, %c0_i32 : i32
    %1 = arith.extui %0 : i1 to i32
    %c0_i32_0 = arith.constant 0 : i32
    %2 = arith.cmpi ne, %1, %c0_i32_0 : i32
    scf.if %2 {
      %cst_9 = arith.constant 0.000000e+00 : f32
      %13 = vector.broadcast %cst_9 : f32 to vector<2x64xf32>
      %c0_10 = arith.constant 0 : index
      %c0_11 = arith.constant 0 : index
      %14 = vector.load %arg6[%c0_10, %c0_11] : memref<2x64xf32, #tpu.memory_space<vmem>>, vector<2x64xf32>
      tpu.vector_store %arg6[%c0_10, %c0_11], %13 {strides = array<i32>} : memref<2x64xf32, #tpu.memory_space<vmem>>, vector<2x64xf32>,
    } else {
    }
    %c0 = arith.constant 0 : index
    %c0_1 = arith.constant 0 : index
    %3 = vector.load %arg6[%c0, %c0_1] : memref<2x64xf32, #tpu.memory_space<vmem>>, vector<2x64xf32>
    %c0_2 = arith.constant 0 : index
    %c0_3 = arith.constant 0 : index
    %4 = vector.load %arg1[%c0_2, %c0_3] : memref<2x2048xf32, #tpu.memory_space<vmem>>, vector<2x2048xf32>
    %5 = arith.truncf %4 : vector<2x2048xf32> to vector<2x2048xbf16>
    %c0_4 = arith.constant 0 : index
    %c0_5 = arith.constant 0 : index
    %6 = vector.load %arg2[%c0_4, %c0_5] : memref<2048x64xbf16, #tpu.memory_space<vmem>>, vector<2048x64xbf16>
    %cst = arith.constant dense<0.000000e+00> : vector<2x64xf32>
    %7 = tpu.matmul %5, %6, %cst {dimension_numbers = #tpu.dot_dimension_numbers<[1], [0], [0], [1], [0, 0, 1, 1], [], []>} : vector<2x2048xbf16>, vector<2048x64xbf16>, vector<2x64xf32> -> vector<2x64xf32>
    %8 = arith.addf %3, %7 : vector<2x64xf32>
    %c0_6 = arith.constant 0 : index
    %c0_7 = arith.constant 0 : index
    %9 = vector.load %arg6[%c0_6, %c0_7] : memref<2x64xf32, #tpu.memory_space<vmem>>, vector<2x64xf32>
    tpu.vector_store %arg6[%c0_6, %c0_7], %8 {strides = array<i32>} : memref<2x64xf32, #tpu.memory_space<vmem>>, vector<2x64xf32>,
    %c7_i32 = arith.constant 7 : i32
    %10 = arith.cmpi eq, %arg0, %c7_i32 : i32
    %11 = arith.extui %10 : i1 to i32
    %c0_i32_8 = arith.constant 0 : i32
    %12 = arith.cmpi ne, %11, %c0_i32_8 : i32
    scf.if %12 {
      %c0_9 = arith.constant 0 : index
      %c0_10 = arith.constant 0 : index
      %13 = vector.load %arg6[%c0_9, %c0_10] : memref<2x64xf32, #tpu.memory_space<vmem>>, vector<2x64xf32>
      %c0_11 = arith.constant 0 : index
      %c0_12 = arith.constant 0 : index
      %14 = vector.load %arg3[%c0_11, %c0_12] : memref<1x64xf32, #tpu.memory_space<vmem>>, vector<1x64xf32>
      %15 = vector.broadcast %14 : vector<1x64xf32> to vector<2x64xf32>
      %16 = arith.addf %13, %15 : vector<2x64xf32>
      %c0_13 = arith.constant 0 : index
      %c0_14 = arith.constant 0 : index
      %17 = vector.load %arg4[%c0_13, %c0_14] : memref<2x64xf32, #tpu.memory_space<vmem>>, vector<2x64xf32>
      %cst_15 = arith.constant 0.000000e+00 : f32
      %18 = vector.broadcast %cst_15 : f32 to vector<2x64xf32>
      %19 = arith.cmpf oeq, %17, %18 : vector<2x64xf32>
      %cst_16 = arith.constant -1.000000e+30 : f32
      %20 = vector.broadcast %cst_16 : f32 to vector<2x64xf32>
      %21 = arith.select %19, %20, %16 : vector<2x64xi1>, vector<2x64xf32>
      %c0_17 = arith.constant 0 : index
      %c0_18 = arith.constant 0 : index
      %22 = vector.load %arg5[%c0_17, %c0_18] : memref<2x64xf32, #tpu.memory_space<vmem>>, vector<2x64xf32>
      tpu.vector_store %arg5[%c0_17, %c0_18], %21 {strides = array<i32>} : memref<2x64xf32, #tpu.memory_space<vmem>>, vector<2x64xf32>,
    } else {
    }
    return
  }
  func.func @transform_0(%arg0: i32) -> (i32, i32) {
    %c0_i32 = arith.constant 0 : i32
    %c0_i32_0 = arith.constant 0 : i32
    return %c0_i32, %arg0 : i32, i32
  }
  func.func @transform_1(%arg0: i32) -> (i32, i32) {
    %c0_i32 = arith.constant 0 : i32
    %c0_i32_0 = arith.constant 0 : i32
    return %arg0, %c0_i32 : i32, i32
  }
  func.func @transform_2(%arg0: i32) -> (i32, i32) {
    %c0_i32 = arith.constant 0 : i32
    %c0_i32_0 = arith.constant 0 : i32
    %c0_i32_1 = arith.constant 0 : i32
    return %c0_i32, %c0_i32_0 : i32, i32
  }
  func.func @transform_3(%arg0: i32) -> (i32, i32) {
    %c0_i32 = arith.constant 0 : i32
    %c0_i32_0 = arith.constant 0 : i32
    %c0_i32_1 = arith.constant 0 : i32
    return %c0_i32, %c0_i32_0 : i32, i32
  }
  func.func @transform_4(%arg0: i32) -> (i32, i32) {
    %c0_i32 = arith.constant 0 : i32
    %c0_i32_0 = arith.constant 0 : i32
    %c0_i32_1 = arith.constant 0 : i32
    return %c0_i32, %c0_i32_0 : i32, i32
  }
}

module attributes {stable_mosaic.version = 11 : i64} {
  func.func @_fused_conv_kernel(%arg0: i32, %arg1: memref<1x10x10x4xf32, #tpu.memory_space<vmem>>, %arg2: memref<9x4x64xbf16, #tpu.memory_space<vmem>>, %arg3: memref<1x64xf32, #tpu.memory_space<vmem>>, %arg4: memref<9x64x128xbf16, #tpu.memory_space<vmem>>, %arg5: memref<1x128xf32, #tpu.memory_space<vmem>>, %arg6: memref<9x128x256xbf16, #tpu.memory_space<vmem>>, %arg7: memref<1x256xf32, #tpu.memory_space<vmem>>, %arg8: memref<64x256xf32, #tpu.memory_space<vmem>>, %arg9: memref<1x10x10x64xf32, #tpu.memory_space<vmem>>, %arg10: memref<1x10x10x128xf32, #tpu.memory_space<vmem>>) attributes {dimension_semantics = [#tpu.dimension_semantics<parallel>], iteration_bounds = array<i64: 2>, scalar_prefetch = 0 : i64, scratch_operands = 2 : i64, tpu.core_type = #tpu.core_type<tc>, window_params = [{transform_indices = @transform_0, window_bounds = array<i64: 1, 10, 10, 4>}, {pipeline_mode = #tpu.pipeline_mode<synchronous>, transform_indices = @transform_1, window_bounds = array<i64: 9, 4, 64>}, {pipeline_mode = #tpu.pipeline_mode<synchronous>, transform_indices = @transform_2, window_bounds = array<i64: 1, 64>}, {pipeline_mode = #tpu.pipeline_mode<synchronous>, transform_indices = @transform_3, window_bounds = array<i64: 9, 64, 128>}, {pipeline_mode = #tpu.pipeline_mode<synchronous>, transform_indices = @transform_4, window_bounds = array<i64: 1, 128>}, {pipeline_mode = #tpu.pipeline_mode<synchronous>, transform_indices = @transform_5, window_bounds = array<i64: 9, 128, 256>}, {pipeline_mode = #tpu.pipeline_mode<synchronous>, transform_indices = @transform_6, window_bounds = array<i64: 1, 256>}, {transform_indices = @transform_7, window_bounds = array<i64: 64, 256>}]} {
    %cst = arith.constant 0.000000e+00 : f32
    %0 = vector.broadcast %cst : f32 to vector<64x64xf32>
    %c0 = arith.constant 0 : index
    %c0_0 = arith.constant 0 : index
    %c0_1 = arith.constant 0 : index
    %c0_2 = arith.constant 0 : index
    %1 = vector.load %arg1[%c0, %c0_0, %c0_1, %c0_2] : memref<1x10x10x4xf32, #tpu.memory_space<vmem>>, vector<1x8x8x4xf32>
    %2 = vector.shape_cast %1 : vector<1x8x8x4xf32> to vector<64x4xf32>
    %3 = arith.truncf %2 : vector<64x4xf32> to vector<64x4xbf16>
    %c0_3 = arith.constant 0 : index
    %c0_4 = arith.constant 0 : index
    %c0_5 = arith.constant 0 : index
    %4 = vector.load %arg2[%c0_3, %c0_4, %c0_5] : memref<9x4x64xbf16, #tpu.memory_space<vmem>>, vector<1x4x64xbf16>
    %5 = vector.shape_cast %4 : vector<1x4x64xbf16> to vector<4x64xbf16>
    %cst_6 = arith.constant dense<0.000000e+00> : vector<64x64xf32>
    %6 = tpu.matmul %3, %5, %cst_6 {dimension_numbers = #tpu.dot_dimension_numbers<[1], [0], [0], [1], [0, 0, 1, 1], [], []>} : vector<64x4xbf16>, vector<4x64xbf16>, vector<64x64xf32> -> vector<64x64xf32>
    %7 = arith.addf %0, %6 : vector<64x64xf32>
    %c0_7 = arith.constant 0 : index
    %c0_8 = arith.constant 0 : index
    %c1 = arith.constant 1 : index
    %c0_9 = arith.constant 0 : index
    %8 = vector.load %arg1[%c0_7, %c0_8, %c1, %c0_9] : memref<1x10x10x4xf32, #tpu.memory_space<vmem>>, vector<1x8x8x4xf32>
    %9 = vector.shape_cast %8 : vector<1x8x8x4xf32> to vector<64x4xf32>
    %10 = arith.truncf %9 : vector<64x4xf32> to vector<64x4xbf16>
    %c1_10 = arith.constant 1 : index
    %c0_11 = arith.constant 0 : index
    %c0_12 = arith.constant 0 : index
    %11 = vector.load %arg2[%c1_10, %c0_11, %c0_12] : memref<9x4x64xbf16, #tpu.memory_space<vmem>>, vector<1x4x64xbf16>
    %12 = vector.shape_cast %11 : vector<1x4x64xbf16> to vector<4x64xbf16>
    %cst_13 = arith.constant dense<0.000000e+00> : vector<64x64xf32>
    %13 = tpu.matmul %10, %12, %cst_13 {dimension_numbers = #tpu.dot_dimension_numbers<[1], [0], [0], [1], [0, 0, 1, 1], [], []>} : vector<64x4xbf16>, vector<4x64xbf16>, vector<64x64xf32> -> vector<64x64xf32>
    %14 = arith.addf %7, %13 : vector<64x64xf32>
    %c0_14 = arith.constant 0 : index
    %c0_15 = arith.constant 0 : index
    %c2 = arith.constant 2 : index
    %c0_16 = arith.constant 0 : index
    %15 = vector.load %arg1[%c0_14, %c0_15, %c2, %c0_16] : memref<1x10x10x4xf32, #tpu.memory_space<vmem>>, vector<1x8x8x4xf32>
    %16 = vector.shape_cast %15 : vector<1x8x8x4xf32> to vector<64x4xf32>
    %17 = arith.truncf %16 : vector<64x4xf32> to vector<64x4xbf16>
    %c2_17 = arith.constant 2 : index
    %c0_18 = arith.constant 0 : index
    %c0_19 = arith.constant 0 : index
    %18 = vector.load %arg2[%c2_17, %c0_18, %c0_19] : memref<9x4x64xbf16, #tpu.memory_space<vmem>>, vector<1x4x64xbf16>
    %19 = vector.shape_cast %18 : vector<1x4x64xbf16> to vector<4x64xbf16>
    %cst_20 = arith.constant dense<0.000000e+00> : vector<64x64xf32>
    %20 = tpu.matmul %17, %19, %cst_20 {dimension_numbers = #tpu.dot_dimension_numbers<[1], [0], [0], [1], [0, 0, 1, 1], [], []>} : vector<64x4xbf16>, vector<4x64xbf16>, vector<64x64xf32> -> vector<64x64xf32>
    %21 = arith.addf %14, %20 : vector<64x64xf32>
    %c0_21 = arith.constant 0 : index
    %c1_22 = arith.constant 1 : index
    %c0_23 = arith.constant 0 : index
    %c0_24 = arith.constant 0 : index
    %22 = vector.load %arg1[%c0_21, %c1_22, %c0_23, %c0_24] : memref<1x10x10x4xf32, #tpu.memory_space<vmem>>, vector<1x8x8x4xf32>
    %23 = vector.shape_cast %22 : vector<1x8x8x4xf32> to vector<64x4xf32>
    %24 = arith.truncf %23 : vector<64x4xf32> to vector<64x4xbf16>
    %c3 = arith.constant 3 : index
    %c0_25 = arith.constant 0 : index
    %c0_26 = arith.constant 0 : index
    %25 = vector.load %arg2[%c3, %c0_25, %c0_26] : memref<9x4x64xbf16, #tpu.memory_space<vmem>>, vector<1x4x64xbf16>
    %26 = vector.shape_cast %25 : vector<1x4x64xbf16> to vector<4x64xbf16>
    %cst_27 = arith.constant dense<0.000000e+00> : vector<64x64xf32>
    %27 = tpu.matmul %24, %26, %cst_27 {dimension_numbers = #tpu.dot_dimension_numbers<[1], [0], [0], [1], [0, 0, 1, 1], [], []>} : vector<64x4xbf16>, vector<4x64xbf16>, vector<64x64xf32> -> vector<64x64xf32>
    %28 = arith.addf %21, %27 : vector<64x64xf32>
    %c0_28 = arith.constant 0 : index
    %c1_29 = arith.constant 1 : index
    %c1_30 = arith.constant 1 : index
    %c0_31 = arith.constant 0 : index
    %29 = vector.load %arg1[%c0_28, %c1_29, %c1_30, %c0_31] : memref<1x10x10x4xf32, #tpu.memory_space<vmem>>, vector<1x8x8x4xf32>
    %30 = vector.shape_cast %29 : vector<1x8x8x4xf32> to vector<64x4xf32>
    %31 = arith.truncf %30 : vector<64x4xf32> to vector<64x4xbf16>
    %c4 = arith.constant 4 : index
    %c0_32 = arith.constant 0 : index
    %c0_33 = arith.constant 0 : index
    %32 = vector.load %arg2[%c4, %c0_32, %c0_33] : memref<9x4x64xbf16, #tpu.memory_space<vmem>>, vector<1x4x64xbf16>
    %33 = vector.shape_cast %32 : vector<1x4x64xbf16> to vector<4x64xbf16>
    %cst_34 = arith.constant dense<0.000000e+00> : vector<64x64xf32>
    %34 = tpu.matmul %31, %33, %cst_34 {dimension_numbers = #tpu.dot_dimension_numbers<[1], [0], [0], [1], [0, 0, 1, 1], [], []>} : vector<64x4xbf16>, vector<4x64xbf16>, vector<64x64xf32> -> vector<64x64xf32>
    %35 = arith.addf %28, %34 : vector<64x64xf32>
    %c0_35 = arith.constant 0 : index
    %c1_36 = arith.constant 1 : index
    %c2_37 = arith.constant 2 : index
    %c0_38 = arith.constant 0 : index
    %36 = vector.load %arg1[%c0_35, %c1_36, %c2_37, %c0_38] : memref<1x10x10x4xf32, #tpu.memory_space<vmem>>, vector<1x8x8x4xf32>
    %37 = vector.shape_cast %36 : vector<1x8x8x4xf32> to vector<64x4xf32>
    %38 = arith.truncf %37 : vector<64x4xf32> to vector<64x4xbf16>
    %c5 = arith.constant 5 : index
    %c0_39 = arith.constant 0 : index
    %c0_40 = arith.constant 0 : index
    %39 = vector.load %arg2[%c5, %c0_39, %c0_40] : memref<9x4x64xbf16, #tpu.memory_space<vmem>>, vector<1x4x64xbf16>
    %40 = vector.shape_cast %39 : vector<1x4x64xbf16> to vector<4x64xbf16>
    %cst_41 = arith.constant dense<0.000000e+00> : vector<64x64xf32>
    %41 = tpu.matmul %38, %40, %cst_41 {dimension_numbers = #tpu.dot_dimension_numbers<[1], [0], [0], [1], [0, 0, 1, 1], [], []>} : vector<64x4xbf16>, vector<4x64xbf16>, vector<64x64xf32> -> vector<64x64xf32>
    %42 = arith.addf %35, %41 : vector<64x64xf32>
    %c0_42 = arith.constant 0 : index
    %c2_43 = arith.constant 2 : index
    %c0_44 = arith.constant 0 : index
    %c0_45 = arith.constant 0 : index
    %43 = vector.load %arg1[%c0_42, %c2_43, %c0_44, %c0_45] : memref<1x10x10x4xf32, #tpu.memory_space<vmem>>, vector<1x8x8x4xf32>
    %44 = vector.shape_cast %43 : vector<1x8x8x4xf32> to vector<64x4xf32>
    %45 = arith.truncf %44 : vector<64x4xf32> to vector<64x4xbf16>
    %c6 = arith.constant 6 : index
    %c0_46 = arith.constant 0 : index
    %c0_47 = arith.constant 0 : index
    %46 = vector.load %arg2[%c6, %c0_46, %c0_47] : memref<9x4x64xbf16, #tpu.memory_space<vmem>>, vector<1x4x64xbf16>
    %47 = vector.shape_cast %46 : vector<1x4x64xbf16> to vector<4x64xbf16>
    %cst_48 = arith.constant dense<0.000000e+00> : vector<64x64xf32>
    %48 = tpu.matmul %45, %47, %cst_48 {dimension_numbers = #tpu.dot_dimension_numbers<[1], [0], [0], [1], [0, 0, 1, 1], [], []>} : vector<64x4xbf16>, vector<4x64xbf16>, vector<64x64xf32> -> vector<64x64xf32>
    %49 = arith.addf %42, %48 : vector<64x64xf32>
    %c0_49 = arith.constant 0 : index
    %c2_50 = arith.constant 2 : index
    %c1_51 = arith.constant 1 : index
    %c0_52 = arith.constant 0 : index
    %50 = vector.load %arg1[%c0_49, %c2_50, %c1_51, %c0_52] : memref<1x10x10x4xf32, #tpu.memory_space<vmem>>, vector<1x8x8x4xf32>
    %51 = vector.shape_cast %50 : vector<1x8x8x4xf32> to vector<64x4xf32>
    %52 = arith.truncf %51 : vector<64x4xf32> to vector<64x4xbf16>
    %c7 = arith.constant 7 : index
    %c0_53 = arith.constant 0 : index
    %c0_54 = arith.constant 0 : index
    %53 = vector.load %arg2[%c7, %c0_53, %c0_54] : memref<9x4x64xbf16, #tpu.memory_space<vmem>>, vector<1x4x64xbf16>
    %54 = vector.shape_cast %53 : vector<1x4x64xbf16> to vector<4x64xbf16>
    %cst_55 = arith.constant dense<0.000000e+00> : vector<64x64xf32>
    %55 = tpu.matmul %52, %54, %cst_55 {dimension_numbers = #tpu.dot_dimension_numbers<[1], [0], [0], [1], [0, 0, 1, 1], [], []>} : vector<64x4xbf16>, vector<4x64xbf16>, vector<64x64xf32> -> vector<64x64xf32>
    %56 = arith.addf %49, %55 : vector<64x64xf32>
    %c0_56 = arith.constant 0 : index
    %c2_57 = arith.constant 2 : index
    %c2_58 = arith.constant 2 : index
    %c0_59 = arith.constant 0 : index
    %57 = vector.load %arg1[%c0_56, %c2_57, %c2_58, %c0_59] : memref<1x10x10x4xf32, #tpu.memory_space<vmem>>, vector<1x8x8x4xf32>
    %58 = vector.shape_cast %57 : vector<1x8x8x4xf32> to vector<64x4xf32>
    %59 = arith.truncf %58 : vector<64x4xf32> to vector<64x4xbf16>
    %c8 = arith.constant 8 : index
    %c0_60 = arith.constant 0 : index
    %c0_61 = arith.constant 0 : index
    %60 = vector.load %arg2[%c8, %c0_60, %c0_61] : memref<9x4x64xbf16, #tpu.memory_space<vmem>>, vector<1x4x64xbf16>
    %61 = vector.shape_cast %60 : vector<1x4x64xbf16> to vector<4x64xbf16>
    %cst_62 = arith.constant dense<0.000000e+00> : vector<64x64xf32>
    %62 = tpu.matmul %59, %61, %cst_62 {dimension_numbers = #tpu.dot_dimension_numbers<[1], [0], [0], [1], [0, 0, 1, 1], [], []>} : vector<64x4xbf16>, vector<4x64xbf16>, vector<64x64xf32> -> vector<64x64xf32>
    %63 = arith.addf %56, %62 : vector<64x64xf32>
    %c0_63 = arith.constant 0 : index
    %c0_64 = arith.constant 0 : index
    %64 = vector.load %arg3[%c0_63, %c0_64] : memref<1x64xf32, #tpu.memory_space<vmem>>, vector<1x64xf32>
    %65 = vector.broadcast %64 : vector<1x64xf32> to vector<64x64xf32>
    %66 = arith.addf %63, %65 : vector<64x64xf32>
    %cst_65 = arith.constant 0.000000e+00 : f32
    %67 = vector.broadcast %cst_65 : f32 to vector<64x64xf32>
    %68 = arith.maximumf %66, %67 : vector<64x64xf32>
    %cst_66 = arith.constant 0.000000e+00 : f32
    %69 = vector.broadcast %cst_66 : f32 to vector<1x10x10x64xf32>
    %c0_67 = arith.constant 0 : index
    %c0_68 = arith.constant 0 : index
    %c0_69 = arith.constant 0 : index
    %c0_70 = arith.constant 0 : index
    %70 = vector.load %arg9[%c0_67, %c0_68, %c0_69, %c0_70] : memref<1x10x10x64xf32, #tpu.memory_space<vmem>>, vector<1x10x10x64xf32>
    tpu.vector_store %arg9[%c0_67, %c0_68, %c0_69, %c0_70], %69 {strides = array<i32>} : memref<1x10x10x64xf32, #tpu.memory_space<vmem>>, vector<1x10x10x64xf32>,
    %71 = vector.shape_cast %68 : vector<64x64xf32> to vector<1x8x8x64xf32>
    %c0_71 = arith.constant 0 : index
    %c1_72 = arith.constant 1 : index
    %c1_73 = arith.constant 1 : index
    %c0_74 = arith.constant 0 : index
    %72 = vector.load %arg9[%c0_71, %c1_72, %c1_73, %c0_74] : memref<1x10x10x64xf32, #tpu.memory_space<vmem>>, vector<1x8x8x64xf32>
    tpu.vector_store %arg9[%c0_71, %c1_72, %c1_73, %c0_74], %71 {strides = array<i32>} : memref<1x10x10x64xf32, #tpu.memory_space<vmem>>, vector<1x8x8x64xf32>,
    %cst_75 = arith.constant 0.000000e+00 : f32
    %73 = vector.broadcast %cst_75 : f32 to vector<64x128xf32>
    %c0_76 = arith.constant 0 : index
    %c0_77 = arith.constant 0 : index
    %c0_78 = arith.constant 0 : index
    %c0_79 = arith.constant 0 : index
    %74 = vector.load %arg9[%c0_76, %c0_77, %c0_78, %c0_79] : memref<1x10x10x64xf32, #tpu.memory_space<vmem>>, vector<1x8x8x64xf32>
    %75 = vector.shape_cast %74 : vector<1x8x8x64xf32> to vector<64x64xf32>
    %76 = arith.truncf %75 : vector<64x64xf32> to vector<64x64xbf16>
    %c0_80 = arith.constant 0 : index
    %c0_81 = arith.constant 0 : index
    %c0_82 = arith.constant 0 : index
    %77 = vector.load %arg4[%c0_80, %c0_81, %c0_82] : memref<9x64x128xbf16, #tpu.memory_space<vmem>>, vector<1x64x128xbf16>
    %78 = vector.shape_cast %77 : vector<1x64x128xbf16> to vector<64x128xbf16>
    %cst_83 = arith.constant dense<0.000000e+00> : vector<64x128xf32>
    %79 = tpu.matmul %76, %78, %cst_83 {dimension_numbers = #tpu.dot_dimension_numbers<[1], [0], [0], [1], [0, 0, 1, 1], [], []>} : vector<64x64xbf16>, vector<64x128xbf16>, vector<64x128xf32> -> vector<64x128xf32>
    %80 = arith.addf %73, %79 : vector<64x128xf32>
    %c0_84 = arith.constant 0 : index
    %c0_85 = arith.constant 0 : index
    %c1_86 = arith.constant 1 : index
    %c0_87 = arith.constant 0 : index
    %81 = vector.load %arg9[%c0_84, %c0_85, %c1_86, %c0_87] : memref<1x10x10x64xf32, #tpu.memory_space<vmem>>, vector<1x8x8x64xf32>
    %82 = vector.shape_cast %81 : vector<1x8x8x64xf32> to vector<64x64xf32>
    %83 = arith.truncf %82 : vector<64x64xf32> to vector<64x64xbf16>
    %c1_88 = arith.constant 1 : index
    %c0_89 = arith.constant 0 : index
    %c0_90 = arith.constant 0 : index
    %84 = vector.load %arg4[%c1_88, %c0_89, %c0_90] : memref<9x64x128xbf16, #tpu.memory_space<vmem>>, vector<1x64x128xbf16>
    %85 = vector.shape_cast %84 : vector<1x64x128xbf16> to vector<64x128xbf16>
    %cst_91 = arith.constant dense<0.000000e+00> : vector<64x128xf32>
    %86 = tpu.matmul %83, %85, %cst_91 {dimension_numbers = #tpu.dot_dimension_numbers<[1], [0], [0], [1], [0, 0, 1, 1], [], []>} : vector<64x64xbf16>, vector<64x128xbf16>, vector<64x128xf32> -> vector<64x128xf32>
    %87 = arith.addf %80, %86 : vector<64x128xf32>
    %c0_92 = arith.constant 0 : index
    %c0_93 = arith.constant 0 : index
    %c2_94 = arith.constant 2 : index
    %c0_95 = arith.constant 0 : index
    %88 = vector.load %arg9[%c0_92, %c0_93, %c2_94, %c0_95] : memref<1x10x10x64xf32, #tpu.memory_space<vmem>>, vector<1x8x8x64xf32>
    %89 = vector.shape_cast %88 : vector<1x8x8x64xf32> to vector<64x64xf32>
    %90 = arith.truncf %89 : vector<64x64xf32> to vector<64x64xbf16>
    %c2_96 = arith.constant 2 : index
    %c0_97 = arith.constant 0 : index
    %c0_98 = arith.constant 0 : index
    %91 = vector.load %arg4[%c2_96, %c0_97, %c0_98] : memref<9x64x128xbf16, #tpu.memory_space<vmem>>, vector<1x64x128xbf16>
    %92 = vector.shape_cast %91 : vector<1x64x128xbf16> to vector<64x128xbf16>
    %cst_99 = arith.constant dense<0.000000e+00> : vector<64x128xf32>
    %93 = tpu.matmul %90, %92, %cst_99 {dimension_numbers = #tpu.dot_dimension_numbers<[1], [0], [0], [1], [0, 0, 1, 1], [], []>} : vector<64x64xbf16>, vector<64x128xbf16>, vector<64x128xf32> -> vector<64x128xf32>
    %94 = arith.addf %87, %93 : vector<64x128xf32>
    %c0_100 = arith.constant 0 : index
    %c1_101 = arith.constant 1 : index
    %c0_102 = arith.constant 0 : index
    %c0_103 = arith.constant 0 : index
    %95 = vector.load %arg9[%c0_100, %c1_101, %c0_102, %c0_103] : memref<1x10x10x64xf32, #tpu.memory_space<vmem>>, vector<1x8x8x64xf32>
    %96 = vector.shape_cast %95 : vector<1x8x8x64xf32> to vector<64x64xf32>
    %97 = arith.truncf %96 : vector<64x64xf32> to vector<64x64xbf16>
    %c3_104 = arith.constant 3 : index
    %c0_105 = arith.constant 0 : index
    %c0_106 = arith.constant 0 : index
    %98 = vector.load %arg4[%c3_104, %c0_105, %c0_106] : memref<9x64x128xbf16, #tpu.memory_space<vmem>>, vector<1x64x128xbf16>
    %99 = vector.shape_cast %98 : vector<1x64x128xbf16> to vector<64x128xbf16>
    %cst_107 = arith.constant dense<0.000000e+00> : vector<64x128xf32>
    %100 = tpu.matmul %97, %99, %cst_107 {dimension_numbers = #tpu.dot_dimension_numbers<[1], [0], [0], [1], [0, 0, 1, 1], [], []>} : vector<64x64xbf16>, vector<64x128xbf16>, vector<64x128xf32> -> vector<64x128xf32>
    %101 = arith.addf %94, %100 : vector<64x128xf32>
    %c0_108 = arith.constant 0 : index
    %c1_109 = arith.constant 1 : index
    %c1_110 = arith.constant 1 : index
    %c0_111 = arith.constant 0 : index
    %102 = vector.load %arg9[%c0_108, %c1_109, %c1_110, %c0_111] : memref<1x10x10x64xf32, #tpu.memory_space<vmem>>, vector<1x8x8x64xf32>
    %103 = vector.shape_cast %102 : vector<1x8x8x64xf32> to vector<64x64xf32>
    %104 = arith.truncf %103 : vector<64x64xf32> to vector<64x64xbf16>
    %c4_112 = arith.constant 4 : index
    %c0_113 = arith.constant 0 : index
    %c0_114 = arith.constant 0 : index
    %105 = vector.load %arg4[%c4_112, %c0_113, %c0_114] : memref<9x64x128xbf16, #tpu.memory_space<vmem>>, vector<1x64x128xbf16>
    %106 = vector.shape_cast %105 : vector<1x64x128xbf16> to vector<64x128xbf16>
    %cst_115 = arith.constant dense<0.000000e+00> : vector<64x128xf32>
    %107 = tpu.matmul %104, %106, %cst_115 {dimension_numbers = #tpu.dot_dimension_numbers<[1], [0], [0], [1], [0, 0, 1, 1], [], []>} : vector<64x64xbf16>, vector<64x128xbf16>, vector<64x128xf32> -> vector<64x128xf32>
    %108 = arith.addf %101, %107 : vector<64x128xf32>
    %c0_116 = arith.constant 0 : index
    %c1_117 = arith.constant 1 : index
    %c2_118 = arith.constant 2 : index
    %c0_119 = arith.constant 0 : index
    %109 = vector.load %arg9[%c0_116, %c1_117, %c2_118, %c0_119] : memref<1x10x10x64xf32, #tpu.memory_space<vmem>>, vector<1x8x8x64xf32>
    %110 = vector.shape_cast %109 : vector<1x8x8x64xf32> to vector<64x64xf32>
    %111 = arith.truncf %110 : vector<64x64xf32> to vector<64x64xbf16>
    %c5_120 = arith.constant 5 : index
    %c0_121 = arith.constant 0 : index
    %c0_122 = arith.constant 0 : index
    %112 = vector.load %arg4[%c5_120, %c0_121, %c0_122] : memref<9x64x128xbf16, #tpu.memory_space<vmem>>, vector<1x64x128xbf16>
    %113 = vector.shape_cast %112 : vector<1x64x128xbf16> to vector<64x128xbf16>
    %cst_123 = arith.constant dense<0.000000e+00> : vector<64x128xf32>
    %114 = tpu.matmul %111, %113, %cst_123 {dimension_numbers = #tpu.dot_dimension_numbers<[1], [0], [0], [1], [0, 0, 1, 1], [], []>} : vector<64x64xbf16>, vector<64x128xbf16>, vector<64x128xf32> -> vector<64x128xf32>
    %115 = arith.addf %108, %114 : vector<64x128xf32>
    %c0_124 = arith.constant 0 : index
    %c2_125 = arith.constant 2 : index
    %c0_126 = arith.constant 0 : index
    %c0_127 = arith.constant 0 : index
    %116 = vector.load %arg9[%c0_124, %c2_125, %c0_126, %c0_127] : memref<1x10x10x64xf32, #tpu.memory_space<vmem>>, vector<1x8x8x64xf32>
    %117 = vector.shape_cast %116 : vector<1x8x8x64xf32> to vector<64x64xf32>
    %118 = arith.truncf %117 : vector<64x64xf32> to vector<64x64xbf16>
    %c6_128 = arith.constant 6 : index
    %c0_129 = arith.constant 0 : index
    %c0_130 = arith.constant 0 : index
    %119 = vector.load %arg4[%c6_128, %c0_129, %c0_130] : memref<9x64x128xbf16, #tpu.memory_space<vmem>>, vector<1x64x128xbf16>
    %120 = vector.shape_cast %119 : vector<1x64x128xbf16> to vector<64x128xbf16>
    %cst_131 = arith.constant dense<0.000000e+00> : vector<64x128xf32>
    %121 = tpu.matmul %118, %120, %cst_131 {dimension_numbers = #tpu.dot_dimension_numbers<[1], [0], [0], [1], [0, 0, 1, 1], [], []>} : vector<64x64xbf16>, vector<64x128xbf16>, vector<64x128xf32> -> vector<64x128xf32>
    %122 = arith.addf %115, %121 : vector<64x128xf32>
    %c0_132 = arith.constant 0 : index
    %c2_133 = arith.constant 2 : index
    %c1_134 = arith.constant 1 : index
    %c0_135 = arith.constant 0 : index
    %123 = vector.load %arg9[%c0_132, %c2_133, %c1_134, %c0_135] : memref<1x10x10x64xf32, #tpu.memory_space<vmem>>, vector<1x8x8x64xf32>
    %124 = vector.shape_cast %123 : vector<1x8x8x64xf32> to vector<64x64xf32>
    %125 = arith.truncf %124 : vector<64x64xf32> to vector<64x64xbf16>
    %c7_136 = arith.constant 7 : index
    %c0_137 = arith.constant 0 : index
    %c0_138 = arith.constant 0 : index
    %126 = vector.load %arg4[%c7_136, %c0_137, %c0_138] : memref<9x64x128xbf16, #tpu.memory_space<vmem>>, vector<1x64x128xbf16>
    %127 = vector.shape_cast %126 : vector<1x64x128xbf16> to vector<64x128xbf16>
    %cst_139 = arith.constant dense<0.000000e+00> : vector<64x128xf32>
    %128 = tpu.matmul %125, %127, %cst_139 {dimension_numbers = #tpu.dot_dimension_numbers<[1], [0], [0], [1], [0, 0, 1, 1], [], []>} : vector<64x64xbf16>, vector<64x128xbf16>, vector<64x128xf32> -> vector<64x128xf32>
    %129 = arith.addf %122, %128 : vector<64x128xf32>
    %c0_140 = arith.constant 0 : index
    %c2_141 = arith.constant 2 : index
    %c2_142 = arith.constant 2 : index
    %c0_143 = arith.constant 0 : index
    %130 = vector.load %arg9[%c0_140, %c2_141, %c2_142, %c0_143] : memref<1x10x10x64xf32, #tpu.memory_space<vmem>>, vector<1x8x8x64xf32>
    %131 = vector.shape_cast %130 : vector<1x8x8x64xf32> to vector<64x64xf32>
    %132 = arith.truncf %131 : vector<64x64xf32> to vector<64x64xbf16>
    %c8_144 = arith.constant 8 : index
    %c0_145 = arith.constant 0 : index
    %c0_146 = arith.constant 0 : index
    %133 = vector.load %arg4[%c8_144, %c0_145, %c0_146] : memref<9x64x128xbf16, #tpu.memory_space<vmem>>, vector<1x64x128xbf16>
    %134 = vector.shape_cast %133 : vector<1x64x128xbf16> to vector<64x128xbf16>
    %cst_147 = arith.constant dense<0.000000e+00> : vector<64x128xf32>
    %135 = tpu.matmul %132, %134, %cst_147 {dimension_numbers = #tpu.dot_dimension_numbers<[1], [0], [0], [1], [0, 0, 1, 1], [], []>} : vector<64x64xbf16>, vector<64x128xbf16>, vector<64x128xf32> -> vector<64x128xf32>
    %136 = arith.addf %129, %135 : vector<64x128xf32>
    %c0_148 = arith.constant 0 : index
    %c0_149 = arith.constant 0 : index
    %137 = vector.load %arg5[%c0_148, %c0_149] : memref<1x128xf32, #tpu.memory_space<vmem>>, vector<1x128xf32>
    %138 = vector.broadcast %137 : vector<1x128xf32> to vector<64x128xf32>
    %139 = arith.addf %136, %138 : vector<64x128xf32>
    %cst_150 = arith.constant 0.000000e+00 : f32
    %140 = vector.broadcast %cst_150 : f32 to vector<64x128xf32>
    %141 = arith.maximumf %139, %140 : vector<64x128xf32>
    %cst_151 = arith.constant 0.000000e+00 : f32
    %142 = vector.broadcast %cst_151 : f32 to vector<1x10x10x128xf32>
    %c0_152 = arith.constant 0 : index
    %c0_153 = arith.constant 0 : index
    %c0_154 = arith.constant 0 : index
    %c0_155 = arith.constant 0 : index
    %143 = vector.load %arg10[%c0_152, %c0_153, %c0_154, %c0_155] : memref<1x10x10x128xf32, #tpu.memory_space<vmem>>, vector<1x10x10x128xf32>
    tpu.vector_store %arg10[%c0_152, %c0_153, %c0_154, %c0_155], %142 {strides = array<i32>} : memref<1x10x10x128xf32, #tpu.memory_space<vmem>>, vector<1x10x10x128xf32>,
    %144 = vector.shape_cast %141 : vector<64x128xf32> to vector<1x8x8x128xf32>
    %c0_156 = arith.constant 0 : index
    %c1_157 = arith.constant 1 : index
    %c1_158 = arith.constant 1 : index
    %c0_159 = arith.constant 0 : index
    %145 = vector.load %arg10[%c0_156, %c1_157, %c1_158, %c0_159] : memref<1x10x10x128xf32, #tpu.memory_space<vmem>>, vector<1x8x8x128xf32>
    tpu.vector_store %arg10[%c0_156, %c1_157, %c1_158, %c0_159], %144 {strides = array<i32>} : memref<1x10x10x128xf32, #tpu.memory_space<vmem>>, vector<1x8x8x128xf32>,
    %cst_160 = arith.constant 0.000000e+00 : f32
    %146 = vector.broadcast %cst_160 : f32 to vector<64x256xf32>
    %c0_161 = arith.constant 0 : index
    %c0_162 = arith.constant 0 : index
    %c0_163 = arith.constant 0 : index
    %c0_164 = arith.constant 0 : index
    %147 = vector.load %arg10[%c0_161, %c0_162, %c0_163, %c0_164] : memref<1x10x10x128xf32, #tpu.memory_space<vmem>>, vector<1x8x8x128xf32>
    %148 = vector.shape_cast %147 : vector<1x8x8x128xf32> to vector<64x128xf32>
    %149 = arith.truncf %148 : vector<64x128xf32> to vector<64x128xbf16>
    %c0_165 = arith.constant 0 : index
    %c0_166 = arith.constant 0 : index
    %c0_167 = arith.constant 0 : index
    %150 = vector.load %arg6[%c0_165, %c0_166, %c0_167] : memref<9x128x256xbf16, #tpu.memory_space<vmem>>, vector<1x128x256xbf16>
    %151 = vector.shape_cast %150 : vector<1x128x256xbf16> to vector<128x256xbf16>
    %cst_168 = arith.constant dense<0.000000e+00> : vector<64x256xf32>
    %152 = tpu.matmul %149, %151, %cst_168 {dimension_numbers = #tpu.dot_dimension_numbers<[1], [0], [0], [1], [0, 0, 1, 1], [], []>} : vector<64x128xbf16>, vector<128x256xbf16>, vector<64x256xf32> -> vector<64x256xf32>
    %153 = arith.addf %146, %152 : vector<64x256xf32>
    %c0_169 = arith.constant 0 : index
    %c0_170 = arith.constant 0 : index
    %c1_171 = arith.constant 1 : index
    %c0_172 = arith.constant 0 : index
    %154 = vector.load %arg10[%c0_169, %c0_170, %c1_171, %c0_172] : memref<1x10x10x128xf32, #tpu.memory_space<vmem>>, vector<1x8x8x128xf32>
    %155 = vector.shape_cast %154 : vector<1x8x8x128xf32> to vector<64x128xf32>
    %156 = arith.truncf %155 : vector<64x128xf32> to vector<64x128xbf16>
    %c1_173 = arith.constant 1 : index
    %c0_174 = arith.constant 0 : index
    %c0_175 = arith.constant 0 : index
    %157 = vector.load %arg6[%c1_173, %c0_174, %c0_175] : memref<9x128x256xbf16, #tpu.memory_space<vmem>>, vector<1x128x256xbf16>
    %158 = vector.shape_cast %157 : vector<1x128x256xbf16> to vector<128x256xbf16>
    %cst_176 = arith.constant dense<0.000000e+00> : vector<64x256xf32>
    %159 = tpu.matmul %156, %158, %cst_176 {dimension_numbers = #tpu.dot_dimension_numbers<[1], [0], [0], [1], [0, 0, 1, 1], [], []>} : vector<64x128xbf16>, vector<128x256xbf16>, vector<64x256xf32> -> vector<64x256xf32>
    %160 = arith.addf %153, %159 : vector<64x256xf32>
    %c0_177 = arith.constant 0 : index
    %c0_178 = arith.constant 0 : index
    %c2_179 = arith.constant 2 : index
    %c0_180 = arith.constant 0 : index
    %161 = vector.load %arg10[%c0_177, %c0_178, %c2_179, %c0_180] : memref<1x10x10x128xf32, #tpu.memory_space<vmem>>, vector<1x8x8x128xf32>
    %162 = vector.shape_cast %161 : vector<1x8x8x128xf32> to vector<64x128xf32>
    %163 = arith.truncf %162 : vector<64x128xf32> to vector<64x128xbf16>
    %c2_181 = arith.constant 2 : index
    %c0_182 = arith.constant 0 : index
    %c0_183 = arith.constant 0 : index
    %164 = vector.load %arg6[%c2_181, %c0_182, %c0_183] : memref<9x128x256xbf16, #tpu.memory_space<vmem>>, vector<1x128x256xbf16>
    %165 = vector.shape_cast %164 : vector<1x128x256xbf16> to vector<128x256xbf16>
    %cst_184 = arith.constant dense<0.000000e+00> : vector<64x256xf32>
    %166 = tpu.matmul %163, %165, %cst_184 {dimension_numbers = #tpu.dot_dimension_numbers<[1], [0], [0], [1], [0, 0, 1, 1], [], []>} : vector<64x128xbf16>, vector<128x256xbf16>, vector<64x256xf32> -> vector<64x256xf32>
    %167 = arith.addf %160, %166 : vector<64x256xf32>
    %c0_185 = arith.constant 0 : index
    %c1_186 = arith.constant 1 : index
    %c0_187 = arith.constant 0 : index
    %c0_188 = arith.constant 0 : index
    %168 = vector.load %arg10[%c0_185, %c1_186, %c0_187, %c0_188] : memref<1x10x10x128xf32, #tpu.memory_space<vmem>>, vector<1x8x8x128xf32>
    %169 = vector.shape_cast %168 : vector<1x8x8x128xf32> to vector<64x128xf32>
    %170 = arith.truncf %169 : vector<64x128xf32> to vector<64x128xbf16>
    %c3_189 = arith.constant 3 : index
    %c0_190 = arith.constant 0 : index
    %c0_191 = arith.constant 0 : index
    %171 = vector.load %arg6[%c3_189, %c0_190, %c0_191] : memref<9x128x256xbf16, #tpu.memory_space<vmem>>, vector<1x128x256xbf16>
    %172 = vector.shape_cast %171 : vector<1x128x256xbf16> to vector<128x256xbf16>
    %cst_192 = arith.constant dense<0.000000e+00> : vector<64x256xf32>
    %173 = tpu.matmul %170, %172, %cst_192 {dimension_numbers = #tpu.dot_dimension_numbers<[1], [0], [0], [1], [0, 0, 1, 1], [], []>} : vector<64x128xbf16>, vector<128x256xbf16>, vector<64x256xf32> -> vector<64x256xf32>
    %174 = arith.addf %167, %173 : vector<64x256xf32>
    %c0_193 = arith.constant 0 : index
    %c1_194 = arith.constant 1 : index
    %c1_195 = arith.constant 1 : index
    %c0_196 = arith.constant 0 : index
    %175 = vector.load %arg10[%c0_193, %c1_194, %c1_195, %c0_196] : memref<1x10x10x128xf32, #tpu.memory_space<vmem>>, vector<1x8x8x128xf32>
    %176 = vector.shape_cast %175 : vector<1x8x8x128xf32> to vector<64x128xf32>
    %177 = arith.truncf %176 : vector<64x128xf32> to vector<64x128xbf16>
    %c4_197 = arith.constant 4 : index
    %c0_198 = arith.constant 0 : index
    %c0_199 = arith.constant 0 : index
    %178 = vector.load %arg6[%c4_197, %c0_198, %c0_199] : memref<9x128x256xbf16, #tpu.memory_space<vmem>>, vector<1x128x256xbf16>
    %179 = vector.shape_cast %178 : vector<1x128x256xbf16> to vector<128x256xbf16>
    %cst_200 = arith.constant dense<0.000000e+00> : vector<64x256xf32>
    %180 = tpu.matmul %177, %179, %cst_200 {dimension_numbers = #tpu.dot_dimension_numbers<[1], [0], [0], [1], [0, 0, 1, 1], [], []>} : vector<64x128xbf16>, vector<128x256xbf16>, vector<64x256xf32> -> vector<64x256xf32>
    %181 = arith.addf %174, %180 : vector<64x256xf32>
    %c0_201 = arith.constant 0 : index
    %c1_202 = arith.constant 1 : index
    %c2_203 = arith.constant 2 : index
    %c0_204 = arith.constant 0 : index
    %182 = vector.load %arg10[%c0_201, %c1_202, %c2_203, %c0_204] : memref<1x10x10x128xf32, #tpu.memory_space<vmem>>, vector<1x8x8x128xf32>
    %183 = vector.shape_cast %182 : vector<1x8x8x128xf32> to vector<64x128xf32>
    %184 = arith.truncf %183 : vector<64x128xf32> to vector<64x128xbf16>
    %c5_205 = arith.constant 5 : index
    %c0_206 = arith.constant 0 : index
    %c0_207 = arith.constant 0 : index
    %185 = vector.load %arg6[%c5_205, %c0_206, %c0_207] : memref<9x128x256xbf16, #tpu.memory_space<vmem>>, vector<1x128x256xbf16>
    %186 = vector.shape_cast %185 : vector<1x128x256xbf16> to vector<128x256xbf16>
    %cst_208 = arith.constant dense<0.000000e+00> : vector<64x256xf32>
    %187 = tpu.matmul %184, %186, %cst_208 {dimension_numbers = #tpu.dot_dimension_numbers<[1], [0], [0], [1], [0, 0, 1, 1], [], []>} : vector<64x128xbf16>, vector<128x256xbf16>, vector<64x256xf32> -> vector<64x256xf32>
    %188 = arith.addf %181, %187 : vector<64x256xf32>
    %c0_209 = arith.constant 0 : index
    %c2_210 = arith.constant 2 : index
    %c0_211 = arith.constant 0 : index
    %c0_212 = arith.constant 0 : index
    %189 = vector.load %arg10[%c0_209, %c2_210, %c0_211, %c0_212] : memref<1x10x10x128xf32, #tpu.memory_space<vmem>>, vector<1x8x8x128xf32>
    %190 = vector.shape_cast %189 : vector<1x8x8x128xf32> to vector<64x128xf32>
    %191 = arith.truncf %190 : vector<64x128xf32> to vector<64x128xbf16>
    %c6_213 = arith.constant 6 : index
    %c0_214 = arith.constant 0 : index
    %c0_215 = arith.constant 0 : index
    %192 = vector.load %arg6[%c6_213, %c0_214, %c0_215] : memref<9x128x256xbf16, #tpu.memory_space<vmem>>, vector<1x128x256xbf16>
    %193 = vector.shape_cast %192 : vector<1x128x256xbf16> to vector<128x256xbf16>
    %cst_216 = arith.constant dense<0.000000e+00> : vector<64x256xf32>
    %194 = tpu.matmul %191, %193, %cst_216 {dimension_numbers = #tpu.dot_dimension_numbers<[1], [0], [0], [1], [0, 0, 1, 1], [], []>} : vector<64x128xbf16>, vector<128x256xbf16>, vector<64x256xf32> -> vector<64x256xf32>
    %195 = arith.addf %188, %194 : vector<64x256xf32>
    %c0_217 = arith.constant 0 : index
    %c2_218 = arith.constant 2 : index
    %c1_219 = arith.constant 1 : index
    %c0_220 = arith.constant 0 : index
    %196 = vector.load %arg10[%c0_217, %c2_218, %c1_219, %c0_220] : memref<1x10x10x128xf32, #tpu.memory_space<vmem>>, vector<1x8x8x128xf32>
    %197 = vector.shape_cast %196 : vector<1x8x8x128xf32> to vector<64x128xf32>
    %198 = arith.truncf %197 : vector<64x128xf32> to vector<64x128xbf16>
    %c7_221 = arith.constant 7 : index
    %c0_222 = arith.constant 0 : index
    %c0_223 = arith.constant 0 : index
    %199 = vector.load %arg6[%c7_221, %c0_222, %c0_223] : memref<9x128x256xbf16, #tpu.memory_space<vmem>>, vector<1x128x256xbf16>
    %200 = vector.shape_cast %199 : vector<1x128x256xbf16> to vector<128x256xbf16>
    %cst_224 = arith.constant dense<0.000000e+00> : vector<64x256xf32>
    %201 = tpu.matmul %198, %200, %cst_224 {dimension_numbers = #tpu.dot_dimension_numbers<[1], [0], [0], [1], [0, 0, 1, 1], [], []>} : vector<64x128xbf16>, vector<128x256xbf16>, vector<64x256xf32> -> vector<64x256xf32>
    %202 = arith.addf %195, %201 : vector<64x256xf32>
    %c0_225 = arith.constant 0 : index
    %c2_226 = arith.constant 2 : index
    %c2_227 = arith.constant 2 : index
    %c0_228 = arith.constant 0 : index
    %203 = vector.load %arg10[%c0_225, %c2_226, %c2_227, %c0_228] : memref<1x10x10x128xf32, #tpu.memory_space<vmem>>, vector<1x8x8x128xf32>
    %204 = vector.shape_cast %203 : vector<1x8x8x128xf32> to vector<64x128xf32>
    %205 = arith.truncf %204 : vector<64x128xf32> to vector<64x128xbf16>
    %c8_229 = arith.constant 8 : index
    %c0_230 = arith.constant 0 : index
    %c0_231 = arith.constant 0 : index
    %206 = vector.load %arg6[%c8_229, %c0_230, %c0_231] : memref<9x128x256xbf16, #tpu.memory_space<vmem>>, vector<1x128x256xbf16>
    %207 = vector.shape_cast %206 : vector<1x128x256xbf16> to vector<128x256xbf16>
    %cst_232 = arith.constant dense<0.000000e+00> : vector<64x256xf32>
    %208 = tpu.matmul %205, %207, %cst_232 {dimension_numbers = #tpu.dot_dimension_numbers<[1], [0], [0], [1], [0, 0, 1, 1], [], []>} : vector<64x128xbf16>, vector<128x256xbf16>, vector<64x256xf32> -> vector<64x256xf32>
    %209 = arith.addf %202, %208 : vector<64x256xf32>
    %c0_233 = arith.constant 0 : index
    %c0_234 = arith.constant 0 : index
    %210 = vector.load %arg7[%c0_233, %c0_234] : memref<1x256xf32, #tpu.memory_space<vmem>>, vector<1x256xf32>
    %211 = vector.broadcast %210 : vector<1x256xf32> to vector<64x256xf32>
    %212 = arith.addf %209, %211 : vector<64x256xf32>
    %cst_235 = arith.constant 0.000000e+00 : f32
    %213 = vector.broadcast %cst_235 : f32 to vector<64x256xf32>
    %214 = arith.maximumf %212, %213 : vector<64x256xf32>
    %c0_236 = arith.constant 0 : index
    %c0_237 = arith.constant 0 : index
    %215 = vector.load %arg8[%c0_236, %c0_237] : memref<64x256xf32, #tpu.memory_space<vmem>>, vector<64x256xf32>
    tpu.vector_store %arg8[%c0_236, %c0_237], %214 {strides = array<i32>} : memref<64x256xf32, #tpu.memory_space<vmem>>, vector<64x256xf32>,
    return
  }
  func.func @transform_0(%arg0: i32) -> (i32, i32, i32, i32) {
    %c0_i32 = arith.constant 0 : i32
    %c0_i32_0 = arith.constant 0 : i32
    %c0_i32_1 = arith.constant 0 : i32
    %c0_i32_2 = arith.constant 0 : i32
    return %arg0, %c0_i32, %c0_i32_0, %c0_i32_1 : i32, i32, i32, i32
  }
  func.func @transform_1(%arg0: i32) -> (i32, i32, i32) {
    %c0_i32 = arith.constant 0 : i32
    %c0_i32_0 = arith.constant 0 : i32
    %c0_i32_1 = arith.constant 0 : i32
    %c0_i32_2 = arith.constant 0 : i32
    return %c0_i32, %c0_i32_0, %c0_i32_1 : i32, i32, i32
  }
  func.func @transform_2(%arg0: i32) -> (i32, i32) {
    %c0_i32 = arith.constant 0 : i32
    %c0_i32_0 = arith.constant 0 : i32
    %c0_i32_1 = arith.constant 0 : i32
    return %c0_i32, %c0_i32_0 : i32, i32
  }
  func.func @transform_3(%arg0: i32) -> (i32, i32, i32) {
    %c0_i32 = arith.constant 0 : i32
    %c0_i32_0 = arith.constant 0 : i32
    %c0_i32_1 = arith.constant 0 : i32
    %c0_i32_2 = arith.constant 0 : i32
    return %c0_i32, %c0_i32_0, %c0_i32_1 : i32, i32, i32
  }
  func.func @transform_4(%arg0: i32) -> (i32, i32) {
    %c0_i32 = arith.constant 0 : i32
    %c0_i32_0 = arith.constant 0 : i32
    %c0_i32_1 = arith.constant 0 : i32
    return %c0_i32, %c0_i32_0 : i32, i32
  }
  func.func @transform_5(%arg0: i32) -> (i32, i32, i32) {
    %c0_i32 = arith.constant 0 : i32
    %c0_i32_0 = arith.constant 0 : i32
    %c0_i32_1 = arith.constant 0 : i32
    %c0_i32_2 = arith.constant 0 : i32
    return %c0_i32, %c0_i32_0, %c0_i32_1 : i32, i32, i32
  }
  func.func @transform_6(%arg0: i32) -> (i32, i32) {
    %c0_i32 = arith.constant 0 : i32
    %c0_i32_0 = arith.constant 0 : i32
    %c0_i32_1 = arith.constant 0 : i32
    return %c0_i32, %c0_i32_0 : i32, i32
  }
  func.func @transform_7(%arg0: i32) -> (i32, i32) {
    %c0_i32 = arith.constant 0 : i32
    %c0_i32_0 = arith.constant 0 : i32
    return %arg0, %c0_i32 : i32, i32
  }
}

</mosaic_0001>

<bundles_post_ra>
// kernel: squeeze.5
= control target key start
LH: loop header
LB: loop body
LE: loop exit
PB: predicated region body
PF: predicated region fallthrough
CT: control target
= control target key end

     0   :  { %s7_s6 = smov 3  ;;  %s21_s9 = smov 3  ;;  %vm4_vm0 = vcmask 64512   ;;  %vm11_vm1 = vcmask 523712   ;;  %vm18_vm2 = vcmask 458112   ;;  %vm25_vm3 = vcmask 392512   ;;  %s119_s0 = inlined_call_operand.vmem [shape: f32[2,1,8,8], index: 0, kind: input, shape index: {}]   ;;  %s120_s1 = inlined_call_operand.vmem [shape: f32[2,64], index: 1, kind: output, shape index: {}]  }
   0x1   :  { %v61_v0 = vld [vmem:[%s119_s0 + $0x7] ss:$8 sm:%s7_s6]   ;;  %s75_s10 = smov 56   ;;  %v63_v1 = vld [vmem:[%s119_s0 + $0x5] ss:$8 sm:%s21_s9]   ;;  %s76_s13 = smov 40  }
   0x2   :  { %9 = vrot.lane.b32.xlu0 %v61_v0, %s75_s10  ;;  %23 = vrot.lane.b32.xlu1 %v63_v1, %s76_s13  ;;  %s14_s14 = smov 3  ;;  %s28_s15 = smov 3  ;;  %vm32_vm4 = vcmask 326912   ;;  %vm39_vm5 = vcmask 261312   ;;  %vm46_vm6 = vcmask 195712   ;;  %vm53_vm7 = vcmask 130112  }
   0x3   :  { %s35_s16 = smov 3  ;;  %v62_v3 = vld [vmem:[%s119_s0 + $0x6] ss:$8 sm:%s14_s14]   ;;  %s77_s21 = smov 24   ;;  %v64_v4 = vld [vmem:[%s119_s0 + $0x4] ss:$8 sm:%s28_s15]  }
   0x4   :  { %v65_v2 = vld [vmem:[%s119_s0 + $0x3] ss:$8 sm:%s35_s16]   ;;  %s42_s24 = smov 3  ;;  %s78_s25 = smov 48  }
   0x5   :  { %37 = vrot.lane.b32.xlu2 %v65_v2, %s77_s21  ;;  %s79_s26 = smov 32   ;;  %s49_s27 = smov 3  ;;  %v66_v5 = vld [vmem:[%s119_s0 + $0x2] ss:$8 sm:%s42_s24]  }
   0x6   :  { %v67_v6 = vld [vmem:[%s119_s0 + $0x1] ss:$8 sm:%s49_s27]   ;;  %s80_s3 = smov 16   ;;  %s81_s4 = smov 8  }
   0x7   :  { %s2_s5 = smov 3 }
   0x8   :  { %v3_v7 = vld [vmem:[%s119_s0] ss:$8 sm:%s2_s5]  }
   0x9   :  { %5 = vst.msk [vmem:[#allocation0] sm:$0x3] %vm4_vm0, %v3_v7  }
   0xa   :  { %16 = vrot.lane.b32.xlu0 %v62_v3, %s78_s25  ;;  %30 = vrot.lane.b32.xlu1 %v64_v4, %s79_s26 }
   0xd   :  { %44 = vrot.lane.b32.xlu2 %v66_v5, %s80_s3 }
  0x12   :  { %51 = vrot.lane.b32.xlu0 %v67_v6, %s81_s4 }
  0x5f   :  { %v38_v8 = vpop.permute.xlu2 %37  }
  0x67   :  { %v45_v9 = vpop.permute.xlu2 %44  }
  0x74   :  { %v10_v10 = vpop.permute.xlu0 %9   ;;  %v24_v11 = vpop.permute.xlu1 %23  }
  0x75   :  { %12 = vst.msk [vmem:[#allocation0] sm:$0x3] %vm11_vm1, %v10_v10  }
  0x7c   :  { %v17_v12 = vpop.permute.xlu0 %16   ;;  %v31_v13 = vpop.permute.xlu1 %30  }
  0x7d   :  { %19 = vst.msk [vmem:[#allocation0] sm:$0x3] %vm18_vm2, %v17_v12  }
  0x7e   :  { %26 = vst.msk [vmem:[#allocation0] sm:$0x3] %vm25_vm3, %v24_v11  }
  0x7f   :  { %33 = vst.msk [vmem:[#allocation0] sm:$0x3] %vm32_vm4, %v31_v13  }
  0x80   :  { %40 = vst.msk [vmem:[#allocation0] sm:$0x3] %vm39_vm5, %v38_v8  }
  0x81   :  { %47 = vst.msk [vmem:[#allocation0] sm:$0x3] %vm46_vm6, %v45_v9  }
  0x84   :  { %v52_v14 = vpop.permute.xlu0 %51  }
  0x85   :  { %54 = vst.msk [vmem:[#allocation0] sm:$0x3] %vm53_vm7, %v52_v14  }
  0x8c   :  { %v57_v15 = vld [vmem:[#allocation0] sm:$0x3] }
  0x8d   :  { %60 = vst [vmem:[%s120_s1] sm:$0x3] %v57_v15 }

// kernel: convnet_forward.3
= control target key start
LH: loop header
LB: loop body
LE: loop exit
PB: predicated region body
PF: predicated region fallthrough
CT: control target
= control target key end

     0   :  { %s2260_s15 = smov 0   ;;  %s2444_s0 = inlined_call_operand.vmem [shape: f32[2,16384], index: 0, kind: input, shape index: {}]   ;;  %s2445_s1 = inlined_call_operand.vmem [shape: bf16[16384,64], index: 1, kind: input, shape index: {}]   ;;  %s2446_s2 = inlined_call_operand.vmem [shape: f32[1,64], index: 2, kind: input, shape index: {}]   ;;  %s2447_s3 = inlined_call_operand.vmem [shape: f32[2,64], index: 3, kind: input, shape index: {}]   ;;  %s2448_s4 = inlined_call_operand.vmem [shape: f32[2,64], index: 4, kind: output, shape index: {}]  }
   0x1 LB: > { %s2266_s16 = sadd.s32 4294967295, %s2232_s15   ;;  %p1567_p0 = scmp.ge.s32.totalorder %s2232_s15, 1  ;;  %s2232_s15 = sphi %s2260_s15, %s14_s15  }
   0x2   : > { %p169_p1 = scmp.lt.s32.totalorder %s2232_s15, 9 }
   0x4   : > { %p170_p2 = pnand %p1567_p0, %p169_p1 }
   0x5   : > { %s1568_s17 = sshll.u32 (!%p170_p2), %s2266_s16, 4  ;;  %s1570_s18 = sshll.u32 (!%p170_p2), %s2266_s16, 8 }
   0x6   : > { %173 = sbr.rel (%p170_p2) target bundleno = 301 (0x12d), region = 36  ;;  %p196_p3 = scmp.lt.s32.totalorder (!%p170_p2), %s1568_s17, 127 }
   0x7   : > { %p202_p4 = scmp.lt.s32.totalorder (!%p170_p2), %s1570_s18, 2047  ;;  %p1572_p5 = scmp.ne.s32.totalorder (!%p170_p2), %s2266_s16, 0 }
   0xb   : > { %s2450_s17 = smov (!%p196_p3, %s1568_s17), 127  ;;  %s2452_s18 = smov (!%p202_p4, %s1570_s18), 2047 }
   0xc   : > { %s1569_s19 = sshll.u32 %s2450_s17, 1  ;;  %s1571_s23 = sshll.u32 %s2452_s18, 2 }
   0xd   : > { %s2275_s22 = scalar_lea.vmem %s2444_s0, %s1569_s19  ;;  %s2280_s26 = scalar_lea.vmem %s2445_s1, %s1571_s23 }
   0xe   : > { %210 = sbr.rel (%p1572_p5) target bundleno = 21 (0x15), region = 40 }
  0x13   : > { %vm211_vm0 = vcmask 517120   ;;  %v2234_v0 = vmov 0.0  }
  0x14   : > { %212 = vst.msk [vmem:[#allocation2] sm:$0x3] %vm211_vm0, %v2234_v0 }
  0x15 PF: > { %v2095_v1 = vld [vmem:[%s2280_s26 + $0x38] sm:$0xff]  ;;  %v2094_v5 = vld [vmem:[%s2280_s26 + $0x30] sm:$0xff]  ;;  %v2093_v9 = vld [vmem:[%s2280_s26 + $0x28] sm:$0xff]  ;;  %vm1508_vm1 = vcmask 517120   ;;  %p2085_p6 = scmp.ne.s32.totalorder %s2266_s16, 7 }
  0x16   : > { %v2103_v2 = vld [vmem:[%s2280_s26 + $0x78] sm:$0xff]  ;;  %1299 = vmatpush.bf16.msra.mxu0 %v2095_v1  ;;  %v2102_v6 = vld [vmem:[%s2280_s26 + $0x70] sm:$0xff]  ;;  %v2101_v10 = vld [vmem:[%s2280_s26 + $0x68] sm:$0xff] }
  0x17   : > { %v2111_v3 = vld [vmem:[%s2280_s26 + $0xb8] sm:$0xff]  ;;  %1312 = vmatpush.bf16.msra.mxu1 %v2103_v2  ;;  %v2110_v7 = vld [vmem:[%s2280_s26 + $0xb0] sm:$0xff]  ;;  %v2109_v11 = vld [vmem:[%s2280_s26 + $0xa8] sm:$0xff] }
  0x18   : > { %v2119_v4 = vld [vmem:[%s2280_s26 + $0xf8] sm:$0xff]  ;;  %1325 = vmatpush.bf16.msra.mxu2 %v2111_v3  ;;  %v2118_v8 = vld [vmem:[%s2280_s26 + $0xf0] sm:$0xff]  ;;  %v2117_v12 = vld [vmem:[%s2280_s26 + $0xe8] sm:$0xff] }
  0x19   : > { %1338 = vmatpush.bf16.msra.mxu3 %v2119_v4  ;;  %v2092_v13 = vld [vmem:[%s2280_s26 + $0x20] sm:$0xff]  ;;  %v2091_v17 = vld [vmem:[%s2280_s26 + $0x18] sm:$0xff]  ;;  %v2090_v22 = vld [vmem:[%s2280_s26 + $0x10] sm:$0xff] }
  0x1a   : > { %1300 = vmatpush.bf16.msra.mxu0 %v2094_v5  ;;  %v2100_v14 = vld [vmem:[%s2280_s26 + $0x60] sm:$0xff]  ;;  %v2099_v18 = vld [vmem:[%s2280_s26 + $0x58] sm:$0xff]  ;;  %v2098_v23 = vld [vmem:[%s2280_s26 + $0x50] sm:$0xff] }
  0x1b   : > { %1313 = vmatpush.bf16.msra.mxu1 %v2102_v6  ;;  %v2108_v15 = vld [vmem:[%s2280_s26 + $0xa0] sm:$0xff]  ;;  %v2107_v19 = vld [vmem:[%s2280_s26 + $0x98] sm:$0xff]  ;;  %v2106_v24 = vld [vmem:[%s2280_s26 + $0x90] sm:$0xff] }
  0x1c   : > { %1326 = vmatpush.bf16.msra.mxu2 %v2110_v7  ;;  %v2116_v16 = vld [vmem:[%s2280_s26 + $0xe0] sm:$0xff]  ;;  %v2115_v20 = vld [vmem:[%s2280_s26 + $0xd8] sm:$0xff]  ;;  %v2114_v25 = vld [vmem:[%s2280_s26 + $0xd0] sm:$0xff] }
  0x1d   : > { %1339 = vmatpush.bf16.msra.mxu3 %v2118_v8  ;;  %v214_v21 = vld [vmem:[%s2275_s22] sm:$0xff]  ;;  %v2089_v26 = vld [vmem:[%s2280_s26 + $0x8] sm:$0xff]  ;;  %v216_v32 = vld [vmem:[%s2275_s22 + $0x10] sm:$0xff] }
  0x1e   : > { %1301 = vmatpush.bf16.msra.mxu0 %v2093_v9  ;;  %222 = vst [vmem:[#allocation1] ss:$4 sm:$0xff] %v214_v21  ;;  %v2097_v27 = vld [vmem:[%s2280_s26 + $0x48] sm:$0xff]  ;;  %v2088_v30 = vld [vmem:[%s2280_s26] sm:$0xff]  ;;  %v2127_v39 = vld [vmem:[%s2280_s26 + $0x138] sm:$0xff] }
  0x1f   : > { %1314 = vmatpush.bf16.msra.mxu1 %v2101_v10  ;;  %v2105_v28 = vld [vmem:[%s2280_s26 + $0x88] sm:$0xff]  ;;  %v2096_v31 = vld [vmem:[%s2280_s26 + $0x40] sm:$0xff]  ;;  %v2135_v40 = vld [vmem:[%s2280_s26 + $0x178] sm:$0xff] }
  0x20   : > { %1327 = vmatpush.bf16.msra.mxu2 %v2109_v11  ;;  %v2113_v29 = vld [vmem:[%s2280_s26 + $0xc8] sm:$0xff]  ;;  %v2104_v37 = vld [vmem:[%s2280_s26 + $0x80] sm:$0xff]  ;;  %v2143_v41 = vld [vmem:[%s2280_s26 + $0x1b8] sm:$0xff] }
  0x21   : > { %1340 = vmatpush.bf16.msra.mxu3 %v2117_v12  ;;  %v2112_v38 = vld [vmem:[%s2280_s26 + $0xc0] sm:$0xff]  ;;  %v2151_v42 = vld [vmem:[%s2280_s26 + $0x1f8] sm:$0xff]  ;;  %v215_v43 = vld [vmem:[%s2275_s22 + $0x8] sm:$0xff] }
  0x22   : > { %1302 = vmatpush.bf16.msra.mxu0 %v2092_v13  ;;  %224 = vst [vmem:[#allocation1 + $0x20] ss:$4 sm:$0xff] %v215_v43  ;;  %v2126_v48 = vld [vmem:[%s2280_s26 + $0x130] sm:$0xff]  ;;  %v2125_v52 = vld [vmem:[%s2280_s26 + $0x128] sm:$0xff]  ;;  %v217_v59 = vld [vmem:[%s2275_s22 + $0x18] sm:$0xff] }
  0x23   : > { %1315 = vmatpush.bf16.msra.mxu1 %v2100_v14  ;;  %v2134_v49 = vld [vmem:[%s2280_s26 + $0x170] sm:$0xff]  ;;  %v2133_v53 = vld [vmem:[%s2280_s26 + $0x168] sm:$0xff]  ;;  %v2124_v61 = vld [vmem:[%s2280_s26 + $0x120] sm:$0xff] }
  0x24   : > { %1328 = vmatpush.bf16.msra.mxu2 %v2108_v15  ;;  %v2142_v50 = vld [vmem:[%s2280_s26 + $0x1b0] sm:$0xff]  ;;  %v2141_v54 = vld [vmem:[%s2280_s26 + $0x1a8] sm:$0xff]  ;;  %v2132_v62 = vld [vmem:[%s2280_s26 + $0x160] sm:$0xff] }
  0x25   : > { %1341 = vmatpush.bf16.msra.mxu3 %v2116_v16  ;;  %v227_v33 = vld.sshfl [vmem:[#allocation1 + $0x10] sm:$0xff pattern:$0x73625140]  ;;  %v225_v34 = vld.sshfl [vmem:[#allocation1] sm:$0xff pattern:$0x73625140] }
  0x26   : > { %1303 = vmatpush.bf16.msra.mxu0 %v2091_v17  ;;  %v228_v35 = vld.sshfl [vmem:[#allocation1 + $0x18] sm:$0xff pattern:$0x73625140]  ;;  %v226_v36 = vld.sshfl [vmem:[#allocation1 + $0x8] sm:$0xff pattern:$0x73625140]  ;;  %v261_v44 = vpack.c.bf16 %v227_v33, %v227_v33  ;;  %v259_v45 = vpack.c.bf16 %v225_v34, %v225_v34 }
  0x27   : > { %1316 = vmatpush.bf16.msra.mxu1 %v2099_v18  ;;  %233 = vst [vmem:[#allocation1] ss:$4 sm:$0xff] %v216_v32  ;;  %v262_v46 = vpack.c.bf16 %v228_v35, %v228_v35  ;;  %v260_v47 = vpack.c.bf16 %v226_v36, %v226_v36  ;;  %v2150_v51 = vld [vmem:[%s2280_s26 + $0x1f0] sm:$0xff]  ;;  %v2149_v55 = vld [vmem:[%s2280_s26 + $0x1e8] sm:$0xff]  ;;  %v2140_v63 = vld [vmem:[%s2280_s26 + $0x1a0] sm:$0xff] }
  0x28   : > { %1329 = vmatpush.bf16.msra.mxu2 %v2107_v19  ;;  %v2148_v0 = vld [vmem:[%s2280_s26 + $0x1e0] sm:$0xff]  ;;  %v2123_v1 = vld [vmem:[%s2280_s26 + $0x118] sm:$0xff]  ;;  %v2122_v5 = vld [vmem:[%s2280_s26 + $0x110] sm:$0xff] }
  0x29   : > { %1342 = vmatpush.bf16.msra.mxu3 %v2115_v20  ;;  %v2330_v56 = vld.sshfl [vmem:[#allocation1 + $0x30] sm:$0xff pattern:$0x73625140]  ;;  %v2332_v57 = vld.sshfl [vmem:[#allocation1 + $0x20] sm:$0xff pattern:$0x73625140] }
  0x2a   : > { %1304 = vmatpush.bf16.msra.mxu0 %v2090_v22  ;;  %v2334_v58 = vld.sshfl [vmem:[#allocation1 + $0x38] sm:$0xff pattern:$0x73625140]  ;;  %v2337_v60 = vld.sshfl [vmem:[#allocation1 + $0x28] sm:$0xff pattern:$0x73625140]  ;;  %v265_v21 = vpack.c.bf16 %v2330_v56, %v2330_v56  ;;  %v263_v22 = vpack.c.bf16 %v2332_v57, %v2332_v57 }
  0x2b   : > { %1317 = vmatpush.bf16.msra.mxu1 %v2098_v23  ;;  %234 = vst [vmem:[#allocation1 + $0x20] ss:$4 sm:$0xff] %v217_v59  ;;  %v2131_v2 = vld [vmem:[%s2280_s26 + $0x158] sm:$0xff]  ;;  %v2130_v6 = vld [vmem:[%s2280_s26 + $0x150] sm:$0xff]  ;;  %v2121_v9 = vld [vmem:[%s2280_s26 + $0x108] sm:$0xff]  ;;  %v266_v23 = vpack.c.bf16 %v2334_v58, %v2334_v58 }
  0x2c   : > { %1330 = vmatpush.bf16.msra.mxu2 %v2106_v24  ;;  %v2139_v3 = vld [vmem:[%s2280_s26 + $0x198] sm:$0xff]  ;;  %v2138_v7 = vld [vmem:[%s2280_s26 + $0x190] sm:$0xff]  ;;  %v2129_v10 = vld [vmem:[%s2280_s26 + $0x148] sm:$0xff]  ;;  %v264_v24 = vpack.c.bf16 %v2337_v60, %v2337_v60 }
  0x2d   : > { %1343 = vmatpush.bf16.msra.mxu3 %v2114_v25  ;;  %v2147_v4 = vld [vmem:[%s2280_s26 + $0x1d8] sm:$0xff]  ;;  %v2146_v8 = vld [vmem:[%s2280_s26 + $0x1d0] sm:$0xff]  ;;  %v2137_v11 = vld [vmem:[%s2280_s26 + $0x188] sm:$0xff] }
  0x2e   : > { %1305 = vmatpush.bf16.msra.mxu0 %v2089_v26  ;;  %v2145_v12 = vld [vmem:[%s2280_s26 + $0x1c8] sm:$0xff]  ;;  %v2120_v13 = vld [vmem:[%s2280_s26 + $0x100] sm:$0xff]  ;;  %v2159_v17 = vld [vmem:[%s2280_s26 + $0x238] sm:$0xff] }
  0x2f   : > { %1318 = vmatpush.bf16.msra.mxu1 %v2097_v27  ;;  %v2128_v14 = vld [vmem:[%s2280_s26 + $0x140] sm:$0xff]  ;;  %v2167_v18 = vld [vmem:[%s2280_s26 + $0x278] sm:$0xff]  ;;  %v2158_v25 = vld [vmem:[%s2280_s26 + $0x230] sm:$0xff] }
  0x30   : > { %1331 = vmatpush.bf16.msra.mxu2 %v2105_v28  ;;  %v2136_v15 = vld [vmem:[%s2280_s26 + $0x180] sm:$0xff]  ;;  %v2175_v19 = vld [vmem:[%s2280_s26 + $0x2b8] sm:$0xff]  ;;  %v2166_v26 = vld [vmem:[%s2280_s26 + $0x270] sm:$0xff] }
  0x31   : > { %1344 = vmatpush.bf16.msra.mxu3 %v2113_v29  ;;  %v2144_v16 = vld [vmem:[%s2280_s26 + $0x1c0] sm:$0xff]  ;;  %v2183_v20 = vld [vmem:[%s2280_s26 + $0x2f8] sm:$0xff]  ;;  %v2174_v27 = vld [vmem:[%s2280_s26 + $0x2b0] sm:$0xff] }
  0x32   : > { %1306 = vmatpush.bf16.msra.mxu0 %v2088_v30  ;;  %v2182_v28 = vld [vmem:[%s2280_s26 + $0x2f0] sm:$0xff]  ;;  %v2157_v29 = vld [vmem:[%s2280_s26 + $0x228] sm:$0xff]  ;;  %v2156_v33 = vld [vmem:[%s2280_s26 + $0x220] sm:$0xff] }
  0x33   : > { %1319 = vmatpush.bf16.msra.mxu1 %v2096_v31  ;;  %v2165_v30 = vld [vmem:[%s2280_s26 + $0x268] sm:$0xff]  ;;  %v2164_v34 = vld [vmem:[%s2280_s26 + $0x260] sm:$0xff]  ;;  %v2170_v43 = vld [vmem:[%s2280_s26 + $0x290] sm:$0xff] }
  0x34   : > { %1332 = vmatpush.bf16.msra.mxu2 %v2104_v37  ;;  %v2173_v31 = vld [vmem:[%s2280_s26 + $0x2a8] sm:$0xff]  ;;  %v2172_v35 = vld [vmem:[%s2280_s26 + $0x2a0] sm:$0xff]  ;;  %v2155_v37 = vld [vmem:[%s2280_s26 + $0x218] sm:$0xff] }
  0x35   : > { %1345 = vmatpush.bf16.msra.mxu3 %v2112_v38  ;;  %1307 = vmatmul.bf16.vlgmr.msra.gmra.mxu0 %v259_v45  ;;  %v2181_v32 = vld [vmem:[%s2280_s26 + $0x2e8] sm:$0xff]  ;;  %v2180_v36 = vld [vmem:[%s2280_s26 + $0x2e0] sm:$0xff]  ;;  %v2163_v38 = vld [vmem:[%s2280_s26 + $0x258] sm:$0xff] }
  0x36   : > { %1351 = vmatpush.bf16.msrb.mxu0 %v2127_v39  ;;  %1320 = vmatmul.bf16.vlgmr.msra.gmra.mxu1 %v260_v47  ;;  %v2171_v39 = vld [vmem:[%s2280_s26 + $0x298] sm:$0xff]  ;;  %v2153_v45 = vld [vmem:[%s2280_s26 + $0x208] sm:$0xff]  ;;  %v237_v56 = vld.sshfl [vmem:[#allocation1 + $0x10] sm:$0xff pattern:$0x73625140] }
  0x37   : > { %1364 = vmatpush.bf16.msrb.mxu1 %v2135_v40  ;;  %1333 = vmatmul.bf16.vlgmr.msra.gmra.mxu2 %v261_v44  ;;  %v2179_v40 = vld [vmem:[%s2280_s26 + $0x2d8] sm:$0xff]  ;;  %v2178_v44 = vld [vmem:[%s2280_s26 + $0x2d0] sm:$0xff]  ;;  %v2169_v47 = vld [vmem:[%s2280_s26 + $0x288] sm:$0xff] }
  0x38   : > { %1377 = vmatpush.bf16.msrb.mxu2 %v2143_v41  ;;  %1346 = vmatmul.bf16.vlgmr.msra.gmra.mxu3 %v262_v46  ;;  %v2154_v41 = vld [vmem:[%s2280_s26 + $0x210] sm:$0xff]  ;;  %v2161_v46 = vld [vmem:[%s2280_s26 + $0x248] sm:$0xff]  ;;  %v238_v58 = vld.sshfl [vmem:[#allocation1 + $0x18] sm:$0xff pattern:$0x73625140] }
  0x39   : > { %1390 = vmatpush.bf16.msrb.mxu3 %v2151_v42  ;;  %v2162_v42 = vld [vmem:[%s2280_s26 + $0x250] sm:$0xff]  ;;  %v236_v57 = vld.sshfl [vmem:[#allocation1 + $0x8] sm:$0xff pattern:$0x73625140]  ;;  %v2207_v59 = vld [vmem:[%s2280_s26 + $0x3b8] sm:$0xff] }
  0x3a   : > { %1352 = vmatpush.bf16.msrb.mxu0 %v2126_v48  ;;  %v2177_v48 = vld [vmem:[%s2280_s26 + $0x2c8] sm:$0xff]  ;;  %v2215_v60 = vld [vmem:[%s2280_s26 + $0x3f8] sm:$0xff] }
  0x3b   : > { %1365 = vmatpush.bf16.msrb.mxu1 %v2134_v49  ;;  %v2152_v49 = vld [vmem:[%s2280_s26 + $0x200] sm:$0xff] }
  0x3c   : > { %1378 = vmatpush.bf16.msrb.mxu2 %v2142_v50  ;;  %v2160_v50 = vld [vmem:[%s2280_s26 + $0x240] sm:$0xff] }
  0x3d   : > { %1391 = vmatpush.bf16.msrb.mxu3 %v2150_v51  ;;  %v2168_v51 = vld [vmem:[%s2280_s26 + $0x280] sm:$0xff] }
  0x3e   : > { %1353 = vmatpush.bf16.msrb.mxu0 %v2125_v52  ;;  %v2176_v52 = vld [vmem:[%s2280_s26 + $0x2c0] sm:$0xff] }
  0x3f   : > { %1366 = vmatpush.bf16.msrb.mxu1 %v2133_v53  ;;  %v2191_v53 = vld [vmem:[%s2280_s26 + $0x338] sm:$0xff] }
  0x40   : > { %1379 = vmatpush.bf16.msrb.mxu2 %v2141_v54  ;;  %v2199_v54 = vld [vmem:[%s2280_s26 + $0x378] sm:$0xff] }
  0x41   : > { %1392 = vmatpush.bf16.msrb.mxu3 %v2149_v55  ;;  %v235_v55 = vld.sshfl [vmem:[#allocation1] sm:$0xff pattern:$0x73625140] }
  0x42   : > { %1354 = vmatpush.bf16.msrb.mxu0 %v2124_v61  ;;  %v267_v61 = vpack.c.bf16 %v235_v55, %v235_v55 }
  0x43   : > { %1367 = vmatpush.bf16.msrb.mxu1 %v2132_v62  ;;  %v269_v62 = vpack.c.bf16 %v237_v56, %v237_v56 }
  0x44   : > { %1380 = vmatpush.bf16.msrb.mxu2 %v2140_v63  ;;  %v268_v63 = vpack.c.bf16 %v236_v57, %v236_v57 }
  0x45   : > { %1393 = vmatpush.bf16.msrb.mxu3 %v2148_v0  ;;  %v270_v0 = vpack.c.bf16 %v238_v58, %v238_v58 }
  0x46   : > { %1355 = vmatpush.bf16.msrb.mxu0 %v2123_v1  ;;  %v2190_v1 = vld [vmem:[%s2280_s26 + $0x330] sm:$0xff] }
  0x47   : > { %1368 = vmatpush.bf16.msrb.mxu1 %v2131_v2  ;;  %v2198_v2 = vld [vmem:[%s2280_s26 + $0x370] sm:$0xff] }
  0x48   : > { %1381 = vmatpush.bf16.msrb.mxu2 %v2139_v3  ;;  %v2206_v3 = vld [vmem:[%s2280_s26 + $0x3b0] sm:$0xff] }
  0x49   : > { %1394 = vmatpush.bf16.msrb.mxu3 %v2147_v4  ;;  %v2214_v4 = vld [vmem:[%s2280_s26 + $0x3f0] sm:$0xff] }
  0x4a   : > { %1356 = vmatpush.bf16.msrb.mxu0 %v2122_v5  ;;  %v2189_v5 = vld [vmem:[%s2280_s26 + $0x328] sm:$0xff] }
  0x4b   : > { %1369 = vmatpush.bf16.msrb.mxu1 %v2130_v6  ;;  %v2197_v6 = vld [vmem:[%s2280_s26 + $0x368] sm:$0xff] }
  0x4c   : > { %1382 = vmatpush.bf16.msrb.mxu2 %v2138_v7  ;;  %v2205_v7 = vld [vmem:[%s2280_s26 + $0x3a8] sm:$0xff] }
  0x4d   : > { %1395 = vmatpush.bf16.msrb.mxu3 %v2146_v8  ;;  %v2213_v8 = vld [vmem:[%s2280_s26 + $0x3e8] sm:$0xff] }
  0x4e   : > { %1357 = vmatpush.bf16.msrb.mxu0 %v2121_v9  ;;  %v2188_v9 = vld [vmem:[%s2280_s26 + $0x320] sm:$0xff] }
  0x4f   : > { %1370 = vmatpush.bf16.msrb.mxu1 %v2129_v10  ;;  %v2196_v10 = vld [vmem:[%s2280_s26 + $0x360] sm:$0xff] }
  0x50   : > { %1383 = vmatpush.bf16.msrb.mxu2 %v2137_v11  ;;  %v2204_v11 = vld [vmem:[%s2280_s26 + $0x3a0] sm:$0xff] }
  0x51   : > { %1396 = vmatpush.bf16.msrb.mxu3 %v2145_v12  ;;  %v2212_v12 = vld [vmem:[%s2280_s26 + $0x3e0] sm:$0xff] }
  0x52   : > { %1358 = vmatpush.bf16.msrb.mxu0 %v2120_v13  ;;  %v2187_v13 = vld [vmem:[%s2280_s26 + $0x318] sm:$0xff] }
  0x53   : > { %1371 = vmatpush.bf16.msrb.mxu1 %v2128_v14  ;;  %v2195_v14 = vld [vmem:[%s2280_s26 + $0x358] sm:$0xff] }
  0x54   : > { %1384 = vmatpush.bf16.msrb.mxu2 %v2136_v15  ;;  %v2203_v15 = vld [vmem:[%s2280_s26 + $0x398] sm:$0xff] }
  0x55   : > { %1397 = vmatpush.bf16.msrb.mxu3 %v2144_v16  ;;  %1359 = vmatmul.bf16.vlgmr.msrb.gmra.mxu0 %v263_v22  ;;  %v2211_v16 = vld [vmem:[%s2280_s26 + $0x3d8] sm:$0xff]  ;;  %v2193_v22 = vld [vmem:[%s2280_s26 + $0x348] sm:$0xff] }
  0x56   : > { %1403 = vmatpush.bf16.msra.mxu0 %v2159_v17  ;;  %1372 = vmatmul.bf16.vlgmr.msrb.gmra.mxu1 %v264_v24  ;;  %v2186_v17 = vld [vmem:[%s2280_s26 + $0x310] sm:$0xff]  ;;  %v2209_v24 = vld [vmem:[%s2280_s26 + $0x3c8] sm:$0xff] }
  0x57   : > { %1416 = vmatpush.bf16.msra.mxu1 %v2167_v18  ;;  %1385 = vmatmul.bf16.vlgmr.msrb.gmra.mxu2 %v265_v21  ;;  %v2194_v18 = vld [vmem:[%s2280_s26 + $0x350] sm:$0xff]  ;;  %v2185_v21 = vld [vmem:[%s2280_s26 + $0x308] sm:$0xff] }
  0x58   : > { %1429 = vmatpush.bf16.msra.mxu2 %v2175_v19  ;;  %1398 = vmatmul.bf16.vlgmr.msrb.gmra.mxu3 %v266_v23  ;;  %v2202_v19 = vld [vmem:[%s2280_s26 + $0x390] sm:$0xff]  ;;  %v2201_v23 = vld [vmem:[%s2280_s26 + $0x388] sm:$0xff] }
  0x59   : > { %1442 = vmatpush.bf16.msra.mxu3 %v2183_v20  ;;  %v2210_v20 = vld [vmem:[%s2280_s26 + $0x3d0] sm:$0xff] }
  0x5a   : > { %1404 = vmatpush.bf16.msra.mxu0 %v2158_v25  ;;  %v2184_v25 = vld [vmem:[%s2280_s26 + $0x300] sm:$0xff] }
  0x5b   : > { %1417 = vmatpush.bf16.msra.mxu1 %v2166_v26  ;;  %v2192_v26 = vld [vmem:[%s2280_s26 + $0x340] sm:$0xff] }
  0x5c   : > { %1430 = vmatpush.bf16.msra.mxu2 %v2174_v27  ;;  %v2200_v27 = vld [vmem:[%s2280_s26 + $0x380] sm:$0xff] }
  0x5d   : > { %1443 = vmatpush.bf16.msra.mxu3 %v2182_v28  ;;  %v2208_v28 = vld [vmem:[%s2280_s26 + $0x3c0] sm:$0xff] }
  0x5e   : > { %1405 = vmatpush.bf16.msra.mxu0 %v2157_v29  ;;  %v239_v29 = vld.sshfl [vmem:[#allocation1 + $0x20] sm:$0xff pattern:$0x73625140] }
  0x5f   : > { %1418 = vmatpush.bf16.msra.mxu1 %v2165_v30  ;;  %v240_v30 = vld.sshfl [vmem:[#allocation1 + $0x28] sm:$0xff pattern:$0x73625140] }
  0x60   : > { %1431 = vmatpush.bf16.msra.mxu2 %v2173_v31  ;;  %v241_v31 = vld.sshfl [vmem:[#allocation1 + $0x30] sm:$0xff pattern:$0x73625140] }
  0x61   : > { %1444 = vmatpush.bf16.msra.mxu3 %v2181_v32  ;;  %v242_v32 = vld.sshfl [vmem:[#allocation1 + $0x38] sm:$0xff pattern:$0x73625140] }
  0x62   : > { %1406 = vmatpush.bf16.msra.mxu0 %v2156_v33  ;;  %v271_v33 = vpack.c.bf16 %v239_v29, %v239_v29 }
  0x63   : > { %1419 = vmatpush.bf16.msra.mxu1 %v2164_v34  ;;  %v272_v34 = vpack.c.bf16 %v240_v30, %v240_v30 }
  0x64   : > { %1432 = vmatpush.bf16.msra.mxu2 %v2172_v35  ;;  %v273_v35 = vpack.c.bf16 %v241_v31, %v241_v31 }
  0x65   : > { %1445 = vmatpush.bf16.msra.mxu3 %v2180_v36  ;;  %v274_v36 = vpack.c.bf16 %v242_v32, %v242_v32 }
  0x66   : > { %1407 = vmatpush.bf16.msra.mxu0 %v2155_v37 }
  0x67   : > { %1420 = vmatpush.bf16.msra.mxu1 %v2163_v38 }
  0x68   : > { %1433 = vmatpush.bf16.msra.mxu2 %v2171_v39 }
  0x69   : > { %1446 = vmatpush.bf16.msra.mxu3 %v2179_v40 }
  0x6a   : > { %1408 = vmatpush.bf16.msra.mxu0 %v2154_v41 }
  0x6b   : > { %1421 = vmatpush.bf16.msra.mxu1 %v2162_v42 }
  0x6c   : > { %1434 = vmatpush.bf16.msra.mxu2 %v2170_v43 }
  0x6d   : > { %1447 = vmatpush.bf16.msra.mxu3 %v2178_v44 }
  0x6e   : > { %1409 = vmatpush.bf16.msra.mxu0 %v2153_v45 }
  0x6f   : > { %1422 = vmatpush.bf16.msra.mxu1 %v2161_v46 }
  0x70   : > { %1435 = vmatpush.bf16.msra.mxu2 %v2169_v47 }
  0x71   : > { %1448 = vmatpush.bf16.msra.mxu3 %v2177_v48 }
  0x72   : > { %1410 = vmatpush.bf16.msra.mxu0 %v2152_v49 }
  0x73   : > { %1423 = vmatpush.bf16.msra.mxu1 %v2160_v50 }
  0x74   : > { %1436 = vmatpush.bf16.msra.mxu2 %v2168_v51 }
  0x75   : > { %1449 = vmatpush.bf16.msra.mxu3 %v2176_v52  ;;  %1411 = vmatmul.bf16.vlgmr.msra.gmra.mxu0 %v267_v61 }
  0x76   : > { %1455 = vmatpush.bf16.msrb.mxu0 %v2191_v53  ;;  %1424 = vmatmul.bf16.vlgmr.msra.gmra.mxu1 %v268_v63 }
  0x77   : > { %1468 = vmatpush.bf16.msrb.mxu1 %v2199_v54  ;;  %1437 = vmatmul.bf16.vlgmr.msra.gmra.mxu2 %v269_v62 }
  0x78   : > { %1481 = vmatpush.bf16.msrb.mxu2 %v2207_v59  ;;  %1450 = vmatmul.bf16.vlgmr.msra.gmra.mxu3 %v270_v0 }
  0x79   : > { %1494 = vmatpush.bf16.msrb.mxu3 %v2215_v60 }
  0x7a   : > { %1456 = vmatpush.bf16.msrb.mxu0 %v2190_v1 }
  0x7b   : > { %1469 = vmatpush.bf16.msrb.mxu1 %v2198_v2 }
  0x7c   : > { %1482 = vmatpush.bf16.msrb.mxu2 %v2206_v3 }
  0x7d   : > { %1495 = vmatpush.bf16.msrb.mxu3 %v2214_v4 }
  0x7e   : > { %1457 = vmatpush.bf16.msrb.mxu0 %v2189_v5 }
  0x7f   : > { %1470 = vmatpush.bf16.msrb.mxu1 %v2197_v6 }
  0x80   : > { %1483 = vmatpush.bf16.msrb.mxu2 %v2205_v7 }
  0x81   : > { %1496 = vmatpush.bf16.msrb.mxu3 %v2213_v8 }
  0x82   : > { %1458 = vmatpush.bf16.msrb.mxu0 %v2188_v9 }
  0x83   : > { %1471 = vmatpush.bf16.msrb.mxu1 %v2196_v10 }
  0x84   : > { %1484 = vmatpush.bf16.msrb.mxu2 %v2204_v11 }
  0x85   : > { %1497 = vmatpush.bf16.msrb.mxu3 %v2212_v12 }
  0x86   : > { %1459 = vmatpush.bf16.msrb.mxu0 %v2187_v13 }
  0x87   : > { %1472 = vmatpush.bf16.msrb.mxu1 %v2195_v14 }
  0x88   : > { %1485 = vmatpush.bf16.msrb.mxu2 %v2203_v15 }
  0x89   : > { %1498 = vmatpush.bf16.msrb.mxu3 %v2211_v16 }
  0x8a   : > { %1460 = vmatpush.bf16.msrb.mxu0 %v2186_v17  ;;  %v213_v17 = vld [vmem:[#allocation2] sm:$0x3] }
  0x8b   : > { %1473 = vmatpush.bf16.msrb.mxu1 %v2194_v18 }
  0x8c   : > { %1486 = vmatpush.bf16.msrb.mxu2 %v2202_v19 }
  0x8d   : > { %1499 = vmatpush.bf16.msrb.mxu3 %v2210_v20 }
  0x8e   : > { %1461 = vmatpush.bf16.msrb.mxu0 %v2185_v21 }
  0x8f   : > { %1474 = vmatpush.bf16.msrb.mxu1 %v2193_v22 }
  0x90   : > { %1487 = vmatpush.bf16.msrb.mxu2 %v2201_v23 }
  0x91   : > { %1500 = vmatpush.bf16.msrb.mxu3 %v2209_v24 }
  0x92   : > { %1462 = vmatpush.bf16.msrb.mxu0 %v2184_v25 }
  0x93   : > { %1475 = vmatpush.bf16.msrb.mxu1 %v2192_v26 }
  0x94   : > { %1488 = vmatpush.bf16.msrb.mxu2 %v2200_v27 }
  0x95   : > { %1501 = vmatpush.bf16.msrb.mxu3 %v2208_v28  ;;  %1463 = vmatmul.bf16.vlgmr.msrb.gmra.mxu0 %v271_v33 }
  0x96   : > { %1476 = vmatmul.bf16.vlgmr.msrb.gmra.mxu1 %v272_v34 }
  0x97   : > { %1489 = vmatmul.bf16.vlgmr.msrb.gmra.mxu2 %v273_v35 }
  0x98   : > { %1502 = vmatmul.bf16.vlgmr.msrb.gmra.mxu3 %v274_v36 }
  0xb2   : > { %v1308_v37 = vpop.f32.mrf.mxu0 }
  0xb3   : > { %v1321_v38 = vpop.f32.mrf.mxu1 }
  0xb4   : > { %v1322_v39 = vadd.f32 %v1321_v38, %v1308_v37 }
  0xba   : > { %v1334_v40 = vpop.f32.mrf.mxu2  ;;  %v1310_v43 = vpop.f32.mrf.mxu0 }
  0xbb   : > { %v1335_v41 = vadd.f32 %v1334_v40, %v1322_v39  ;;  %v1347_v42 = vpop.f32.mrf.mxu3  ;;  %v1323_v45 = vpop.f32.mrf.mxu1 }
  0xbd   : > { %v1348_v44 = vadd.f32 %v1347_v42, %v1335_v41 }
  0xc2   : > { %v1336_v46 = vpop.f32.mrf.mxu2 }
  0xc3   : > { %v1349_v47 = vpop.f32.mrf.mxu3 }
  0xd2   : > { %v1360_v48 = vpop.f32.mrf.mxu0 }
  0xd3   : > { %v1373_v49 = vpop.f32.mrf.mxu1  ;;  %v1361_v58 = vadd.f32 %v1360_v48, %v1348_v44 }
  0xd5   : > { %v1374_v62 = vadd.f32 %v1373_v49, %v1361_v58 }
  0xda   : > { %v1386_v50 = vpop.f32.mrf.mxu2  ;;  %v1362_v52 = vpop.f32.mrf.mxu0 }
  0xdb   : > { %v1399_v51 = vpop.f32.mrf.mxu3  ;;  %v1375_v53 = vpop.f32.mrf.mxu1  ;;  %v1387_v0 = vadd.f32 %v1386_v50, %v1374_v62 }
  0xdd   : > { %v1400_v3 = vadd.f32 %v1399_v51, %v1387_v0 }
  0xe2   : > { %v1388_v54 = vpop.f32.mrf.mxu2 }
  0xe3   : > { %v1401_v55 = vpop.f32.mrf.mxu3 }
  0xf2   : > { %v1412_v56 = vpop.f32.mrf.mxu0 }
  0xf3   : > { %v1425_v57 = vpop.f32.mrf.mxu1  ;;  %v1413_v4 = vadd.f32 %v1412_v56, %v1400_v3 }
  0xf5   : > { %v1426_v5 = vadd.f32 %v1425_v57, %v1413_v4 }
  0xfa   : > { %v1438_v59 = vpop.f32.mrf.mxu2  ;;  %v1414_v61 = vpop.f32.mrf.mxu0 }
  0xfb   : > { %v1451_v60 = vpop.f32.mrf.mxu3  ;;  %v1427_v63 = vpop.f32.mrf.mxu1  ;;  %v1439_v6 = vadd.f32 %v1438_v59, %v1426_v5 }
  0xfd   : > { %v1452_v7 = vadd.f32 %v1451_v60, %v1439_v6 }
 0x102   : > { %v1440_v1 = vpop.f32.mrf.mxu2 }
 0x103   : > { %v1453_v2 = vpop.f32.mrf.mxu3 }
 0x112   : > { %v1464_v8 = vpop.f32.mrf.mxu0 }
 0x113   : > { %v1477_v9 = vpop.f32.mrf.mxu1  ;;  %v1465_v10 = vadd.f32 %v1464_v8, %v1452_v7 }
 0x115   : > { %v1478_v11 = vadd.f32 %v1477_v9, %v1465_v10 }
 0x11a   : > { %v1490_v12 = vpop.f32.mrf.mxu2  ;;  %v1466_v15 = vpop.f32.mrf.mxu0 }
 0x11b   : > { %v1503_v13 = vpop.f32.mrf.mxu3  ;;  %v1491_v14 = vadd.f32 %v1490_v12, %v1478_v11  ;;  %v1479_v16 = vpop.f32.mrf.mxu1 }
 0x11d   : > { %v1504_v18 = vadd.f32 %v1503_v13, %v1491_v14 }
 0x11f   : > { %v1507_v19 = vadd.f32 %v1504_v18, %v213_v17  ;;  %1513 = sbr.rel (%p2085_p6) target bundleno = 301 (0x12d), region = 44 }
 0x121   : > { %1509 = vst.msk [vmem:[#allocation2] sm:$0x3] %vm1508_vm1, %v1507_v19 }
 0x122   : > { %v1492_v20 = vpop.f32.mrf.mxu2 }
 0x123   : > { %v1505_v21 = vpop.f32.mrf.mxu3 }
 0x124   : > { %v2225_v23 = vld [vmem:[%s2446_s2] ss:$0 sm:$0xff] }
 0x125   : > { %v1520_v24 = vld [vmem:[%s2447_s3] sm:$0x3] }
 0x126   : > { %vm1521_vm2 = vcmp.eq.f32.partialorder %v1520_v24, 0.0 }
 0x128   : > { %v1514_v22 = vld [vmem:[#allocation2] sm:$0x3] }
 0x129   : > { %v1519_v25 = vadd.f32 %v2225_v23, %v1514_v22 }
 0x12b   : > { %v1522_v26 = vsel %vm1521_vm2, -1e+30, %v1519_v25 }
 0x12c   : > { %1523 = vst.msk [vmem:[%s2448_s4] sm:$0x3] %vm1508_vm1, %v1522_v26 }
 0x12d PF: > { %s14_s15 = sadd.s32 1, %s2232_s15  }
 0x12e   : > { %p11_p7 = scmp.ge.s32.totalorder %s14_s15, 10  }
 0x130   :  { %13 = sbr.rel (!%p11_p7) target bundleno = 1 (0x1), region = 74 }

// kernel: convnet_forward.2
= control target key start
LH: loop header
LB: loop body
LE: loop exit
PB: predicated region body
PF: predicated region fallthrough
CT: control target
= control target key end

     0   :  { %12 = vsyncpa [#allocation5], 0  ;;  %s5992_s0 = inlined_call_operand.vmem [shape: f32[2,10,10,4], index: 0, kind: input, shape index: {}]   ;;  %s5993_s1 = inlined_call_operand.hbm [shape: bf16[9,4,64], index: 1, kind: input, shape index: {}]   ;;  %s5994_s2 = inlined_call_operand.hbm [shape: f32[1,64], index: 2, kind: input, shape index: {}]   ;;  %s5995_s3 = inlined_call_operand.hbm [shape: bf16[9,64,128], index: 3, kind: input, shape index: {}]   ;;  %s5996_s4 = inlined_call_operand.hbm [shape: f32[1,128], index: 4, kind: input, shape index: {}]   ;;  %s5997_s5 = inlined_call_operand.hbm [shape: bf16[9,128,256], index: 5, kind: input, shape index: {}]   ;;  %s5998_s6 = inlined_call_operand.hbm [shape: f32[1,256], index: 6, kind: input, shape index: {}]   ;;  %s5999_s7 = inlined_call_operand.vmem [shape: f32[128,256], index: 7, kind: output, shape index: {}]  }
   0x1   :  { %13 = vsyncpa [#allocation7], 0 }
   0x2   :  { %14 = vsyncpa [#allocation10], 0 }
   0x3   :  { %15 = vsyncpa [#allocation13], 0  ;;  %s5056_s24 = smov 0  }
   0x4 LB: > { %s230_s27 = sshll.u32 %s5994_s2, 4  ;;  %s5065_s28 = sadd.s32 4294967295, %s5001_s24   ;;  %s5001_s24 = sphi %s5056_s24, %s21_s24   ;;  %s231_s27 = int_to_ptr.hbm [resolvable:$true] %s230_s27 }
   0x5   : > { %p3677_p0 = scmp.ge.s32.totalorder %s5001_s24, 1  ;;  %p204_p1 = scmp.lt.s32.totalorder %s5001_s24, 3 }
   0x6   : > { %p4763_p2 = scmp.eq.s32.totalorder %s5065_s28, 0  ;;  %s5003_s30 = smov [#allocation6]  }
   0x7   : > { %p5070_p3 = pnand %p3677_p0, %p204_p1  ;;  %s232_s8 = sshll.u32 %s5003_s30, 4  ;;  %s233_s8 = int_to_ptr.vmem [resolvable:$true] %s232_s8 }
   0x8   : > { %s256_s11 = sshll.u32 %s5996_s4, 4  ;;  %s215_s14 = sshll.u32 %s5993_s1, 4  ;;  %s257_s11 = int_to_ptr.hbm [resolvable:$true] %s256_s11  ;;  %s216_s14 = int_to_ptr.hbm [resolvable:$true] %s215_s14 }
   0x9   : > { %p4744_p4 = pneg %p5070_p3  ;;  %s5004_s16 = smov [#allocation9]  }
   0xa   : > { %s258_s17 = sshll.u32 %s5004_s16, 4  ;;  %s5005_s18 = smov [#allocation4]   ;;  %s259_s17 = int_to_ptr.vmem [resolvable:$true] %s258_s17 }
   0xb   : > { %p5084_p5 = pnand %p4763_p2, %p4744_p4  ;;  %s217_s19 = sshll.u32 %s5005_s18, 4  ;;  %s218_s19 = int_to_ptr.vmem [resolvable:$true] %s217_s19 }
   0xc   : > { %s5006_s20 = smov 32   ;;  %s5007_s21 = smov 2  }
   0xd   : > { %4750 = dma.hbm_to_vmem [thread:$0]  (!%p5084_p5), %s231_s27, 16, %s233_s8, [#allocation7]  }
   0xe   : > { %4756 = dma.hbm_to_vmem [thread:$0]  (!%p5084_p5), %s257_s11, 16, %s259_s17, [#allocation10]  }
   0xf   : > { %4747 = dma.hbm_to_vmem [thread:$0]  (!%p5084_p5), %s216_s14, 288, %s218_s19, [#allocation5], %s5006_s20, %s5006_s20, %s5007_s21  }
  0x10   : > { %s241_s25 = sshll.u32 %s5995_s3, 4  ;;  %s5008_s26 = smov [#allocation8]   ;;  %s242_s25 = int_to_ptr.hbm [resolvable:$true] %s241_s25 }
  0x11   : > { %s243_s30 = sshll.u32 %s5008_s26, 4  ;;  %s267_s9 = sshll.u32 %s5997_s5, 4  ;;  %s244_s30 = int_to_ptr.vmem [resolvable:$true] %s243_s30  ;;  %s268_s9 = int_to_ptr.hbm [resolvable:$true] %s267_s9 }
  0x12   : > { %s5009_s10 = smov 64   ;;  %s5010_s11 = smov 4  }
  0x13   : > { %4753 = dma.hbm_to_vmem [thread:$0]  (!%p5084_p5), %s242_s25, 4608, %s244_s30, [#allocation7], %s5009_s10, %s5009_s10, %s5010_s11  }
  0x14   : > { %s5011_s12 = smov [#allocation11]   ;;  %s5012_s14 = smov 128  }
  0x15   : > { %s269_s13 = sshll.u32 %s5011_s12, 4  ;;  %s5013_s16 = smov 8   ;;  %s270_s13 = int_to_ptr.vmem [resolvable:$true] %s269_s13 }
  0x16   : > { %4759 = dma.hbm_to_vmem [thread:$0]  (!%p5084_p5), %s268_s9, 18432, %s270_s13, [#allocation10], %s5012_s14, %s5012_s14, %s5013_s16  }
  0x17   : > { %s282_s19 = sshll.u32 %s5998_s6, 4  ;;  %s5014_s20 = smov [#allocation12]   ;;  %s283_s19 = int_to_ptr.hbm [resolvable:$true] %s282_s19 }
  0x18   : > { %s284_s21 = sshll.u32 %s5014_s20, 4  ;;  %305 = sbr.rel (%p5070_p3) target bundleno = 1030 (0x406), region = 48  ;;  %s285_s21 = int_to_ptr.vmem [resolvable:$true] %s284_s21 }
  0x19   : > { %4762 = dma.hbm_to_vmem [thread:$0]  (!%p5084_p5), %s283_s19, 32, %s285_s21, [#allocation13]  }
  0x1d   : > { %4984 = dma.done.wait (%p4763_p2), [#allocation5], 288  }
  0x1e   : > { %4986 = vsyncadd (%p4763_p2), [#allocation5], 4294967008 }
  0x1f   : > { %4988 = dma.done.wait (%p4763_p2), [#allocation7], 4624  }
  0x20   : > { %4990 = vsyncadd (%p4763_p2), [#allocation7], 4294962672 }
  0x21   : > { %4992 = dma.done.wait (%p4763_p2), [#allocation10], 18448  }
  0x22   : > { %4994 = vsyncadd (%p4763_p2), [#allocation10], 4294948848 }
  0x23   : > { %4996 = dma.done.wait (%p4763_p2), [#allocation13], 32  }
  0x24   : > { %4998 = vsyncadd (%p4763_p2), [#allocation13], 4294967264  ;;  %p364_p6 = scmp.lt.s32.totalorder %s5065_s28, 1  ;;  %vm417_vm0 = vcmask 1041408   ;;  %v403_v0 = vld [vmem:[#allocation4 + $0x2] sm:$0x3] }
  0x25   : > { %v389_v1 = vld [vmem:[#allocation4] sm:$0x3]  ;;  %v507_v2 = vld [vmem:[#allocation4 + $0x4] sm:$0x3]  ;;  %v419_v3 = vsel %vm417_vm0, %v403_v0, 0  ;;  %vm404_vm1 = vcmask 31744  }
  0x26   : > { %s365_s29 = scalar_select %p364_p6, %s5065_s28, 1  ;;  %v463_v4 = vsel %vm417_vm0, %v389_v1, 0  ;;  %v521_v5 = vsel %vm417_vm0, %v507_v2, 0  ;;  %v574_v6 = vld [vmem:[#allocation4 + $0x6] sm:$0x3]  ;;  %428 = vmatpush.bf16.msra.mxu0 %v419_v3  ;;  %vm978_vm2 = vcmask 523264  }
  0x27   : > { %472 = vmatpush.bf16.msra.mxu1 %v463_v4  ;;  %v588_v8 = vsel %vm417_vm0, %v574_v6, 0  ;;  %530 = vmatpush.bf16.msra.mxu2 %v521_v5  ;;  %v640_v16 = vld [vmem:[#allocation4 + $0x8] sm:$0x3]  ;;  %v773_v31 = vld [vmem:[#allocation4 + $0xc] sm:$0x3]  ;;  %vm980_vm3 = vcmask 517120  }
  0x28   : > { %s4719_s15 = smul.u32 160, %s365_s29  ;;  %597 = vmatpush.bf16.msra.mxu3 %v588_v8  ;;  %v654_v18 = vsel %vm417_vm0, %v640_v16, 0  ;;  %v839_v32 = vld [vmem:[#allocation4 + $0xe] sm:$0x3]  ;;  %v706_v33 = vld [vmem:[#allocation4 + $0xa] sm:$0x3] }
  0x29   : > { %v787_v34 = vsel %vm417_vm0, %v773_v31, 0  ;;  %v853_v35 = vsel %vm417_vm0, %v839_v32, 0  ;;  %v720_v36 = vsel %vm417_vm0, %v706_v33, 0  ;;  %v905_v47 = vld [vmem:[#allocation4 + $0x10] sm:$0x3]  ;;  %s3693_s26 = sshll.u32 %s5065_s28, 3 }
  0x2a   : > { %s5132_s25 = scalar_lea.vmem %s5992_s0, %s4719_s15  ;;  %663 = vmatpush.bf16.msrb.mxu0 %v654_v18  ;;  %v919_v48 = vsel %vm417_vm0, %v905_v47, 0  ;;  %p370_p7 = scmp.lt.s32.totalorder %s3693_s26, 15 }
  0x2b   : > { %v390_v7 = vld [vmem:[%s5132_s25 + $0x1] sm:$0xff]  ;;  %v5140_v9 = vld [vmem:[%s5132_s25 + $0x11] sm:$0xff]  ;;  %796 = vmatpush.bf16.msrb.mxu2 %v787_v34  ;;  %729 = vmatpush.bf16.msrb.mxu1 %v720_v36 }
  0x2c   : > { %v377_v10 = vld [vmem:[%s5132_s25] sm:$0xff]  ;;  %v378_v11 = vld [vmem:[%s5132_s25 + $0x10] sm:$0xff]  ;;  %v398_v12 = vpack.c.bf16 %v5140_v9, %v390_v7  ;;  %862 = vmatpush.bf16.msrb.mxu3 %v853_v35  ;;  %s6003_s26 = smov (!%p370_p7, %s3693_s26), 15 }
  0x2d   : > { %v385_v13 = vpack.c.bf16 %v378_v11, %v377_v10  ;;  %v494_v14 = vld [vmem:[%s5132_s25 + $0x2] sm:$0xff]  ;;  %v5147_v15 = vld [vmem:[%s5132_s25 + $0x12] sm:$0xff]  ;;  %s4538_s28 = sshll.u32 %s6003_s26, 4 }
  0x2e   : > { %v502_v17 = vpack.c.bf16 %v5147_v15, %v494_v14  ;;  %v3709_v19 = vld [vmem:[%s5132_s25 + $0x20] sm:$0xff]  ;;  %3696 = vmatmul.msk.bf16.vlgmr.msra.gmra.mxu0 %vm404_vm1, %v398_v12  ;;  %v393_v22 = vld [vmem:[%s5132_s25 + $0x31] sm:$0xff]  ;;  %s5923_s8 = scalar_lea.vmem %s5999_s7, %s4538_s28 }
  0x2f   : > { %3700 = vmatmul.msk.bf16.vlgmr.msra.gmra.mxu1 %vm404_vm1, %v385_v13  ;;  %v569_v20 = vpack.c.bf16 %v3709_v19, %v378_v11  ;;  %v392_v21 = vld [vmem:[%s5132_s25 + $0x21] sm:$0xff]  ;;  %v380_v23 = vld [vmem:[%s5132_s25 + $0x30] sm:$0xff]  ;;  %928 = vmatpush.bf16.msra.mxu0 %v919_v48 }
  0x30   : > { %3704 = vmatmul.msk.bf16.vlgmr.msra.gmra.mxu2 %vm404_vm1, %v502_v17  ;;  %v496_v24 = vld [vmem:[%s5132_s25 + $0x22] sm:$0xff]  ;;  %v497_v25 = vld [vmem:[%s5132_s25 + $0x32] sm:$0xff]  ;;  %v399_v27 = vpack.c.bf16 %v393_v22, %v392_v21  ;;  %v386_v28 = vpack.c.bf16 %v380_v23, %v3709_v19  ;;  %v635_v59 = vpack.c.bf16 %v392_v21, %v5140_v9 }
  0x31   : > { %3716 = vmatmul.msk.bf16.vlgmr.msra.gmra.mxu3 %vm404_vm1, %v569_v20  ;;  %v3711_v26 = vld [vmem:[%s5132_s25 + $0x40] sm:$0xff]  ;;  %v5162_v29 = vpack.c.bf16 %v497_v25, %v496_v24  ;;  %v395_v38 = vld [vmem:[%s5132_s25 + $0x51] sm:$0xff]  ;;  %v701_v60 = vpack.c.bf16 %v496_v24, %v5147_v15 }
  0x32   : > { %v570_v30 = vpack.c.bf16 %v3711_v26, %v380_v23  ;;  %v394_v37 = vld [vmem:[%s5132_s25 + $0x41] sm:$0xff]  ;;  %v382_v39 = vld [vmem:[%s5132_s25 + $0x50] sm:$0xff] }
  0x33   : > { %v498_v40 = vld [vmem:[%s5132_s25 + $0x42] sm:$0xff]  ;;  %v499_v41 = vld [vmem:[%s5132_s25 + $0x52] sm:$0xff]  ;;  %v400_v43 = vpack.c.bf16 %v395_v38, %v394_v37  ;;  %v387_v44 = vpack.c.bf16 %v382_v39, %v3711_v26  ;;  %v636_v61 = vpack.c.bf16 %v394_v37, %v393_v22 }
  0x34   : > { %v3713_v42 = vld [vmem:[%s5132_s25 + $0x60] sm:$0xff]  ;;  %v504_v45 = vpack.c.bf16 %v499_v41, %v498_v40  ;;  %v397_v50 = vld [vmem:[%s5132_s25 + $0x71] sm:$0xff]  ;;  %v702_v62 = vpack.c.bf16 %v498_v40, %v497_v25 }
  0x35   : > { %v571_v46 = vpack.c.bf16 %v3713_v42, %v382_v39  ;;  %v396_v49 = vld [vmem:[%s5132_s25 + $0x61] sm:$0xff]  ;;  %v384_v51 = vld [vmem:[%s5132_s25 + $0x70] sm:$0xff] }
  0x36   : > { %v500_v52 = vld [vmem:[%s5132_s25 + $0x62] sm:$0xff]  ;;  %v501_v53 = vld [vmem:[%s5132_s25 + $0x72] sm:$0xff]  ;;  %v401_v55 = vpack.c.bf16 %v397_v50, %v396_v49  ;;  %v388_v56 = vpack.c.bf16 %v384_v51, %v3713_v42  ;;  %v637_v63 = vpack.c.bf16 %v396_v49, %v395_v38 }
  0x37   : > { %v3715_v54 = vld [vmem:[%s5132_s25 + $0x80] sm:$0xff]  ;;  %v505_v57 = vpack.c.bf16 %v501_v53, %v500_v52  ;;  %v703_v0 = vpack.c.bf16 %v500_v52, %v499_v41  ;;  %v3751_v3 = vld [vmem:[%s5132_s25 + $0x90] sm:$0xff] }
  0x38   : > { %v572_v58 = vpack.c.bf16 %v3715_v54, %v384_v51  ;;  %v3727_v1 = vld [vmem:[%s5132_s25 + $0x81] sm:$0xff]  ;;  %v3763_v4 = vld [vmem:[%s5132_s25 + $0x91] sm:$0xff]  ;;  %v771_v7 = vpack.c.bf16 %v3751_v3, %v3715_v54 }
  0x39   : > { %v3739_v2 = vld [vmem:[%s5132_s25 + $0x82] sm:$0xff]  ;;  %v638_v5 = vpack.c.bf16 %v3727_v1, %v397_v50  ;;  %v837_v8 = vpack.c.bf16 %v3763_v4, %v3727_v1  ;;  %v3775_v21 = vld [vmem:[%s5132_s25 + $0x92] sm:$0xff] }
  0x3a   : > { %v704_v6 = vpack.c.bf16 %v3739_v2, %v501_v53  ;;  %v903_v24 = vpack.c.bf16 %v3775_v21, %v3739_v2  ;;  %v4545_v35 = vld [vmem:[#allocation8 + $0x30] sm:$0xff]  ;;  %v4544_v42 = vld [vmem:[#allocation8 + $0x28] sm:$0xff]  ;;  %v4542_v50 = vld [vmem:[#allocation8 + $0x18] sm:$0xff] }
  0x3b   : > { %v4550_v51 = vld [vmem:[#allocation8 + $0x58] sm:$0xff]  ;;  %1155 = vmatpush.bf16.msra.mxu2 %v4542_v50  ;;  %v4541_v53 = vld [vmem:[#allocation8 + $0x10] sm:$0xff]  ;;  %v4547_v1 = vld [vmem:[#allocation8 + $0x40] sm:$0xff] }
  0x3c   : > { %1241 = vmatpush.bf16.msra.mxu3 %v4550_v51  ;;  %v4549_v54 = vld [vmem:[#allocation8 + $0x50] sm:$0xff]  ;;  %v4551_v21 = vld [vmem:[#allocation8 + $0x60] sm:$0xff] }
  0x3d   : > { %v4553_v3 = vld [vmem:[#allocation8 + $0x70] sm:$0xff] }
  0x3e   : > { %3697 = vmatmul.msk.bf16.gmra.mxu0 %vm404_vm1, %v399_v27 }
  0x3f   : > { %3701 = vmatmul.msk.bf16.gmra.mxu1 %vm404_vm1, %v386_v28  ;;  %1156 = vmatpush.bf16.msra.mxu2 %v4541_v53 }
  0x40   : > { %3705 = vmatmul.msk.bf16.gmra.mxu2 %vm404_vm1, %v5162_v29  ;;  %1242 = vmatpush.bf16.msra.mxu3 %v4549_v54 }
  0x41   : > { %3717 = vmatmul.msk.bf16.gmra.mxu3 %vm404_vm1, %v570_v30 }
  0x4e   : > { %3698 = vmatmul.msk.bf16.gmra.mxu0 %vm404_vm1, %v400_v43 }
  0x4f   : > { %3702 = vmatmul.msk.bf16.gmra.mxu1 %vm404_vm1, %v387_v44 }
  0x50   : > { %3706 = vmatmul.msk.bf16.gmra.mxu2 %vm404_vm1, %v504_v45 }
  0x51   : > { %3718 = vmatmul.msk.bf16.gmra.mxu3 %vm404_vm1, %v571_v46 }
  0x5e   : > { %3699 = vmatmul.msk.bf16.gmra.mxu0 %vm404_vm1, %v401_v55 }
  0x5f   : > { %3703 = vmatmul.msk.bf16.gmra.mxu1 %vm404_vm1, %v388_v56 }
  0x60   : > { %3707 = vmatmul.msk.bf16.gmra.mxu2 %vm404_vm1, %v505_v57 }
  0x61   : > { %3719 = vmatmul.msk.bf16.gmra.mxu3 %vm404_vm1, %v572_v58  ;;  %v4540_v58 = vld [vmem:[#allocation8 + $0x8] sm:$0xff] }
  0x62   : > { %1157 = vmatpush.bf16.msra.mxu2 %v4540_v58 }
  0x6e   : > { %3728 = vmatmul.msk.bf16.vlgmr.msrb.gmra.mxu0 %vm404_vm1, %v635_v59  ;;  %v4548_v59 = vld [vmem:[#allocation8 + $0x48] sm:$0xff] }
  0x6f   : > { %3740 = vmatmul.msk.bf16.vlgmr.msrb.gmra.mxu1 %vm404_vm1, %v701_v60  ;;  %v4554_v60 = vld [vmem:[#allocation8 + $0x78] sm:$0xff]  ;;  %1243 = vmatpush.bf16.msra.mxu3 %v4548_v59 }
  0x70   : > { %3752 = vmatmul.msk.bf16.vlgmr.msrb.gmra.mxu2 %vm404_vm1, %v386_v28  ;;  %1335 = vmatpush.bf16.msrb.mxu0 %v4554_v60 }
  0x71   : > { %3764 = vmatmul.msk.bf16.vlgmr.msrb.gmra.mxu3 %vm404_vm1, %v399_v27  ;;  %v4546_v27 = vld [vmem:[#allocation8 + $0x38] sm:$0xff] }
  0x72   : > { %1090 = vmatpush.bf16.msra.mxu1 %v4546_v27 }
  0x73   : > { %1244 = vmatpush.bf16.msra.mxu3 %v4547_v1  ;;  %v4557_v1 = vld [vmem:[#allocation8 + $0x90] sm:$0xff] }
  0x74   : > { %1336 = vmatpush.bf16.msrb.mxu0 %v4553_v3 }
  0x76   : > { %1091 = vmatpush.bf16.msra.mxu1 %v4545_v35 }
  0x7a   : > { %1092 = vmatpush.bf16.msra.mxu1 %v4544_v42 }
  0x7e   : > { %3729 = vmatmul.msk.bf16.gmra.mxu0 %vm404_vm1, %v636_v61 }
  0x7f   : > { %3741 = vmatmul.msk.bf16.gmra.mxu1 %vm404_vm1, %v702_v62 }
  0x80   : > { %3753 = vmatmul.msk.bf16.gmra.mxu2 %vm404_vm1, %v387_v44 }
  0x81   : > { %3765 = vmatmul.msk.bf16.gmra.mxu3 %vm404_vm1, %v400_v43 }
  0x8e   : > { %3730 = vmatmul.msk.bf16.gmra.mxu0 %vm404_vm1, %v637_v63  ;;  %v4543_v63 = vld [vmem:[#allocation8 + $0x20] sm:$0xff] }
  0x8f   : > { %3742 = vmatmul.msk.bf16.gmra.mxu1 %vm404_vm1, %v703_v0  ;;  %v4539_v0 = vld [vmem:[#allocation8] sm:$0xff] }
  0x90   : > { %3754 = vmatmul.msk.bf16.gmra.mxu2 %vm404_vm1, %v388_v56  ;;  %1093 = vmatpush.bf16.msra.mxu1 %v4543_v63 }
  0x91   : > { %3766 = vmatmul.msk.bf16.gmra.mxu3 %vm404_vm1, %v401_v55  ;;  %v5015_v55 = vmov 0.0   ;;  %1158 = vmatpush.bf16.msra.mxu2 %v4539_v0 }
  0x92   : > { %982 = vst.msk [vmem:[#allocation2 + $0x10] sm:$0xff] %vm978_vm2, %v5015_v55 }
  0x93   : > { %983 = vst.msk [vmem:[#allocation2 + $0x18] sm:$0x3] %vm980_vm3, %v5015_v55 }
  0x94   : > { %979 = vst.msk [vmem:[#allocation2] sm:$0xff] %vm978_vm2, %v5015_v55 }
  0x95   : > { %981 = vst.msk [vmem:[#allocation2 + $0x8] sm:$0x3] %vm980_vm3, %v5015_v55 }
  0x96   : > { %984 = vst.msk [vmem:[#allocation2 + $0x20] sm:$0xff] %vm978_vm2, %v5015_v55 }
  0x97   : > { %985 = vst.msk [vmem:[#allocation2 + $0x28] sm:$0x3] %vm980_vm3, %v5015_v55 }
  0x98   : > { %986 = vst.msk [vmem:[#allocation2 + $0x30] sm:$0xff] %vm978_vm2, %v5015_v55 }
  0x99   : > { %987 = vst.msk [vmem:[#allocation2 + $0x38] sm:$0x3] %vm980_vm3, %v5015_v55 }
  0x9a   : > { %988 = vst.msk [vmem:[#allocation2 + $0x40] sm:$0xff] %vm978_vm2, %v5015_v55 }
  0x9b   : > { %989 = vst.msk [vmem:[#allocation2 + $0x48] sm:$0x3] %vm980_vm3, %v5015_v55 }
  0x9c   : > { %990 = vst.msk [vmem:[#allocation2 + $0x50] sm:$0xff] %vm978_vm2, %v5015_v55 }
  0x9d   : > { %991 = vst.msk [vmem:[#allocation2 + $0x58] sm:$0x3] %vm980_vm3, %v5015_v55 }
  0x9e   : > { %3731 = vmatmul.msk.bf16.gmra.mxu0 %vm404_vm1, %v638_v5  ;;  %992 = vst.msk [vmem:[#allocation2 + $0x60] sm:$0xff] %vm978_vm2, %v5015_v55 }
  0x9f   : > { %3743 = vmatmul.msk.bf16.gmra.mxu1 %vm404_vm1, %v704_v6  ;;  %v4552_v6 = vld [vmem:[#allocation8 + $0x68] sm:$0xff]  ;;  %993 = vst.msk [vmem:[#allocation2 + $0x68] sm:$0x3] %vm980_vm3, %v5015_v55 }
  0xa0   : > { %3755 = vmatmul.msk.bf16.gmra.mxu2 %vm404_vm1, %v771_v7  ;;  %994 = vst.msk [vmem:[#allocation2 + $0x70] sm:$0xff] %vm978_vm2, %v5015_v55  ;;  %1337 = vmatpush.bf16.msrb.mxu0 %v4552_v6 }
  0xa1   : > { %3767 = vmatmul.msk.bf16.gmra.mxu3 %vm404_vm1, %v837_v8  ;;  %995 = vst.msk [vmem:[#allocation2 + $0x78] sm:$0x3] %vm980_vm3, %v5015_v55 }
  0xa2   : > { %996 = vst.msk [vmem:[#allocation2 + $0x80] sm:$0xff] %vm978_vm2, %v5015_v55 }
  0xa3   : > { %997 = vst.msk [vmem:[#allocation2 + $0x88] sm:$0x3] %vm980_vm3, %v5015_v55 }
  0xa4   : > { %998 = vst.msk [vmem:[#allocation2 + $0x90] sm:$0xff] %vm978_vm2, %v5015_v55  ;;  %1338 = vmatpush.bf16.msrb.mxu0 %v4551_v21 }
  0xa5   : > { %999 = vst.msk [vmem:[#allocation2 + $0x98] sm:$0x3] %vm980_vm3, %v5015_v55 }
  0xa6   : > { %1859 = vst [vmem:[#allocation3] sm:$0xff] %v5015_v55 }
  0xa7   : > { %1860 = vst [vmem:[#allocation3 + $0x8] sm:$0x3] %v5015_v55 }
  0xa8   : > { %1861 = vst [vmem:[#allocation3 + $0x10] sm:$0xff] %v5015_v55 }
  0xa9   : > { %1862 = vst [vmem:[#allocation3 + $0x18] sm:$0x3] %v5015_v55 }
  0xaa   : > { %1863 = vst [vmem:[#allocation3 + $0x20] sm:$0xff] %v5015_v55 }
  0xab   : > { %v5215_v9 = vpop.f32.mrf.mxu0  ;;  %1864 = vst [vmem:[#allocation3 + $0x28] sm:$0x3] %v5015_v55 }
  0xac   : > { %v5226_v13 = vpop.f32.mrf.mxu1  ;;  %1865 = vst [vmem:[#allocation3 + $0x30] sm:$0xff] %v5015_v55 }
  0xad   : > { %v475_v62 = vadd.f32 %v5226_v13, %v5215_v9  ;;  %1866 = vst [vmem:[#allocation3 + $0x38] sm:$0x3] %v5015_v55 }
  0xae   : > { %3776 = vmatmul.msk.bf16.vlgmr.msra.gmra.mxu0 %vm404_vm1, %v5162_v29  ;;  %1867 = vst [vmem:[#allocation3 + $0x40] sm:$0xff] %v5015_v55 }
  0xaf   : > { %1868 = vst [vmem:[#allocation3 + $0x48] sm:$0x3] %v5015_v55 }
  0xb0   : > { %1869 = vst [vmem:[#allocation3 + $0x50] sm:$0xff] %v5015_v55 }
  0xb1   : > { %1870 = vst [vmem:[#allocation3 + $0x58] sm:$0x3] %v5015_v55 }
  0xb2   : > { %1871 = vst [vmem:[#allocation3 + $0x60] sm:$0xff] %v5015_v55 }
  0xb3   : > { %v5219_v10 = vpop.f32.mrf.mxu0  ;;  %v5228_v14 = vpop.f32.mrf.mxu2  ;;  %1872 = vst [vmem:[#allocation3 + $0x68] sm:$0x3] %v5015_v55 }
  0xb4   : > { %v5230_v15 = vpop.f32.mrf.mxu3  ;;  %v5234_v17 = vpop.f32.mrf.mxu1  ;;  %v552_v4 = vadd.f32 %v5228_v14, %v475_v62  ;;  %1873 = vst [vmem:[#allocation3 + $0x70] sm:$0xff] %v5015_v55 }
  0xb5   : > { %v477_v13 = vadd.f32 %v5234_v17, %v5219_v10  ;;  %1874 = vst [vmem:[#allocation3 + $0x78] sm:$0x3] %v5015_v55 }
  0xb6   : > { %v619_v8 = vadd.f32 %v5230_v15, %v552_v4  ;;  %1875 = vst [vmem:[#allocation3 + $0x80] sm:$0xff] %v5015_v55 }
  0xb7   : > { %1876 = vst [vmem:[#allocation3 + $0x88] sm:$0x3] %v5015_v55 }
  0xb8   : > { %1877 = vst [vmem:[#allocation3 + $0x90] sm:$0xff] %v5015_v55 }
  0xb9   : > { %1878 = vst [vmem:[#allocation3 + $0x98] sm:$0x3] %v5015_v55 }
  0xbb   : > { %v5221_v11 = vpop.f32.mrf.mxu0  ;;  %v5237_v18 = vpop.f32.mrf.mxu2 }
  0xbc   : > { %v5239_v19 = vpop.f32.mrf.mxu3  ;;  %v5244_v22 = vpop.f32.mrf.mxu1  ;;  %v553_v15 = vadd.f32 %v5237_v18, %v477_v13  ;;  %v1180_v13 = vld [vmem:[#allocation2 + $0x2] sm:$0xff] }
  0xbd   : > { %v480_v42 = vadd.f32 %v5244_v22, %v5221_v11 }
  0xbe   : > { %3777 = vmatmul.msk.bf16.gmra.mxu0 %vm404_vm1, %v504_v45  ;;  %v620_v17 = vadd.f32 %v5239_v19, %v553_v15  ;;  %v5359_v19 = vld [vmem:[#allocation6] ss:$0 sm:$0xff] }
  0xc3   : > { %v5224_v12 = vpop.f32.mrf.mxu0  ;;  %v5246_v23 = vpop.f32.mrf.mxu2 }
  0xc4   : > { %v5250_v26 = vpop.f32.mrf.mxu3  ;;  %v5253_v28 = vpop.f32.mrf.mxu1  ;;  %v554_v53 = vadd.f32 %v5246_v23, %v480_v42 }
  0xc5   : > { %v482_v60 = vadd.f32 %v5253_v28, %v5224_v12 }
  0xc6   : > { %v621_v22 = vadd.f32 %v5250_v26, %v554_v53 }
  0xcb   : > { %v5232_v16 = vpop.f32.mrf.mxu0  ;;  %v5255_v29 = vpop.f32.mrf.mxu2 }
  0xcc   : > { %v5259_v31 = vpop.f32.mrf.mxu3  ;;  %v5263_v33 = vpop.f32.mrf.mxu1  ;;  %v555_v26 = vadd.f32 %v5255_v29, %v482_v60  ;;  %v4556_v60 = vld [vmem:[#allocation8 + $0x88] sm:$0xff] }
  0xcd   : > { %v485_v6 = vadd.f32 %v5263_v33, %v5232_v16 }
  0xce   : > { %3778 = vmatmul.msk.bf16.gmra.mxu0 %vm404_vm1, %v505_v57  ;;  %v622_v28 = vadd.f32 %v5259_v31, %v555_v26 }
  0xd3   : > { %v5241_v20 = vpop.f32.mrf.mxu0  ;;  %v5265_v34 = vpop.f32.mrf.mxu2 }
  0xd4   : > { %v5267_v36 = vpop.f32.mrf.mxu3  ;;  %v5271_v38 = vpop.f32.mrf.mxu1  ;;  %v556_v31 = vadd.f32 %v5265_v34, %v485_v6 }
  0xdb   : > { %v5248_v25 = vpop.f32.mrf.mxu0  ;;  %v5273_v39 = vpop.f32.mrf.mxu2 }
  0xdc   : > { %v5275_v40 = vpop.f32.mrf.mxu3  ;;  %v5279_v43 = vpop.f32.mrf.mxu1 }
  0xde   : > { %3779 = vmatmul.msk.bf16.gmra.mxu0 %vm404_vm1, %v903_v24  ;;  %v4558_v24 = vld [vmem:[#allocation8 + $0x98] sm:$0xff] }
  0xdf   : > { %1429 = vmatpush.bf16.msrb.mxu1 %v4558_v24 }
  0xe3   : > { %v5257_v30 = vpop.f32.mrf.mxu0  ;;  %v5281_v44 = vpop.f32.mrf.mxu2  ;;  %1430 = vmatpush.bf16.msrb.mxu1 %v4557_v1 }
  0xe4   : > { %v5285_v46 = vpop.f32.mrf.mxu3  ;;  %v5287_v47 = vpop.f32.mrf.mxu1 }
  0xe7   : > { %1431 = vmatpush.bf16.msrb.mxu1 %v4556_v60 }
  0xeb   : > { %v5261_v32 = vpop.f32.mrf.mxu0  ;;  %v5289_v48 = vpop.f32.mrf.mxu2 }
  0xec   : > { %v5293_v52 = vpop.f32.mrf.mxu3  ;;  %v731_v56 = vpop.f32.mrf.mxu1  ;;  %v685_v14 = vadd.f32 %v5261_v32, %v619_v8  ;;  %v1029_v8 = vld [vmem:[#allocation2 + $0x1] sm:$0xff] }
  0xee   : > { %v751_v10 = vadd.f32 %v731_v56, %v685_v14 }
  0xf3   : > { %v5269_v37 = vpop.f32.mrf.mxu0  ;;  %v798_v61 = vpop.f32.mrf.mxu2 }
  0xf4   : > { %v864_v2 = vpop.f32.mrf.mxu3  ;;  %v733_v7 = vpop.f32.mrf.mxu1  ;;  %v818_v18 = vadd.f32 %v798_v61, %v751_v10  ;;  %v686_v50 = vadd.f32 %v5269_v37, %v620_v17 }
  0xf6   : > { %v884_v54 = vadd.f32 %v864_v2, %v818_v18  ;;  %v752_v58 = vadd.f32 %v733_v7, %v686_v50  ;;  %v623_v50 = vadd.f32 %v5267_v36, %v556_v31 }
  0xfb   : > { %v5277_v41 = vpop.f32.mrf.mxu0  ;;  %v800_v9 = vpop.f32.mrf.mxu2 }
  0xfc   : > { %v866_v27 = vpop.f32.mrf.mxu3  ;;  %v736_v32 = vpop.f32.mrf.mxu1  ;;  %v819_v37 = vadd.f32 %v800_v9, %v752_v58  ;;  %v687_v61 = vadd.f32 %v5277_v41, %v621_v22  ;;  %v1009_v9 = vld [vmem:[#allocation2] sm:$0xff] }
  0xfe   : > { %v885_v0 = vadd.f32 %v866_v27, %v819_v37  ;;  %v753_v4 = vadd.f32 %v736_v32, %v687_v61 }
 0x103   : > { %v5283_v45 = vpop.f32.mrf.mxu0  ;;  %v803_v51 = vpop.f32.mrf.mxu2 }
 0x104   : > { %v869_v11 = vpop.f32.mrf.mxu3  ;;  %v738_v63 = vpop.f32.mrf.mxu1  ;;  %v820_v41 = vadd.f32 %v803_v51, %v753_v4  ;;  %v688_v14 = vadd.f32 %v5283_v45, %v622_v28 }
 0x106   : > { %v886_v16 = vadd.f32 %v869_v11, %v820_v41  ;;  %v754_v32 = vadd.f32 %v738_v63, %v688_v14  ;;  %v4555_v14 = vld [vmem:[#allocation8 + $0x80] sm:$0xff] }
 0x107   : > { %1432 = vmatpush.bf16.msrb.mxu1 %v4555_v14 }
 0x10b   : > { %v5291_v49 = vpop.f32.mrf.mxu0  ;;  %v805_v2 = vpop.f32.mrf.mxu2 }
 0x10c   : > { %v871_v7 = vpop.f32.mrf.mxu3  ;;  %v741_v17 = vpop.f32.mrf.mxu1  ;;  %v821_v51 = vadd.f32 %v805_v2, %v754_v32 }
 0x10e   : > { %v887_v37 = vadd.f32 %v871_v7, %v821_v51 }
 0x113   : > { %v5299_v57 = vpop.f32.mrf.mxu0  ;;  %v808_v34 = vpop.f32.mrf.mxu2 }
 0x114   : > { %v743_v63 = vpop.f32.mrf.mxu1 }
 0x11b   : > { %v5320_v5 = vpop.f32.mrf.mxu0  ;;  %v810_v26 = vpop.f32.mrf.mxu2 }
 0x123   : > { %v5343_v35 = vpop.f32.mrf.mxu0 }
 0x12b   : > { %v930_v56 = vpop.f32.mrf.mxu0 }
 0x12c   : > { %v950_v59 = vadd.f32 %v930_v56, %v884_v54  ;;  %v487_v54 = vadd.f32 %v5271_v38, %v5241_v20  ;;  %v689_v56 = vadd.f32 %v5291_v49, %v623_v50 }
 0x12e   : > { %v962_v23 = vadd.f32 %v5359_v19, %v950_v59  ;;  %v874_v59 = vpop.f32.mrf.mxu3  ;;  %v557_v22 = vadd.f32 %v5273_v39, %v487_v54  ;;  %v755_v36 = vadd.f32 %v741_v17, %v689_v56  ;;  %v490_v39 = vadd.f32 %v5279_v43, %v5248_v25  ;;  %v4564_v54 = vld [vmem:[#allocation8 + $0xc8] sm:$0xff]  ;;  %v4570_v56 = vld [vmem:[#allocation8 + $0xf8] sm:$0xff] }
 0x12f   : > { %1712 = vmatpush.bf16.msra.mxu0 %v4570_v56 }
 0x130   : > { %v970_v62 = vmax.f32 %v962_v23, 0.0  ;;  %v624_v20 = vadd.f32 %v5275_v40, %v557_v22  ;;  %v822_v38 = vadd.f32 %v808_v34, %v755_v36  ;;  %v558_v4 = vadd.f32 %v5281_v44, %v490_v39  ;;  %v4569_v22 = vld [vmem:[#allocation8 + $0xf0] sm:$0xff] }
 0x132   : > { %1001 = vst.msk [vmem:[#allocation2 + $0x11] sm:$0xff] %vm978_vm2, %v970_v62  ;;  %v888_v41 = vadd.f32 %v874_v59, %v822_v38  ;;  %v4559_v59 = vld [vmem:[#allocation8 + $0xa0] sm:$0xff] }
 0x133   : > { %v932_v3 = vpop.f32.mrf.mxu0  ;;  %1713 = vmatpush.bf16.msra.mxu0 %v4569_v22 }
 0x134   : > { %v951_v12 = vadd.f32 %v932_v3, %v885_v0  ;;  %v690_v0 = vadd.f32 %v5299_v57, %v624_v20 }
 0x136   : > { %v963_v29 = vadd.f32 %v5359_v19, %v951_v12  ;;  %v756_v6 = vadd.f32 %v743_v63, %v690_v0 }
 0x138   : > { %v971_v21 = vmax.f32 %v963_v29, 0.0  ;;  %v876_v29 = vpop.f32.mrf.mxu3 }
 0x139   : > { %v5389_v15 = vld [vmem:[#allocation2 + $0x11] sm:$0xff] }
 0x13a   : > { %v1010_v24 = vld [vmem:[#allocation2 + $0x10] sm:$0xff]  ;;  %1002 = vst.msk [vmem:[#allocation2 + $0x21] sm:$0xff] %vm978_vm2, %v971_v21  ;;  %v1037_v33 = vpack.c.bf16 %v5389_v15, %v1029_v8  ;;  %v823_v21 = vadd.f32 %v810_v26, %v756_v6 }
 0x13b   : > { %v5391_v27 = vld [vmem:[#allocation2 + $0x12] sm:$0xff]  ;;  %v1017_v10 = vpack.c.bf16 %v1010_v24, %v1009_v9  ;;  %v935_v18 = vpop.f32.mrf.mxu0 }
 0x13c   : > { %v1188_v45 = vpack.c.bf16 %v5391_v27, %v1180_v13  ;;  %v952_v42 = vadd.f32 %v935_v18, %v886_v16  ;;  %3796 = vmatmul.msk.bf16.vlgmr.msra.gmra.mxu1 %vm978_vm2, %v1037_v33  ;;  %v4562_v8 = vld [vmem:[#allocation8 + $0xb8] sm:$0xff]  ;;  %v625_v13 = vadd.f32 %v5285_v46, %v558_v4  ;;  %v4565_v16 = vld [vmem:[#allocation8 + $0xd0] sm:$0xff]  ;;  %v813_v46 = vpop.f32.mrf.mxu2  ;;  %v4568_v4 = vld [vmem:[#allocation8 + $0xe8] sm:$0xff] }
 0x13d   : > { %3816 = vmatmul.msk.bf16.vlgmr.msra.gmra.mxu2 %vm978_vm2, %v1017_v10  ;;  %v4566_v9 = vld [vmem:[#allocation8 + $0xd8] sm:$0xff]  ;;  %v746_v10 = vpop.f32.mrf.mxu1  ;;  %1714 = vmatpush.bf16.msra.mxu0 %v4568_v4  ;;  %v4567_v6 = vld [vmem:[#allocation8 + $0xe0] sm:$0xff] }
 0x13e   : > { %3836 = vmatmul.msk.bf16.vlgmr.msra.gmra.mxu3 %vm978_vm2, %v1188_v45  ;;  %v964_v53 = vadd.f32 %v5359_v19, %v952_v42  ;;  %1523 = vmatpush.bf16.msrb.mxu2 %v4562_v8  ;;  %v691_v33 = vadd.f32 %v5320_v5, %v625_v13  ;;  %v492_v45 = vadd.f32 %v5287_v47, %v5257_v30  ;;  %v4560_v5 = vld [vmem:[#allocation8 + $0xa8] sm:$0xff] }
 0x13f   : > { %1618 = vmatpush.bf16.msrb.mxu3 %v4566_v9  ;;  %v889_v42 = vadd.f32 %v876_v29, %v823_v21 }
 0x140   : > { %v972_v58 = vmax.f32 %v964_v53, 0.0  ;;  %v559_v32 = vadd.f32 %v5289_v48, %v492_v45  ;;  %v757_v50 = vadd.f32 %v746_v10, %v691_v33  ;;  %v879_v47 = vpop.f32.mrf.mxu3 }
 0x141   : > { %v1275_v11 = vld [vmem:[#allocation2 + $0x20] sm:$0xff]  ;;  %1715 = vmatpush.bf16.msra.mxu0 %v4567_v6  ;;  %v4010_v6 = vld [vmem:[#allocation11 + $0xe0] sm:$0xf] }
 0x142   : > { %1003 = vst.msk [vmem:[#allocation2 + $0x31] sm:$0xff] %vm978_vm2, %v972_v58  ;;  %v1282_v23 = vpack.c.bf16 %v1275_v11, %v1010_v24  ;;  %v5412_v2 = vld [vmem:[#allocation2 + $0x21] sm:$0xff]  ;;  %v824_v30 = vadd.f32 %v813_v46, %v757_v50  ;;  %v626_v58 = vadd.f32 %v5293_v52, %v559_v32 }
 0x143   : > { %v937_v61 = vpop.f32.mrf.mxu0  ;;  %v5414_v3 = vld [vmem:[#allocation2 + $0x22] sm:$0xff]  ;;  %1619 = vmatpush.bf16.msrb.mxu3 %v4565_v16  ;;  %v1376_v50 = vpack.c.bf16 %v5412_v2, %v5389_v15 }
 0x144   : > { %v953_v62 = vadd.f32 %v937_v61, %v887_v37  ;;  %3856 = vmatmul.msk.bf16.vlgmr.msrb.gmra.mxu0 %vm978_vm2, %v1282_v23  ;;  %v4561_v24 = vld [vmem:[#allocation8 + $0xb0] sm:$0xff]  ;;  %v692_v37 = vadd.f32 %v5343_v35, %v626_v58  ;;  %v890_v36 = vadd.f32 %v879_v47, %v824_v30  ;;  %v815_v39 = vpop.f32.mrf.mxu2  ;;  %v1658_v30 = vld [vmem:[#allocation2 + $0x91] sm:$0xff] }
 0x145   : > { %1524 = vmatpush.bf16.msrb.mxu2 %v4561_v24 }
 0x146   : > { %v965_v49 = vadd.f32 %v5359_v19, %v953_v62  ;;  %v748_v62 = vpop.f32.mrf.mxu1 }
 0x147   : > { %1620 = vmatpush.bf16.msrb.mxu3 %v4564_v54  ;;  %v758_v0 = vadd.f32 %v748_v62, %v692_v37 }
 0x148   : > { %v973_v1 = vmax.f32 %v965_v49, 0.0 }
 0x149   : > { %v5417_v12 = vld [vmem:[#allocation2 + $0x31] sm:$0xff]  ;;  %1525 = vmatpush.bf16.msrb.mxu2 %v4560_v5 }
 0x14a   : > { %v1012_v28 = vld [vmem:[#allocation2 + $0x30] sm:$0xff]  ;;  %1004 = vst.msk [vmem:[#allocation2 + $0x41] sm:$0xff] %vm978_vm2, %v973_v1  ;;  %v5424_v25 = vpack.c.bf16 %v5417_v12, %v5412_v2 }
 0x14b   : > { %v5419_v40 = vld [vmem:[#allocation2 + $0x32] sm:$0xff]  ;;  %v5426_v43 = vpack.c.bf16 %v1012_v28, %v1275_v11  ;;  %v940_v44 = vpop.f32.mrf.mxu0 }
 0x14c   : > { %v5430_v57 = vpack.c.bf16 %v5419_v40, %v5414_v3  ;;  %v954_v7 = vadd.f32 %v940_v44, %v888_v41  ;;  %3797 = vmatmul.msk.bf16.gmra.mxu1 %vm978_vm2, %v5424_v25  ;;  %v4563_v11 = vld [vmem:[#allocation8 + $0xc0] sm:$0xff]  ;;  %v825_v41 = vadd.f32 %v815_v39, %v758_v0  ;;  %v881_v44 = vpop.f32.mrf.mxu3  ;;  %v4018_v39 = vld [vmem:[#allocation11 + $0xf0] sm:$0xf]  ;;  %v4605_v0 = vld [vmem:[#allocation11 + $0xf4] sm:$0xf] }
 0x14d   : > { %3817 = vmatmul.msk.bf16.gmra.mxu2 %vm978_vm2, %v5426_v43  ;;  %1621 = vmatpush.bf16.msrb.mxu3 %v4563_v11 }
 0x14e   : > { %3837 = vmatmul.msk.bf16.gmra.mxu3 %vm978_vm2, %v5430_v57  ;;  %v966_v31 = vadd.f32 %v5359_v19, %v954_v7  ;;  %1526 = vmatpush.bf16.msrb.mxu2 %v4559_v59  ;;  %v891_v9 = vadd.f32 %v881_v44, %v825_v41 }
 0x150   : > { %v974_v17 = vmax.f32 %v966_v31, 0.0 }
 0x151   : > { %v1277_v18 = vld [vmem:[#allocation2 + $0x40] sm:$0xff] }
 0x152   : > { %1005 = vst.msk [vmem:[#allocation2 + $0x51] sm:$0xff] %vm978_vm2, %v974_v17  ;;  %v1283_v34 = vpack.c.bf16 %v1277_v18, %v1012_v28  ;;  %v5449_v60 = vld [vmem:[#allocation2 + $0x41] sm:$0xff]  ;;  %v4574_v28 = vld [vmem:[#allocation8 + $0x118] sm:$0xff] }
 0x153   : > { %v942_v51 = vpop.f32.mrf.mxu0  ;;  %v5451_v61 = vld [vmem:[#allocation2 + $0x42] sm:$0xff]  ;;  %1806 = vmatpush.bf16.msra.mxu1 %v4574_v28  ;;  %v1377_v5 = vpack.c.bf16 %v5449_v60, %v5417_v12  ;;  %v4020_v28 = vld [vmem:[#allocation11 + $0xf8] sm:$0xf0] }
 0x154   : > { %v955_v53 = vadd.f32 %v942_v51, %v889_v42  ;;  %3857 = vmatmul.msk.bf16.gmra.mxu0 %vm978_vm2, %v1283_v34  ;;  %v4573_v42 = vld [vmem:[#allocation8 + $0x110] sm:$0xff]  ;;  %v1470_v51 = vpack.c.bf16 %v5414_v3, %v5391_v27  ;;  %v1471_v15 = vpack.c.bf16 %v5451_v61, %v5419_v40  ;;  %v4571_v27 = vld [vmem:[#allocation8 + $0x100] sm:$0xff]  ;;  %v4023_v41 = vor.u32 %v4605_v0, %v4020_v28 }
 0x155   : > { %v4074_v0 = vld [vmem:[#allocation11 + $0x60] sm:$0xf] }
 0x156   : > { %v967_v48 = vadd.f32 %v5359_v19, %v955_v53  ;;  %v4572_v53 = vld [vmem:[#allocation8 + $0x108] sm:$0xff]  ;;  %2054 = vmatpush.bf16.msra.mxu3 %v4023_v41 }
 0x157   : > { %1807 = vmatpush.bf16.msra.mxu1 %v4573_v42 }
 0x158   : > { %v975_v23 = vmax.f32 %v967_v48, 0.0 }
 0x159   : > { %v5453_v63 = vld [vmem:[#allocation2 + $0x51] sm:$0xff] }
 0x15a   : > { %v1014_v52 = vld [vmem:[#allocation2 + $0x50] sm:$0xff]  ;;  %1006 = vst.msk [vmem:[#allocation2 + $0x61] sm:$0xff] %vm978_vm2, %v975_v23  ;;  %v5460_v38 = vpack.c.bf16 %v5453_v63, %v5449_v60 }
 0x15b   : > { %v5455_v20 = vld [vmem:[#allocation2 + $0x52] sm:$0xff]  ;;  %v1019_v49 = vpack.c.bf16 %v1014_v52, %v1277_v18  ;;  %v945_v26 = vpop.f32.mrf.mxu0  ;;  %1808 = vmatpush.bf16.msra.mxu1 %v4572_v53 }
 0x15c   : > { %v5464_v35 = vpack.c.bf16 %v5455_v20, %v5451_v61  ;;  %v956_v1 = vadd.f32 %v945_v26, %v890_v36  ;;  %3798 = vmatmul.msk.bf16.gmra.mxu1 %vm978_vm2, %v5460_v38  ;;  %v4606_v26 = vld [vmem:[#allocation11 + $0xf4] sm:$0xf0] }
 0x15d   : > { %3818 = vmatmul.msk.bf16.gmra.mxu2 %vm978_vm2, %v1019_v49  ;;  %v4019_v4 = vor.u32 %v4606_v26, %v4018_v39  ;;  %v3988_v26 = vld [vmem:[#allocation11 + $0xb8] sm:$0xf0] }
 0x15e   : > { %3838 = vmatmul.msk.bf16.gmra.mxu3 %vm978_vm2, %v5464_v35  ;;  %v968_v29 = vadd.f32 %v5359_v19, %v956_v1 }
 0x15f   : > { %1809 = vmatpush.bf16.msra.mxu1 %v4571_v27  ;;  %2025 = vmatpush.bf16.msra.mxu2 %v4019_v4  ;;  %v4588_v4 = vld [vmem:[#allocation11 + $0x64] sm:$0xf0] }
 0x160   : > { %v976_v7 = vmax.f32 %v968_v29, 0.0  ;;  %v4075_v41 = vor.u32 %v4588_v4, %v4074_v0  ;;  %v3972_v4 = vld [vmem:[#allocation11 + $0x98] sm:$0xf0] }
 0x161   : > { %v1279_v8 = vld [vmem:[#allocation2 + $0x60] sm:$0xff] }
 0x162   : > { %1007 = vst.msk [vmem:[#allocation2 + $0x71] sm:$0xff] %vm978_vm2, %v976_v7  ;;  %v1284_v13 = vpack.c.bf16 %v1279_v8, %v1014_v52  ;;  %v1035_v16 = vld [vmem:[#allocation2 + $0x61] sm:$0xff]  ;;  %v1752_v52 = vld [vmem:[#allocation2 + $0x92] sm:$0xff] }
 0x163   : > { %v947_v14 = vpop.f32.mrf.mxu0  ;;  %v1186_v33 = vld [vmem:[#allocation2 + $0x62] sm:$0xff]  ;;  %v1378_v2 = vpack.c.bf16 %v1035_v16, %v5453_v63  ;;  %v4604_v7 = vld [vmem:[#allocation11 + $0xe4] sm:$0xf0] }
 0x164   : > { %v957_v21 = vadd.f32 %v947_v14, %v891_v9  ;;  %3858 = vmatmul.msk.bf16.gmra.mxu0 %vm978_vm2, %v1284_v13  ;;  %v1472_v3 = vpack.c.bf16 %v1186_v33, %v5455_v20  ;;  %v4011_v9 = vor.u32 %v4604_v7, %v4010_v6  ;;  %v4012_v13 = vld [vmem:[#allocation11 + $0xe8] sm:$0xf0]  ;;  %v4587_v6 = vld [vmem:[#allocation11 + $0x64] sm:$0xf] }
 0x165   : > { %v4076_v7 = vld [vmem:[#allocation11 + $0x68] sm:$0xf0] }
 0x166   : > { %v969_v31 = vadd.f32 %v5359_v19, %v957_v21  ;;  %2026 = vmatpush.bf16.msra.mxu2 %v4011_v9 }
 0x168   : > { %v977_v24 = vmax.f32 %v969_v31, 0.0 }
 0x169   : > { %v1036_v10 = vld [vmem:[#allocation2 + $0x71] sm:$0xff] }
 0x16a   : > { %v1016_v45 = vld [vmem:[#allocation2 + $0x70] sm:$0xff]  ;;  %1008 = vst.msk [vmem:[#allocation2 + $0x81] sm:$0xff] %vm978_vm2, %v977_v24  ;;  %v1040_v46 = vpack.c.bf16 %v1036_v10, %v1035_v16  ;;  %v4002_v16 = vld [vmem:[#allocation11 + $0xd0] sm:$0xf] }
 0x16b   : > { %v1187_v17 = vld [vmem:[#allocation2 + $0x72] sm:$0xff]  ;;  %v1020_v18 = vpack.c.bf16 %v1016_v45, %v1279_v8  ;;  %v4603_v8 = vld [vmem:[#allocation11 + $0xe4] sm:$0xf] }
 0x16c   : > { %v1191_v32 = vpack.c.bf16 %v1187_v17, %v1186_v33  ;;  %3799 = vmatmul.msk.bf16.gmra.mxu1 %vm978_vm2, %v1040_v46  ;;  %v4015_v21 = vor.u32 %v4603_v8, %v4012_v13  ;;  %v4602_v33 = vld [vmem:[#allocation11 + $0xd4] sm:$0xf0]  ;;  %v4079_v8 = vor.u32 %v4587_v6, %v4076_v7 }
 0x16d   : > { %3819 = vmatmul.msk.bf16.gmra.mxu2 %vm978_vm2, %v1020_v18 }
 0x16e   : > { %3839 = vmatmul.msk.bf16.gmra.mxu3 %vm978_vm2, %v1191_v32 }
 0x16f   : > { %2055 = vmatpush.bf16.msra.mxu3 %v4015_v21  ;;  %v4066_v21 = vld [vmem:[#allocation11 + $0x50] sm:$0xf] }
 0x171   : > { %v1281_v19 = vld [vmem:[#allocation2 + $0x80] sm:$0xff] }
 0x172   : > { %v1285_v34 = vpack.c.bf16 %v1281_v19, %v1016_v45  ;;  %v1375_v12 = vld [vmem:[#allocation2 + $0x81] sm:$0xff] }
 0x173   : > { %v1469_v40 = vld [vmem:[#allocation2 + $0x82] sm:$0xff]  ;;  %v1662_v47 = vpack.c.bf16 %v1658_v30, %v1375_v12 }
 0x174   : > { %3859 = vmatmul.msk.bf16.gmra.mxu0 %vm978_vm2, %v1285_v34  ;;  %v1473_v54 = vpack.c.bf16 %v1469_v40, %v1187_v17  ;;  %v4003_v17 = vor.u32 %v4602_v33, %v4002_v16  ;;  %v3994_v34 = vld [vmem:[#allocation11 + $0xc0] sm:$0xf]  ;;  %v4586_v16 = vld [vmem:[#allocation11 + $0x54] sm:$0xf0]  ;;  %v4585_v33 = vld [vmem:[#allocation11 + $0x54] sm:$0xf] }
 0x176   : > { %2027 = vmatpush.bf16.msra.mxu2 %v4003_v17  ;;  %v4068_v17 = vld [vmem:[#allocation11 + $0x58] sm:$0xf0] }
 0x17c   : > { %3876 = vmatmul.msk.bf16.vlgmr.msrb.gmra.mxu1 %vm978_vm2, %v1376_v50  ;;  %v4600_v50 = vld [vmem:[#allocation11 + $0xc4] sm:$0xf0] }
 0x17d   : > { %3896 = vmatmul.msk.bf16.vlgmr.msrb.gmra.mxu2 %vm978_vm2, %v1470_v51  ;;  %v4599_v51 = vld [vmem:[#allocation11 + $0xc4] sm:$0xf]  ;;  %v3995_v53 = vor.u32 %v4600_v50, %v3994_v34  ;;  %v3978_v34 = vld [vmem:[#allocation11 + $0xa0] sm:$0xf]  ;;  %v4596_v50 = vld [vmem:[#allocation11 + $0xa4] sm:$0xf0] }
 0x17e   : > { %3916 = vmatmul.msk.bf16.vlgmr.msrb.gmra.mxu3 %vm978_vm2, %v5426_v43  ;;  %v1379_v43 = vpack.c.bf16 %v1375_v12, %v1036_v10  ;;  %v4601_v10 = vld [vmem:[#allocation11 + $0xd4] sm:$0xf]  ;;  %v4590_v12 = vld [vmem:[#allocation11 + $0x74] sm:$0xf0] }
 0x17f   : > { %2028 = vmatpush.bf16.msra.mxu2 %v3995_v53 }
 0x184   : > { %3936 = vmatmul.msk.bf16.vlgmr.msra.gmra.mxu0 %vm978_vm2, %v5424_v25  ;;  %v1564_v25 = vld [vmem:[#allocation2 + $0x90] sm:$0xff] }
 0x185   : > { %v1568_v56 = vpack.c.bf16 %v1564_v25, %v1281_v19 }
 0x18c   : > { %3877 = vmatmul.msk.bf16.gmra.mxu1 %vm978_vm2, %v1377_v5  ;;  %v3996_v5 = vld [vmem:[#allocation11 + $0xc8] sm:$0xf0] }
 0x18d   : > { %3897 = vmatmul.msk.bf16.gmra.mxu2 %vm978_vm2, %v1471_v15  ;;  %v3999_v15 = vor.u32 %v4599_v51, %v3996_v5  ;;  %v4595_v51 = vld [vmem:[#allocation11 + $0xa4] sm:$0xf]  ;;  %v3979_v5 = vor.u32 %v4596_v50, %v3978_v34 }
 0x18e   : > { %3917 = vmatmul.msk.bf16.gmra.mxu3 %vm978_vm2, %v1019_v49  ;;  %v1756_v49 = vpack.c.bf16 %v1752_v52, %v1469_v40  ;;  %v4589_v40 = vld [vmem:[#allocation11 + $0x74] sm:$0xf]  ;;  %v4598_v52 = vld [vmem:[#allocation11 + $0xb4] sm:$0xf0] }
 0x194   : > { %3937 = vmatmul.msk.bf16.gmra.mxu0 %vm978_vm2, %v5460_v38 }
 0x19c   : > { %3878 = vmatmul.msk.bf16.gmra.mxu1 %vm978_vm2, %v1378_v2 }
 0x19d   : > { %3898 = vmatmul.msk.bf16.gmra.mxu2 %vm978_vm2, %v1472_v3  ;;  %v4082_v3 = vld [vmem:[#allocation11 + $0x70] sm:$0xf] }
 0x19e   : > { %3918 = vmatmul.msk.bf16.gmra.mxu3 %vm978_vm2, %v1020_v18 }
 0x1a4   : > { %3938 = vmatmul.msk.bf16.gmra.mxu0 %vm978_vm2, %v1040_v46  ;;  %v4004_v46 = vld [vmem:[#allocation11 + $0xd8] sm:$0xf0] }
 0x1a5   : > { %v4007_v18 = vor.u32 %v4601_v10, %v4004_v46  ;;  %v4067_v10 = vor.u32 %v4586_v16, %v4066_v21  ;;  %v4071_v46 = vor.u32 %v4585_v33, %v4068_v17  ;;  %v4581_v21 = vld [vmem:[#allocation11 + $0x34] sm:$0xf]  ;;  %v4052_v16 = vld [vmem:[#allocation11 + $0x38] sm:$0xf0]  ;;  %v4580_v17 = vld [vmem:[#allocation11 + $0x24] sm:$0xf0] }
 0x1a6   : > { %v4055_v33 = vor.u32 %v4581_v21, %v4052_v16  ;;  %v4576_v21 = vld [vmem:[#allocation11 + $0x4] sm:$0xf0]  ;;  %v4575_v16 = vld [vmem:[#allocation11 + $0x4] sm:$0xf] }
 0x1a7   : > { %2056 = vmatpush.bf16.msra.mxu3 %v4007_v18 }
 0x1ab   : > { %2057 = vmatpush.bf16.msra.mxu3 %v3999_v15  ;;  %v3980_v15 = vld [vmem:[#allocation11 + $0xa8] sm:$0xf0] }
 0x1ac   : > { %3879 = vmatmul.msk.bf16.gmra.mxu1 %vm978_vm2, %v1379_v43  ;;  %v4083_v43 = vor.u32 %v4590_v12, %v4082_v3  ;;  %v4058_v3 = vld [vmem:[#allocation11 + $0x40] sm:$0xf]  ;;  %v4584_v12 = vld [vmem:[#allocation11 + $0x44] sm:$0xf0] }
 0x1ad   : > { %3899 = vmatmul.msk.bf16.gmra.mxu2 %vm978_vm2, %v1473_v54  ;;  %v4084_v54 = vld [vmem:[#allocation11 + $0x78] sm:$0xf0] }
 0x1ae   : > { %3919 = vmatmul.msk.bf16.gmra.mxu3 %vm978_vm2, %v1568_v56  ;;  %v4087_v30 = vor.u32 %v4589_v40, %v4084_v54  ;;  %2163 = vmatpush.bf16.msrb.mxu0 %v4083_v43  ;;  %v3983_v40 = vor.u32 %v4595_v51, %v3980_v15  ;;  %v4059_v43 = vor.u32 %v4584_v12, %v4058_v3  ;;  %v4583_v54 = vld [vmem:[#allocation11 + $0x44] sm:$0xf]  ;;  %v4044_v51 = vld [vmem:[#allocation11 + $0x28] sm:$0xf0]  ;;  %v4592_v15 = vld [vmem:[#allocation11 + $0x84] sm:$0xf0] }
 0x1b0   : > { %2192 = vmatpush.bf16.msrb.mxu1 %v4087_v30  ;;  %v4060_v30 = vld [vmem:[#allocation11 + $0x48] sm:$0xf0] }
 0x1b2   : > { %2164 = vmatpush.bf16.msrb.mxu0 %v4075_v41  ;;  %v4582_v41 = vld [vmem:[#allocation11 + $0x34] sm:$0xf0] }
 0x1b4   : > { %3939 = vmatmul.msk.bf16.gmra.mxu0 %vm978_vm2, %v1662_v47  ;;  %v3986_v47 = vld [vmem:[#allocation11 + $0xb0] sm:$0xf]  ;;  %2193 = vmatpush.bf16.msrb.mxu1 %v4079_v8 }
 0x1b5   : > { %v3987_v39 = vor.u32 %v4598_v52, %v3986_v47  ;;  %v4063_v47 = vor.u32 %v4583_v54, %v4060_v30  ;;  %v3964_v54 = vld [vmem:[#allocation11 + $0x88] sm:$0xf0] }
 0x1b6   : > { %2165 = vmatpush.bf16.msrb.mxu0 %v4067_v10  ;;  %v4042_v10 = vld [vmem:[#allocation11 + $0x20] sm:$0xf] }
 0x1b7   : > { %2029 = vmatpush.bf16.msra.mxu2 %v3987_v39  ;;  %v4594_v39 = vld [vmem:[#allocation11 + $0x94] sm:$0xf0]  ;;  %v4043_v50 = vor.u32 %v4580_v17, %v4042_v10  ;;  %v4028_v10 = vld [vmem:[#allocation11 + $0x8] sm:$0xf0] }
 0x1b8   : > { %2194 = vmatpush.bf16.msrb.mxu1 %v4071_v46  ;;  %v4579_v46 = vld [vmem:[#allocation11 + $0x24] sm:$0xf]  ;;  %v4031_v17 = vor.u32 %v4575_v16, %v4028_v10  ;;  %v4620_v16 = vld [vmem:[#allocation11 + $0x164] sm:$0xf0] }
 0x1b9   : > { %v5509_v58 = vpop.f32.mrf.mxu1  ;;  %v4047_v12 = vor.u32 %v4579_v46, %v4044_v51 }
 0x1ba   : > { %2166 = vmatpush.bf16.msrb.mxu0 %v4059_v43  ;;  %v4591_v43 = vld [vmem:[#allocation11 + $0x84] sm:$0xf] }
 0x1bb   : > { %2030 = vmatpush.bf16.msra.mxu2 %v3979_v5  ;;  %v3962_v5 = vld [vmem:[#allocation11 + $0x80] sm:$0xf]  ;;  %v3967_v30 = vor.u32 %v4591_v43, %v3964_v54  ;;  %v4146_v54 = vld [vmem:[#allocation11 + $0x170] sm:$0xf] }
 0x1bc   : > { %3956 = vmatmul.msk.bf16.vlgmr.msra.gmra.mxu1 %vm978_vm2, %v5430_v57 }
 0x1bd   : > { %2195 = vmatpush.bf16.msrb.mxu1 %v4063_v47 }
 0x1c0   : > { %v5519_v11 = vpop.f32.mrf.mxu2 }
 0x1c1   : > { %v5513_v48 = vpop.f32.mrf.mxu1  ;;  %v5523_v37 = vpop.f32.mrf.mxu3  ;;  %2196 = vmatpush.bf16.msrb.mxu1 %v4055_v33 }
 0x1c2   : > { %v5525_v23 = vpop.f32.mrf.mxu0 }
 0x1c5   : > { %2197 = vmatpush.bf16.msrb.mxu1 %v4047_v12 }
 0x1c8   : > { %v5527_v60 = vpop.f32.mrf.mxu2 }
 0x1c9   : > { %v5515_v59 = vpop.f32.mrf.mxu1  ;;  %v5532_v57 = vpop.f32.mrf.mxu3 }
 0x1ca   : > { %v5536_v62 = vpop.f32.mrf.mxu0 }
 0x1cc   : > { %3957 = vmatmul.msk.bf16.gmra.mxu1 %vm978_vm2, %v5464_v35 }
 0x1d0   : > { %v5538_v63 = vpop.f32.mrf.mxu2 }
 0x1d1   : > { %v5521_v22 = vpop.f32.mrf.mxu1  ;;  %v5540_v20 = vpop.f32.mrf.mxu3 }
 0x1d2   : > { %v5544_v35 = vpop.f32.mrf.mxu0 }
 0x1d8   : > { %v5547_v1 = vpop.f32.mrf.mxu2 }
 0x1d9   : > { %v5529_v61 = vpop.f32.mrf.mxu1  ;;  %v5551_v44 = vpop.f32.mrf.mxu3 }
 0x1da   : > { %v5553_v14 = vpop.f32.mrf.mxu0 }
 0x1dc   : > { %3958 = vmatmul.msk.bf16.gmra.mxu1 %vm978_vm2, %v1191_v32 }
 0x1e0   : > { %v5555_v31 = vpop.f32.mrf.mxu2 }
 0x1e1   : > { %v5534_v36 = vpop.f32.mrf.mxu1  ;;  %v5559_v45 = vpop.f32.mrf.mxu3 }
 0x1e2   : > { %v5561_v32 = vpop.f32.mrf.mxu0 }
 0x1e8   : > { %v5563_v42 = vpop.f32.mrf.mxu2 }
 0x1e9   : > { %v5542_v38 = vpop.f32.mrf.mxu1  ;;  %v5567_v27 = vpop.f32.mrf.mxu3 }
 0x1ea   : > { %v5571_v25 = vpop.f32.mrf.mxu0 }
 0x1ec   : > { %3959 = vmatmul.msk.bf16.gmra.mxu1 %vm978_vm2, %v1756_v49  ;;  %v4597_v49 = vld [vmem:[#allocation11 + $0xb4] sm:$0xf] }
 0x1ed   : > { %v3991_v28 = vor.u32 %v4597_v49, %v3988_v26  ;;  %v3970_v49 = vld [vmem:[#allocation11 + $0x90] sm:$0xf]  ;;  %v4593_v26 = vld [vmem:[#allocation11 + $0x94] sm:$0xf] }
 0x1ee   : > { %v3971_v0 = vor.u32 %v4594_v39, %v3970_v49  ;;  %v3975_v7 = vor.u32 %v4593_v26, %v3972_v4  ;;  %v4034_v49 = vld [vmem:[#allocation11 + $0x10] sm:$0xf]  ;;  %v4578_v39 = vld [vmem:[#allocation11 + $0x14] sm:$0xf0]  ;;  %v4577_v26 = vld [vmem:[#allocation11 + $0x14] sm:$0xf] }
 0x1ef   : > { %2058 = vmatpush.bf16.msra.mxu3 %v3991_v28  ;;  %v4050_v28 = vld [vmem:[#allocation11 + $0x30] sm:$0xf]  ;;  %v4036_v4 = vld [vmem:[#allocation11 + $0x18] sm:$0xf0] }
 0x1f0   : > { %v5573_v56 = vpop.f32.mrf.mxu2  ;;  %v4051_v8 = vor.u32 %v4582_v41, %v4050_v28  ;;  %2031 = vmatpush.bf16.msra.mxu2 %v3971_v0  ;;  %v4035_v0 = vor.u32 %v4578_v39, %v4034_v49  ;;  %v4039_v28 = vor.u32 %v4577_v26, %v4036_v4  ;;  %v1161_v41 = vadd.f32 %v5519_v11, %v5509_v58  ;;  %v4148_v26 = vld [vmem:[#allocation11 + $0x178] sm:$0xf0] }
 0x1f1   : > { %v5549_v29 = vpop.f32.mrf.mxu1  ;;  %v5575_v9 = vpop.f32.mrf.mxu3  ;;  %v1163_v58 = vadd.f32 %v5527_v60, %v5513_v48  ;;  %v1166_v48 = vadd.f32 %v5538_v63, %v5515_v59  ;;  %v1168_v63 = vadd.f32 %v5547_v1, %v5521_v22  ;;  %v4617_v1 = vld [vmem:[#allocation11 + $0x154] sm:$0xf] }
 0x1f2   : > { %v5579_v18 = vpop.f32.mrf.mxu0  ;;  %2167 = vmatpush.bf16.msrb.mxu0 %v4051_v8  ;;  %v4026_v8 = vld [vmem:[#allocation11] sm:$0xf]  ;;  %2198 = vmatpush.bf16.msrb.mxu1 %v4039_v28  ;;  %v1266_v46 = vadd.f32 %v5523_v37, %v1161_v41  ;;  %v4621_v37 = vld [vmem:[#allocation11 + $0x174] sm:$0xf] }
 0x1f3   : > { %2059 = vmatpush.bf16.msra.mxu3 %v3983_v40  ;;  %v3963_v40 = vor.u32 %v4592_v15, %v3962_v5  ;;  %v4027_v33 = vor.u32 %v4576_v21, %v4026_v8  ;;  %v4151_v4 = vor.u32 %v4621_v37, %v4148_v26  ;;  %v4138_v21 = vld [vmem:[#allocation11 + $0x160] sm:$0xf] }
 0x1f4   : > { %v1360_v15 = vadd.f32 %v5525_v23, %v1266_v46  ;;  %v4139_v46 = vor.u32 %v4620_v16, %v4138_v21 }
 0x1f5   : > { %2032 = vmatpush.bf16.msra.mxu2 %v3963_v40  ;;  %v1267_v40 = vadd.f32 %v5532_v57, %v1163_v58 }
 0x1f6   : > { %2168 = vmatpush.bf16.msrb.mxu0 %v4043_v50  ;;  %2199 = vmatpush.bf16.msrb.mxu1 %v4031_v17 }
 0x1f7   : > { %2060 = vmatpush.bf16.msra.mxu3 %v3975_v7  ;;  %v1361_v23 = vadd.f32 %v5536_v62, %v1267_v40  ;;  %v4140_v62 = vld [vmem:[#allocation11 + $0x168] sm:$0xf0] }
 0x1f8   : > { %v5581_v53 = vpop.f32.mrf.mxu2 }
 0x1f9   : > { %v5557_v24 = vpop.f32.mrf.mxu1  ;;  %v5585_v6 = vpop.f32.mrf.mxu3 }
 0x1fa   : > { %v5587_v34 = vpop.f32.mrf.mxu0  ;;  %2169 = vmatpush.bf16.msrb.mxu0 %v4035_v0  ;;  %v1454_v11 = vadd.f32 %v5557_v24, %v1360_v15  ;;  %v5607_v24 = vld [vmem:[#allocation9] ss:$0 sm:$0xff] }
 0x1fb   : > { %2061 = vmatpush.bf16.msra.mxu3 %v3967_v30  ;;  %v4622_v30 = vld [vmem:[#allocation11 + $0x174] sm:$0xf0] }
 0x1fc   : > { %v4147_v39 = vor.u32 %v4622_v30, %v4146_v54 }
 0x1fe   : > { %2170 = vmatpush.bf16.msrb.mxu0 %v4027_v33  ;;  %2330 = vmatpush.bf16.msrb.mxu2 %v4147_v39  ;;  %v4619_v33 = vld [vmem:[#allocation11 + $0x164] sm:$0xf]  ;;  %v4618_v39 = vld [vmem:[#allocation11 + $0x154] sm:$0xf0] }
 0x1ff   : > { %2359 = vmatpush.bf16.msrb.mxu3 %v4151_v4  ;;  %v4143_v58 = vor.u32 %v4619_v33, %v4140_v62  ;;  %v4124_v62 = vld [vmem:[#allocation11 + $0x148] sm:$0xf0] }
 0x200   : > { %v1528_v3 = vpop.f32.mrf.mxu2 }
 0x201   : > { %v5565_v19 = vpop.f32.mrf.mxu1  ;;  %v1623_v7 = vpop.f32.mrf.mxu3  ;;  %v1548_v43 = vadd.f32 %v1528_v3, %v1454_v11  ;;  %v1268_v3 = vadd.f32 %v5540_v20, %v1166_v48 }
 0x202   : > { %v1717_v50 = vpop.f32.mrf.mxu0  ;;  %v1455_v57 = vadd.f32 %v5565_v19, %v1361_v23  ;;  %2331 = vmatpush.bf16.msrb.mxu2 %v4139_v46 }
 0x203   : > { %v1643_v60 = vadd.f32 %v1623_v7, %v1548_v43  ;;  %v1362_v59 = vadd.f32 %v5544_v35, %v1268_v3  ;;  %2360 = vmatpush.bf16.msrb.mxu3 %v4143_v58  ;;  %v1269_v43 = vadd.f32 %v5551_v44, %v1168_v63  ;;  %v4130_v35 = vld [vmem:[#allocation11 + $0x150] sm:$0xf]  ;;  %v4638_v63 = vld [vmem:[#allocation11 + $0x1f4] sm:$0xf0] }
 0x204   : > { %v4131_v22 = vor.u32 %v4618_v39, %v4130_v35 }
 0x205   : > { %v1737_v41 = vadd.f32 %v1717_v50, %v1643_v60  ;;  %v1363_v44 = vadd.f32 %v5553_v14, %v1269_v43  ;;  %v4122_v14 = vld [vmem:[#allocation11 + $0x140] sm:$0xf] }
 0x206   : > { %2332 = vmatpush.bf16.msrb.mxu2 %v4131_v22 }
 0x208   : > { %v1530_v51 = vpop.f32.mrf.mxu2 }
 0x209   : > { %v5569_v2 = vpop.f32.mrf.mxu1  ;;  %v1625_v12 = vpop.f32.mrf.mxu3  ;;  %v1549_v8 = vadd.f32 %v1530_v51, %v1455_v57  ;;  %v1916_v51 = vld [vmem:[#allocation3 + $0x1] sm:$0xff] }
 0x20a   : > { %v1719_v0 = vpop.f32.mrf.mxu0  ;;  %v1456_v11 = vadd.f32 %v5569_v2, %v1362_v59  ;;  %v1171_v2 = vadd.f32 %v5555_v31, %v5529_v61  ;;  %v4616_v31 = vld [vmem:[#allocation11 + $0x144] sm:$0xf0] }
 0x20b   : > { %v1644_v19 = vadd.f32 %v1625_v12, %v1549_v8  ;;  %v4132_v12 = vld [vmem:[#allocation11 + $0x158] sm:$0xf0]  ;;  %v4123_v46 = vor.u32 %v4616_v31, %v4122_v14 }
 0x20c   : > { %v4135_v23 = vor.u32 %v4617_v1, %v4132_v12 }
 0x20d   : > { %v1738_v54 = vadd.f32 %v1719_v0, %v1644_v19  ;;  %v4637_v19 = vld [vmem:[#allocation11 + $0x1f4] sm:$0xf]  ;;  %2333 = vmatpush.bf16.msrb.mxu2 %v4123_v46  ;;  %v4612_v46 = vld [vmem:[#allocation11 + $0x124] sm:$0xf0] }
 0x20e   : > { %2361 = vmatpush.bf16.msrb.mxu3 %v4135_v23  ;;  %v4614_v23 = vld [vmem:[#allocation11 + $0x134] sm:$0xf0] }
 0x210   : > { %v1533_v28 = vpop.f32.mrf.mxu2 }
 0x211   : > { %v5577_v13 = vpop.f32.mrf.mxu1  ;;  %v1628_v10 = vpop.f32.mrf.mxu3  ;;  %v1550_v30 = vadd.f32 %v1533_v28, %v1456_v11 }
 0x212   : > { %v1722_v7 = vpop.f32.mrf.mxu0  ;;  %v1457_v60 = vadd.f32 %v5577_v13, %v1363_v44  ;;  %v4615_v13 = vld [vmem:[#allocation11 + $0x144] sm:$0xf]  ;;  %v4613_v44 = vld [vmem:[#allocation11 + $0x134] sm:$0xf] }
 0x213   : > { %v1645_v0 = vadd.f32 %v1628_v10, %v1550_v30  ;;  %v4127_v59 = vor.u32 %v4615_v13, %v4124_v62  ;;  %v4611_v13 = vld [vmem:[#allocation11 + $0x124] sm:$0xf] }
 0x215   : > { %v1739_v16 = vadd.f32 %v1722_v7, %v1645_v0  ;;  %v4212_v7 = vld [vmem:[#allocation11 + $0x1f8] sm:$0xf0]  ;;  %2362 = vmatpush.bf16.msrb.mxu3 %v4127_v59 }
 0x216   : > { %v4116_v0 = vld [vmem:[#allocation11 + $0x138] sm:$0xf0] }
 0x218   : > { %v1535_v50 = vpop.f32.mrf.mxu2 }
 0x219   : > { %v5583_v52 = vpop.f32.mrf.mxu1  ;;  %v1630_v48 = vpop.f32.mrf.mxu3  ;;  %v1551_v33 = vadd.f32 %v1535_v50, %v1457_v60  ;;  %v4215_v50 = vor.u32 %v4637_v19, %v4212_v7 }
 0x21a   : > { %v1724_v57 = vpop.f32.mrf.mxu0 }
 0x21b   : > { %2542 = vmatpush.bf16.msra.mxu1 %v4215_v50 }
 0x220   : > { %v1538_v8 = vpop.f32.mrf.mxu2 }
 0x221   : > { %v5589_v47 = vpop.f32.mrf.mxu1  ;;  %v1633_v43 = vpop.f32.mrf.mxu3 }
 0x222   : > { %v1727_v1 = vpop.f32.mrf.mxu0 }
 0x229   : > { %v5594_v5 = vpop.f32.mrf.mxu1  ;;  %v1635_v19 = vpop.f32.mrf.mxu3 }
 0x231   : > { %v5601_v49 = vpop.f32.mrf.mxu1 }
 0x239   : > { %v1811_v17 = vpop.f32.mrf.mxu1 }
 0x23a   : > { %v1831_v15 = vadd.f32 %v1811_v17, %v1737_v41  ;;  %v1270_v41 = vadd.f32 %v5559_v45, %v1171_v2  ;;  %v1173_v45 = vadd.f32 %v5563_v42, %v5534_v36  ;;  %v4202_v36 = vld [vmem:[#allocation11 + $0x1e0] sm:$0xf]  ;;  %v4636_v42 = vld [vmem:[#allocation11 + $0x1e4] sm:$0xf0] }
 0x23b   : > { %v4203_v35 = vor.u32 %v4636_v42, %v4202_v36  ;;  %v4098_v36 = vld [vmem:[#allocation11 + $0x110] sm:$0xf]  ;;  %v4610_v42 = vld [vmem:[#allocation11 + $0x114] sm:$0xf0] }
 0x23c   : > { %v1843_v20 = vadd.f32 %v5607_v24, %v1831_v15  ;;  %v4210_v15 = vld [vmem:[#allocation11 + $0x1f0] sm:$0xf]  ;;  %v1271_v30 = vadd.f32 %v5567_v27, %v1173_v45 }
 0x23e   : > { %v1851_v40 = vmax.f32 %v1843_v20, 0.0  ;;  %v4211_v20 = vor.u32 %v4638_v63, %v4210_v15  ;;  %v1365_v27 = vadd.f32 %v5571_v25, %v1271_v30  ;;  %v4106_v25 = vld [vmem:[#allocation11 + $0x120] sm:$0xf]  ;;  %v1178_v30 = vadd.f32 %v5581_v53, %v5549_v29 }
 0x23f   : > { %v4107_v45 = vor.u32 %v4612_v46, %v4106_v25  ;;  %v4626_v25 = vld [vmem:[#allocation11 + $0x194] sm:$0xf0] }
 0x240   : > { %1880 = vst [vmem:[#allocation3 + $0x11] sm:$0xff] %v1851_v40  ;;  %v1924_v37 = vpack.c.bf16 %v1851_v40, %v1916_v51  ;;  %v1646_v51 = vadd.f32 %v1630_v48, %v1551_v33  ;;  %2513 = vmatpush.bf16.msra.mxu0 %v4211_v20  ;;  %v4631_v20 = vld [vmem:[#allocation11 + $0x1c4] sm:$0xf] }
 0x241   : > { %v1813_v26 = vpop.f32.mrf.mxu1 }
 0x242   : > { %v1832_v4 = vadd.f32 %v1813_v26, %v1738_v54  ;;  %2033 = vmatmul.bf16.vlgmr.msra.gmra.mxu2 %v1924_v37  ;;  %2062 = vmatmul.bf16.vlgmr.msra.gmra.mxu3 %v1924_v37  ;;  %v4635_v54 = vld [vmem:[#allocation11 + $0x1e4] sm:$0xf]  ;;  %v1740_v22 = vadd.f32 %v1724_v57, %v1646_v51  ;;  %v4634_v57 = vld [vmem:[#allocation11 + $0x1d4] sm:$0xf0] }
 0x244   : > { %v1844_v28 = vadd.f32 %v5607_v24, %v1832_v4  ;;  %v4114_v4 = vld [vmem:[#allocation11 + $0x130] sm:$0xf]  ;;  %2514 = vmatpush.bf16.msra.mxu0 %v4203_v35 }
 0x245   : > { %v4115_v48 = vor.u32 %v4614_v23, %v4114_v4  ;;  %v4629_v23 = vld [vmem:[#allocation11 + $0x1b4] sm:$0xf] }
 0x246   : > { %v1852_v3 = vmax.f32 %v1844_v28, 0.0  ;;  %v4194_v28 = vld [vmem:[#allocation11 + $0x1d0] sm:$0xf] }
 0x247   : > { %v5622_v21 = vld [vmem:[#allocation3 + $0x10] sm:$0xff]  ;;  %2334 = vmatpush.bf16.msrb.mxu2 %v4115_v48 }
 0x248   : > { %1881 = vst [vmem:[#allocation3 + $0x21] sm:$0xff] %v1852_v3  ;;  %v1896_v61 = vpack.c.bf16 %v5622_v21, %v5015_v55  ;;  %v5626_v10 = vpack.c.bf16 %v1852_v3, %v1851_v40  ;;  %v1364_v55 = vadd.f32 %v5561_v32, %v1270_v41  ;;  %v4204_v32 = vld [vmem:[#allocation11 + $0x1e8] sm:$0xf0]  ;;  %v4119_v41 = vor.u32 %v4613_v44, %v4116_v0  ;;  %v4628_v0 = vld [vmem:[#allocation11 + $0x1a4] sm:$0xf0] }
 0x249   : > { %v1816_v17 = vpop.f32.mrf.mxu1  ;;  %v4207_v26 = vor.u32 %v4635_v54, %v4204_v32  ;;  %v4609_v54 = vld [vmem:[#allocation11 + $0x114] sm:$0xf]  ;;  %v4099_v32 = vor.u32 %v4610_v42, %v4098_v36 }
 0x24a   : > { %v1833_v58 = vadd.f32 %v1816_v17, %v1739_v16  ;;  %2171 = vmatmul.bf16.vlgmr.msrb.gmra.mxu0 %v1896_v61  ;;  %2200 = vmatmul.bf16.vlgmr.msrb.gmra.mxu1 %v1896_v61  ;;  %v1458_v40 = vadd.f32 %v5583_v52, %v1364_v55  ;;  %v1540_v52 = vpop.f32.mrf.mxu2  ;;  %v4196_v16 = vld [vmem:[#allocation11 + $0x1d8] sm:$0xf0]  ;;  %v4195_v61 = vor.u32 %v4634_v57, %v4194_v28  ;;  %v4632_v55 = vld [vmem:[#allocation11 + $0x1c4] sm:$0xf0]  ;;  %v4627_v28 = vld [vmem:[#allocation11 + $0x1a4] sm:$0xf] }
 0x24b   : > { %2543 = vmatpush.bf16.msra.mxu1 %v4207_v26  ;;  %2363 = vmatpush.bf16.msrb.mxu3 %v4119_v41  ;;  %v1459_v17 = vadd.f32 %v5589_v47, %v1365_v27  ;;  %v4178_v26 = vld [vmem:[#allocation11 + $0x1b0] sm:$0xf]  ;;  %v4172_v27 = vld [vmem:[#allocation11 + $0x1a8] sm:$0xf0]  ;;  %v4608_v41 = vld [vmem:[#allocation11 + $0x104] sm:$0xf0] }
 0x24c   : > { %v1845_v11 = vadd.f32 %v5607_v24, %v1833_v58  ;;  %v1552_v39 = vadd.f32 %v1538_v8, %v1458_v40  ;;  %v4633_v8 = vld [vmem:[#allocation11 + $0x1d4] sm:$0xf]  ;;  %2515 = vmatpush.bf16.msra.mxu0 %v4195_v61  ;;  %2335 = vmatpush.bf16.msrb.mxu2 %v4107_v45  ;;  %v4607_v57 = vld [vmem:[#allocation11 + $0x104] sm:$0xf]  ;;  %v4092_v61 = vld [vmem:[#allocation11 + $0x108] sm:$0xf0] }
 0x24d   : > { %v4199_v14 = vor.u32 %v4633_v8, %v4196_v16  ;;  %v1553_v63 = vadd.f32 %v1540_v52, %v1459_v17  ;;  %v4180_v52 = vld [vmem:[#allocation11 + $0x1b8] sm:$0xf0]  ;;  %v1273_v8 = vadd.f32 %v5585_v6, %v1178_v30  ;;  %v4162_v17 = vld [vmem:[#allocation11 + $0x190] sm:$0xf] }
 0x24e   : > { %v1853_v37 = vmax.f32 %v1845_v11, 0.0  ;;  %v1647_v33 = vadd.f32 %v1633_v43, %v1552_v39  ;;  %v4188_v11 = vld [vmem:[#allocation11 + $0x1c8] sm:$0xf0]  ;;  %v4100_v39 = vld [vmem:[#allocation11 + $0x118] sm:$0xf0]  ;;  %v4183_v53 = vor.u32 %v4629_v23, %v4180_v52 }
 0x24f   : > { %2544 = vmatpush.bf16.msra.mxu1 %v4199_v14  ;;  %v5641_v15 = vld [vmem:[#allocation3 + $0x20] sm:$0xff]  ;;  %v4191_v43 = vor.u32 %v4631_v20, %v4188_v11  ;;  %v1648_v44 = vadd.f32 %v1635_v19, %v1553_v63  ;;  %v4175_v14 = vor.u32 %v4627_v28, %v4172_v27  ;;  %v4164_v6 = vld [vmem:[#allocation11 + $0x198] sm:$0xf0]  ;;  %v4154_v19 = vld [vmem:[#allocation11 + $0x180] sm:$0xf] }
 0x250   : > { %1882 = vst [vmem:[#allocation3 + $0x31] sm:$0xff] %v1853_v37  ;;  %v1925_v12 = vpack.c.bf16 %v1853_v37, %v1852_v3  ;;  %v1176_v3 = vadd.f32 %v5573_v56, %v5542_v38  ;;  %v4108_v38 = vld [vmem:[#allocation11 + $0x128] sm:$0xf0]  ;;  %v4186_v56 = vld [vmem:[#allocation11 + $0x1c0] sm:$0xf]  ;;  %v1741_v59 = vadd.f32 %v1727_v1, %v1647_v33  ;;  %v1729_v1 = vpop.f32.mrf.mxu0  ;;  %2336 = vmatpush.bf16.msrb.mxu2 %v4099_v32 }
 0x251   : > { %v1818_v2 = vpop.f32.mrf.mxu1  ;;  %v4111_v47 = vor.u32 %v4611_v13, %v4108_v38  ;;  %v4187_v51 = vor.u32 %v4632_v55, %v4186_v56  ;;  %v1742_v46 = vadd.f32 %v1729_v1, %v1648_v44  ;;  %v4625_v38 = vld [vmem:[#allocation11 + $0x194] sm:$0xf]  ;;  %v1638_v56 = vpop.f32.mrf.mxu3  ;;  %v4276_v52 = vld [vmem:[#allocation11 + $0x278] sm:$0xf0]  ;;  %v4268_v28 = vld [vmem:[#allocation11 + $0x268] sm:$0xf0] }
 0x252   : > { %v1834_v60 = vadd.f32 %v1818_v2, %v1740_v22  ;;  %2038 = vmatmul.bf16.gmra.mxu2 %v1925_v12  ;;  %2067 = vmatmul.bf16.gmra.mxu3 %v1925_v12  ;;  %v1272_v58 = vadd.f32 %v5575_v9, %v1176_v3  ;;  %v4630_v22 = vld [vmem:[#allocation11 + $0x1b4] sm:$0xf0]  ;;  %v1543_v12 = vpop.f32.mrf.mxu2  ;;  %v4170_v2 = vld [vmem:[#allocation11 + $0x1a0] sm:$0xf]  ;;  %v4167_v63 = vor.u32 %v4625_v38, %v4164_v6  ;;  %v4260_v6 = vld [vmem:[#allocation11 + $0x258] sm:$0xf0] }
 0x253   : > { %2364 = vmatpush.bf16.msrb.mxu3 %v4111_v47  ;;  %2516 = vmatpush.bf16.msra.mxu0 %v4187_v51  ;;  %v4179_v4 = vor.u32 %v4630_v22, %v4178_v26  ;;  %v1367_v47 = vadd.f32 %v5587_v34, %v1273_v8  ;;  %v4156_v51 = vld [vmem:[#allocation11 + $0x188] sm:$0xf0] }
 0x254   : > { %v1846_v31 = vadd.f32 %v5607_v24, %v1834_v60  ;;  %2545 = vmatpush.bf16.msra.mxu1 %v4191_v43  ;;  %v1366_v48 = vadd.f32 %v5579_v18, %v1272_v58  ;;  %v4090_v60 = vld [vmem:[#allocation11 + $0x100] sm:$0xf]  ;;  %v4171_v18 = vor.u32 %v4628_v0, %v4170_v2  ;;  %v4651_v0 = vld [vmem:[#allocation11 + $0x264] sm:$0xf] }
 0x255   : > { %v4091_v33 = vor.u32 %v4608_v41, %v4090_v60  ;;  %v1461_v43 = vadd.f32 %v5601_v49, %v1367_v47  ;;  %v4274_v49 = vld [vmem:[#allocation11 + $0x270] sm:$0xf]  ;;  %v4266_v2 = vld [vmem:[#allocation11 + $0x260] sm:$0xf] }
 0x256   : > { %v5639_v62 = vmax.f32 %v1846_v31, 0.0  ;;  %v1460_v16 = vadd.f32 %v5594_v5, %v1366_v48  ;;  %v4095_v31 = vor.u32 %v4607_v57, %v4092_v61  ;;  %v4652_v48 = vld [vmem:[#allocation11 + $0x264] sm:$0xf0]  ;;  %v4271_v57 = vor.u32 %v4651_v0, %v4268_v28 }
 0x257   : > { %v5644_v7 = vld [vmem:[#allocation3 + $0x30] sm:$0xff]  ;;  %2517 = vmatpush.bf16.msra.mxu0 %v4179_v4  ;;  %2337 = vmatpush.bf16.msrb.mxu2 %v4091_v33  ;;  %v4267_v27 = vor.u32 %v4652_v48, %v4266_v2  ;;  %v4236_v48 = vld [vmem:[#allocation11 + $0x228] sm:$0xf0] }
 0x258   : > { %1883 = vst [vmem:[#allocation3 + $0x41] sm:$0xff] %v5639_v62  ;;  %v1897_v50 = vpack.c.bf16 %v5644_v7, %v5641_v15  ;;  %v5650_v40 = vpack.c.bf16 %v5639_v62, %v1853_v37  ;;  %v4103_v37 = vor.u32 %v4609_v54, %v4100_v39  ;;  %2546 = vmatpush.bf16.msra.mxu1 %v4183_v53  ;;  %v1732_v11 = vpop.f32.mrf.mxu0 }
 0x259   : > { %v1821_v9 = vpop.f32.mrf.mxu1  ;;  %v1554_v13 = vadd.f32 %v1543_v12, %v1460_v16  ;;  %v4654_v12 = vld [vmem:[#allocation11 + $0x274] sm:$0xf0]  ;;  %v1640_v4 = vpop.f32.mrf.mxu3 }
 0x25a   : > { %v1835_v35 = vadd.f32 %v1821_v9, %v1741_v59  ;;  %2176 = vmatmul.bf16.gmra.mxu0 %v1897_v50  ;;  %2205 = vmatmul.bf16.gmra.mxu1 %v1897_v50  ;;  %v4163_v59 = vor.u32 %v4626_v25, %v4162_v17  ;;  %v4623_v50 = vld [vmem:[#allocation11 + $0x184] sm:$0xf]  ;;  %v1545_v9 = vpop.f32.mrf.mxu2  ;;  %v4275_v23 = vor.u32 %v4654_v12, %v4274_v49  ;;  %v4668_v12 = vld [vmem:[#allocation11 + $0x2e4] sm:$0xf0] }
 0x25b   : > { %2365 = vmatpush.bf16.msrb.mxu3 %v4103_v37  ;;  %2518 = vmatpush.bf16.msra.mxu0 %v4171_v18  ;;  %v1649_v55 = vadd.f32 %v1638_v56, %v1554_v13  ;;  %v1555_v32 = vadd.f32 %v1545_v9, %v1461_v43  ;;  %v4653_v37 = vld [vmem:[#allocation11 + $0x274] sm:$0xf]  ;;  %v4650_v13 = vld [vmem:[#allocation11 + $0x254] sm:$0xf0]  ;;  %v4250_v56 = vld [vmem:[#allocation11 + $0x240] sm:$0xf] }
 0x25c   : > { %v1847_v29 = vadd.f32 %v5607_v24, %v1835_v35  ;;  %2547 = vmatpush.bf16.msra.mxu1 %v4175_v14  ;;  %v4159_v35 = vor.u32 %v4623_v50, %v4156_v51  ;;  %v4279_v53 = vor.u32 %v4653_v37, %v4276_v52  ;;  %2696 = vmatpush.bf16.msra.mxu2 %v4275_v23  ;;  %v4338_v50 = vld [vmem:[#allocation11 + $0x2f0] sm:$0xf]  ;;  %v4670_v51 = vld [vmem:[#allocation11 + $0x2f4] sm:$0xf0]  ;;  %v4644_v23 = vld [vmem:[#allocation11 + $0x224] sm:$0xf0] }
 0x25d   : > { %v1743_v34 = vadd.f32 %v1732_v11, %v1649_v55  ;;  %v1650_v44 = vadd.f32 %v1640_v4, %v1555_v32  ;;  %v4669_v11 = vld [vmem:[#allocation11 + $0x2f4] sm:$0xf]  ;;  %v4242_v9 = vld [vmem:[#allocation11 + $0x230] sm:$0xf]  ;;  %v4646_v43 = vld [vmem:[#allocation11 + $0x234] sm:$0xf0] }
 0x25e   : > { %v1855_v3 = vmax.f32 %v1847_v29, 0.0  ;;  %v4244_v32 = vld [vmem:[#allocation11 + $0x238] sm:$0xf0]  ;;  %v4234_v4 = vld [vmem:[#allocation11 + $0x220] sm:$0xf] }
 0x25f   : > { %2366 = vmatpush.bf16.msrb.mxu3 %v4095_v31  ;;  %v5662_v42 = vld [vmem:[#allocation3 + $0x40] sm:$0xff]  ;;  %2519 = vmatpush.bf16.msra.mxu0 %v4163_v59  ;;  %v4643_v52 = vld [vmem:[#allocation11 + $0x224] sm:$0xf]  ;;  %v4235_v2 = vor.u32 %v4644_v23, %v4234_v4  ;;  %v4282_v4 = vld [vmem:[#allocation11 + $0x280] sm:$0xf] }
 0x260   : > { %1884 = vst [vmem:[#allocation3 + $0x51] sm:$0xff] %v1855_v3  ;;  %v1926_v45 = vpack.c.bf16 %v1855_v3, %v5639_v62  ;;  %v4624_v62 = vld [vmem:[#allocation11 + $0x184] sm:$0xf0]  ;;  %2548 = vmatpush.bf16.msra.mxu1 %v4167_v63  ;;  %v1734_v41 = vpop.f32.mrf.mxu0  ;;  %2697 = vmatpush.bf16.msra.mxu2 %v4267_v27  ;;  %v4252_v59 = vld [vmem:[#allocation11 + $0x248] sm:$0xf0]  ;;  %v4239_v28 = vor.u32 %v4643_v52, %v4236_v48 }
 0x261   : > { %v1823_v5 = vpop.f32.mrf.mxu1  ;;  %v4155_v30 = vor.u32 %v4624_v62, %v4154_v19  ;;  %v1744_v8 = vadd.f32 %v1734_v41, %v1650_v44  ;;  %v2221_v63 = vld [vmem:[#allocation3 + $0x2] sm:$0xff]  ;;  %v5680_v19 = vld [vmem:[#allocation3 + $0x12] sm:$0xff]  ;;  %v2412_v62 = vpack.c.bf16 %v5641_v15, %v5622_v21  ;;  %v4667_v21 = vld [vmem:[#allocation11 + $0x2e4] sm:$0xf] }
 0x262   : > { %v1836_v58 = vadd.f32 %v1823_v5, %v1742_v46  ;;  %2043 = vmatmul.bf16.gmra.mxu2 %v1926_v45  ;;  %2072 = vmatmul.bf16.gmra.mxu3 %v1926_v45  ;;  %v4258_v46 = vld [vmem:[#allocation11 + $0x250] sm:$0xf]  ;;  %v4649_v45 = vld [vmem:[#allocation11 + $0x254] sm:$0xf]  ;;  %v4332_v15 = vld [vmem:[#allocation11 + $0x2e8] sm:$0xf0] }
 0x263   : > { %2520 = vmatpush.bf16.msra.mxu0 %v4155_v30  ;;  %2725 = vmatpush.bf16.msra.mxu3 %v4279_v53  ;;  %v4259_v38 = vor.u32 %v4650_v13, %v4258_v46  ;;  %v4263_v5 = vor.u32 %v4649_v45, %v4260_v6  ;;  %v4339_v30 = vor.u32 %v4670_v51, %v4338_v50  ;;  %v4322_v44 = vld [vmem:[#allocation11 + $0x2d0] sm:$0xf]  ;;  %v4665_v41 = vld [vmem:[#allocation11 + $0x2d4] sm:$0xf]  ;;  %v4642_v45 = vld [vmem:[#allocation11 + $0x214] sm:$0xf0] }
 0x264   : > { %v1848_v20 = vadd.f32 %v5607_v24, %v1836_v58  ;;  %2549 = vmatpush.bf16.msra.mxu1 %v4159_v35  ;;  %v4647_v58 = vld [vmem:[#allocation11 + $0x244] sm:$0xf]  ;;  %v5685_v35 = vld [vmem:[#allocation3 + $0x32] sm:$0xff]  ;;  %v5687_v53 = vld [vmem:[#allocation3 + $0x22] sm:$0xff]  ;;  %v4335_v0 = vor.u32 %v4667_v21, %v4332_v15  ;;  %v2413_v46 = vpack.c.bf16 %v5662_v42, %v5644_v7 }
 0x265   : > { %2698 = vmatpush.bf16.msra.mxu2 %v4259_v38  ;;  %v4255_v55 = vor.u32 %v4647_v58, %v4252_v59  ;;  %v5691_v27 = vpack.c.bf16 %v5685_v35, %v5687_v53  ;;  %v4226_v13 = vld [vmem:[#allocation11 + $0x210] sm:$0xf]  ;;  %v4641_v38 = vld [vmem:[#allocation11 + $0x214] sm:$0xf]  ;;  %v4300_v50 = vld [vmem:[#allocation11 + $0x2a8] sm:$0xf0] }
 0x266   : > { %v1856_v36 = vmax.f32 %v1848_v20, 0.0  ;;  %v2229_v20 = vpack.c.bf16 %v5680_v19, %v2221_v63  ;;  %v4227_v6 = vor.u32 %v4642_v45, %v4226_v13  ;;  %v4292_v21 = vld [vmem:[#allocation11 + $0x298] sm:$0xf0]  ;;  %v4656_v23 = vld [vmem:[#allocation11 + $0x284] sm:$0xf0] }
 0x267   : > { %v5664_v54 = vld [vmem:[#allocation3 + $0x50] sm:$0xff]  ;;  %2726 = vmatpush.bf16.msra.mxu3 %v4271_v57  ;;  %2879 = vmatpush.bf16.msrb.mxu0 %v4339_v30  ;;  %v4220_v30 = vld [vmem:[#allocation11 + $0x208] sm:$0xf0]  ;;  %v4655_v52 = vld [vmem:[#allocation11 + $0x284] sm:$0xf] }
 0x268   : > { %1885 = vst [vmem:[#allocation3 + $0x61] sm:$0xff] %v1856_v36  ;;  %v1898_v39 = vpack.c.bf16 %v5664_v54, %v5662_v42  ;;  %v5668_v26 = vpack.c.bf16 %v1856_v36, %v1855_v3  ;;  %v4324_v57 = vld [vmem:[#allocation11 + $0x2d8] sm:$0xf0]  ;;  %v4660_v42 = vld [vmem:[#allocation11 + $0x2a4] sm:$0xf0] }
 0x269   : > { %v1826_v22 = vpop.f32.mrf.mxu1  ;;  %v5697_v58 = vld [vmem:[#allocation3 + $0x52] sm:$0xff]  ;;  %v4284_v48 = vld [vmem:[#allocation11 + $0x288] sm:$0xf0] }
 0x26a   : > { %v1837_v1 = vadd.f32 %v1826_v22, %v1743_v34  ;;  %2181 = vmatmul.bf16.gmra.mxu0 %v1898_v39  ;;  %2210 = vmatmul.bf16.gmra.mxu1 %v1898_v39  ;;  %v4243_v34 = vor.u32 %v4646_v43, %v4242_v9  ;;  %v4340_v39 = vld [vmem:[#allocation11 + $0x2f8] sm:$0xf0]  ;;  %v4330_v22 = vld [vmem:[#allocation11 + $0x2e0] sm:$0xf]  ;;  %v4640_v9 = vld [vmem:[#allocation11 + $0x204] sm:$0xf0] }
 0x26b   : > { %2727 = vmatpush.bf16.msra.mxu3 %v4263_v5  ;;  %v4343_v49 = vor.u32 %v4669_v11, %v4340_v39  ;;  %v4331_v37 = vor.u32 %v4668_v12, %v4330_v22  ;;  %v4662_v5 = vld [vmem:[#allocation11 + $0x2b4] sm:$0xf0]  ;;  %v4218_v11 = vld [vmem:[#allocation11 + $0x200] sm:$0xf]  ;;  %v4639_v43 = vld [vmem:[#allocation11 + $0x204] sm:$0xf] }
 0x26c   : > { %v1849_v29 = vadd.f32 %v5607_v24, %v1837_v1  ;;  %v5699_v39 = vld [vmem:[#allocation3 + $0x42] sm:$0xff]  ;;  %v4657_v12 = vld [vmem:[#allocation11 + $0x294] sm:$0xf] }
 0x26d   : > { %2908 = vmatpush.bf16.msrb.mxu1 %v4343_v49  ;;  %2880 = vmatpush.bf16.msrb.mxu0 %v4331_v37  ;;  %v5703_v49 = vpack.c.bf16 %v5697_v58, %v5699_v39  ;;  %v4295_v37 = vor.u32 %v4657_v12, %v4292_v21  ;;  %v4372_v21 = vld [vmem:[#allocation11 + $0x338] sm:$0xf0] }
 0x26e   : > { %v1857_v60 = vmax.f32 %v1849_v29, 0.0  ;;  %v4666_v29 = vld [vmem:[#allocation11 + $0x2d4] sm:$0xf0] }
 0x26f   : > { %v5672_v14 = vld [vmem:[#allocation3 + $0x60] sm:$0xff]  ;;  %2728 = vmatpush.bf16.msra.mxu3 %v4255_v55  ;;  %v4308_v55 = vld [vmem:[#allocation11 + $0x2b8] sm:$0xf0] }
 0x270   : > { %1886 = vst [vmem:[#allocation3 + $0x71] sm:$0xff] %v1857_v60  ;;  %v1927_v16 = vpack.c.bf16 %v1857_v60, %v1856_v36  ;;  %v4645_v36 = vld [vmem:[#allocation11 + $0x234] sm:$0xf] }
 0x271   : > { %v1828_v3 = vpop.f32.mrf.mxu1  ;;  %v4247_v1 = vor.u32 %v4645_v36, %v4244_v32  ;;  %2909 = vmatpush.bf16.msrb.mxu1 %v4335_v0  ;;  %v4219_v36 = vor.u32 %v4640_v9, %v4218_v11  ;;  %v4658_v32 = vld [vmem:[#allocation11 + $0x294] sm:$0xf0]  ;;  %v4402_v0 = vld [vmem:[#allocation11 + $0x370] sm:$0xf]  ;;  %v2778_v11 = vpack.c.bf16 %v5687_v53, %v5680_v19 }
 0x272   : > { %v1838_v33 = vadd.f32 %v1828_v3, %v1744_v8  ;;  %2048 = vmatmul.bf16.gmra.mxu2 %v1927_v16  ;;  %2077 = vmatmul.bf16.gmra.mxu3 %v1927_v16  ;;  %v4314_v8 = vld [vmem:[#allocation11 + $0x2c0] sm:$0xf]  ;;  %v4664_v16 = vld [vmem:[#allocation11 + $0x2c4] sm:$0xf0]  ;;  %v4327_v3 = vor.u32 %v4665_v41, %v4324_v57  ;;  %v4404_v57 = vld [vmem:[#allocation11 + $0x378] sm:$0xf0] }
 0x273   : > { %2729 = vmatpush.bf16.msra.mxu3 %v4247_v1  ;;  %v4223_v1 = vor.u32 %v4639_v43, %v4220_v30  ;;  %v4702_v30 = vld [vmem:[#allocation11 + $0x3f4] sm:$0xf0] }
 0x274   : > { %v1850_v61 = vadd.f32 %v5607_v24, %v1838_v33  ;;  %v4648_v24 = vld [vmem:[#allocation11 + $0x244] sm:$0xf0]  ;;  %v4315_v33 = vor.u32 %v4664_v16, %v4314_v8 }
 0x275   : > { %v4251_v47 = vor.u32 %v4648_v24, %v4250_v56  ;;  %2910 = vmatpush.bf16.msrb.mxu1 %v4327_v3  ;;  %v4228_v56 = vld [vmem:[#allocation11 + $0x218] sm:$0xf0]  ;;  %v4306_v24 = vld [vmem:[#allocation11 + $0x2b0] sm:$0xf] }
 0x276   : > { %v1858_v18 = vmax.f32 %v1850_v61, 0.0  ;;  %v4663_v61 = vld [vmem:[#allocation11 + $0x2c4] sm:$0xf]  ;;  %v4231_v59 = vor.u32 %v4641_v38, %v4228_v56  ;;  %v4307_v63 = vor.u32 %v4662_v5, %v4306_v24  ;;  %v5711_v3 = vld [vmem:[#allocation3 + $0x62] sm:$0xff]  ;;  %v4681_v56 = vld [vmem:[#allocation11 + $0x354] sm:$0xf] }
 0x277   : > { %v5674_v31 = vld [vmem:[#allocation3 + $0x70] sm:$0xff]  ;;  %2699 = vmatpush.bf16.msra.mxu2 %v4251_v47  ;;  %2730 = vmatpush.bf16.msra.mxu3 %v4239_v28  ;;  %v4661_v47 = vld [vmem:[#allocation11 + $0x2b4] sm:$0xf]  ;;  %v4386_v38 = vld [vmem:[#allocation11 + $0x350] sm:$0xf] }
 0x278   : > { %1887 = vst [vmem:[#allocation3 + $0x81] sm:$0xff] %v1858_v18  ;;  %v1899_v17 = vpack.c.bf16 %v5674_v31, %v5672_v14  ;;  %v5678_v25 = vpack.c.bf16 %v1858_v18, %v1857_v60  ;;  %v4323_v60 = vor.u32 %v4666_v29, %v4322_v44  ;;  %v4316_v18 = vld [vmem:[#allocation11 + $0x2c8] sm:$0xf0]  ;;  %v4311_v7 = vor.u32 %v4661_v47, %v4308_v55  ;;  %v4686_v28 = vld [vmem:[#allocation11 + $0x374] sm:$0xf0]  ;;  %v5709_v16 = vld [vmem:[#allocation3 + $0x72] sm:$0xff] }
 0x279   : > { %v4287_v44 = vor.u32 %v4655_v52, %v4284_v48  ;;  %v2414_v29 = vpack.c.bf16 %v5672_v14, %v5664_v54  ;;  %v4403_v41 = vor.u32 %v4686_v28, %v4402_v0  ;;  %v5715_v54 = vpack.c.bf16 %v5709_v16, %v5711_v3  ;;  %v4388_v5 = vld [vmem:[#allocation11 + $0x358] sm:$0xf0]  ;;  %v4680_v47 = vld [vmem:[#allocation11 + $0x344] sm:$0xf0]  ;;  %v4679_v55 = vld [vmem:[#allocation11 + $0x344] sm:$0xf] }
 0x27a   : > { %2186 = vmatmul.bf16.gmra.mxu0 %v1899_v17  ;;  %2215 = vmatmul.bf16.gmra.mxu1 %v1899_v17  ;;  %v4319_v17 = vor.u32 %v4663_v61, %v4316_v18  ;;  %v4684_v61 = vld [vmem:[#allocation11 + $0x364] sm:$0xf0]  ;;  %v4683_v18 = vld [vmem:[#allocation11 + $0x364] sm:$0xf] }
 0x27b   : > { %2700 = vmatpush.bf16.msra.mxu2 %v4243_v34  ;;  %2881 = vmatpush.bf16.msrb.mxu0 %v4323_v60  ;;  %v4290_v34 = vld [vmem:[#allocation11 + $0x290] sm:$0xf]  ;;  %v4685_v60 = vld [vmem:[#allocation11 + $0x374] sm:$0xf]  ;;  %v4700_v52 = vld [vmem:[#allocation11 + $0x3e4] sm:$0xf0] }
 0x27c   : > { %2911 = vmatpush.bf16.msrb.mxu1 %v4319_v17  ;;  %2731 = vmatpush.bf16.msra.mxu3 %v4231_v59  ;;  %v4291_v15 = vor.u32 %v4658_v32, %v4290_v34  ;;  %v4407_v8 = vor.u32 %v4685_v60, %v4404_v57  ;;  %v4396_v17 = vld [vmem:[#allocation11 + $0x368] sm:$0xf0]  ;;  %v4391_v59 = vor.u32 %v4681_v56, %v4388_v5  ;;  %v4701_v34 = vld [vmem:[#allocation11 + $0x3f4] sm:$0xf]  ;;  %v4370_v32 = vld [vmem:[#allocation11 + $0x330] sm:$0xf] }
 0x27d   : > { %v4362_v60 = vld [vmem:[#allocation11 + $0x320] sm:$0xf]  ;;  %v4675_v57 = vld [vmem:[#allocation11 + $0x324] sm:$0xf] }
 0x27f   : > { %2701 = vmatpush.bf16.msra.mxu2 %v4235_v2  ;;  %2882 = vmatpush.bf16.msrb.mxu0 %v4315_v33  ;;  %v4283_v2 = vor.u32 %v4656_v23, %v4282_v4  ;;  %v4394_v33 = vld [vmem:[#allocation11 + $0x360] sm:$0xf]  ;;  %v5719_v13 = vld [vmem:[#allocation3 + $0x80] sm:$0xff] }
 0x280   : > { %2912 = vmatpush.bf16.msrb.mxu1 %v4311_v7  ;;  %2732 = vmatpush.bf16.msra.mxu3 %v4223_v1  ;;  %v4395_v14 = vor.u32 %v4684_v61, %v4394_v33  ;;  %v2415_v45 = vpack.c.bf16 %v5719_v13, %v5674_v31  ;;  %v4380_v7 = vld [vmem:[#allocation11 + $0x348] sm:$0xf0]  ;;  %v4458_v23 = vld [vmem:[#allocation11 + $0x3e0] sm:$0xf] }
 0x281   : > { %v4459_v48 = vor.u32 %v4700_v52, %v4458_v23  ;;  %v4428_v23 = vld [vmem:[#allocation11 + $0x3a8] sm:$0xf0]  ;;  %v4346_v52 = vld [vmem:[#allocation11 + $0x300] sm:$0xf] }
 0x282   : > { %2338 = vmatmul.bf16.vlgmr.msrb.gmra.mxu2 %v2229_v20  ;;  %2367 = vmatmul.bf16.vlgmr.msrb.gmra.mxu3 %v2229_v20  ;;  %v4298_v20 = vld [vmem:[#allocation11 + $0x2a0] sm:$0xf] }
 0x283   : > { %2702 = vmatpush.bf16.msra.mxu2 %v4227_v6  ;;  %2883 = vmatpush.bf16.msrb.mxu0 %v4307_v63  ;;  %v4299_v51 = vor.u32 %v4660_v42, %v4298_v20  ;;  %v4682_v6 = vld [vmem:[#allocation11 + $0x354] sm:$0xf0]  ;;  %v4378_v63 = vld [vmem:[#allocation11 + $0x340] sm:$0xf]  ;;  %v4383_v42 = vor.u32 %v4679_v55, %v4380_v7 }
 0x284   : > { %3092 = vmatpush.bf16.msrb.mxu3 %v4407_v8  ;;  %v4387_v24 = vor.u32 %v4682_v6, %v4386_v38  ;;  %v4379_v20 = vor.u32 %v4680_v47, %v4378_v63  ;;  %v4697_v38 = vld [vmem:[#allocation11 + $0x3d4] sm:$0xf]  ;;  %v4452_v6 = vld [vmem:[#allocation11 + $0x3d8] sm:$0xf0]  ;;  %v4696_v63 = vld [vmem:[#allocation11 + $0x3c4] sm:$0xf0] }
 0x285   : > { %v4455_v56 = vor.u32 %v4697_v38, %v4452_v6  ;;  %v4695_v47 = vld [vmem:[#allocation11 + $0x3c4] sm:$0xf] }
 0x287   : > { %2703 = vmatpush.bf16.msra.mxu2 %v4219_v36  ;;  %2884 = vmatpush.bf16.msrb.mxu0 %v4299_v51  ;;  %v4466_v36 = vld [vmem:[#allocation11 + $0x3f0] sm:$0xf] }
 0x288   : > { %v4467_v1 = vor.u32 %v4702_v30, %v4466_v36  ;;  %v4673_v36 = vld [vmem:[#allocation11 + $0x314] sm:$0xf] }
 0x28a   : > { %2521 = vmatmul.bf16.vlgmr.msra.gmra.mxu0 %v2412_v62  ;;  %2550 = vmatmul.bf16.vlgmr.msra.gmra.mxu1 %v2412_v62  ;;  %v4659_v62 = vld [vmem:[#allocation11 + $0x2a4] sm:$0xf] }
 0x28b   : > { %v4303_v22 = vor.u32 %v4659_v62, %v4300_v50  ;;  %2885 = vmatpush.bf16.msrb.mxu0 %v4291_v15  ;;  %3063 = vmatpush.bf16.msrb.mxu2 %v4403_v41  ;;  %v4468_v15 = vld [vmem:[#allocation11 + $0x3f8] sm:$0xf0]  ;;  %v4676_v41 = vld [vmem:[#allocation11 + $0x324] sm:$0xf0] }
 0x28c   : > { %v4471_v4 = vor.u32 %v4701_v34, %v4468_v15  ;;  %v4363_v61 = vor.u32 %v4676_v41, %v4362_v60  ;;  %v4356_v34 = vld [vmem:[#allocation11 + $0x318] sm:$0xf0]  ;;  %v4348_v60 = vld [vmem:[#allocation11 + $0x308] sm:$0xf0]  ;;  %v4418_v41 = vld [vmem:[#allocation11 + $0x390] sm:$0xf] }
 0x28d   : > { %2913 = vmatpush.bf16.msrb.mxu1 %v4303_v22  ;;  %v4677_v22 = vld [vmem:[#allocation11 + $0x334] sm:$0xf] }
 0x28f   : > { %2886 = vmatpush.bf16.msrb.mxu0 %v4283_v2  ;;  %3064 = vmatpush.bf16.msrb.mxu2 %v4395_v14  ;;  %v4699_v2 = vld [vmem:[#allocation11 + $0x3e4] sm:$0xf]  ;;  %v4450_v14 = vld [vmem:[#allocation11 + $0x3d0] sm:$0xf] }
 0x291   : > { %2914 = vmatpush.bf16.msrb.mxu1 %v4295_v37  ;;  %v4375_v37 = vor.u32 %v4677_v22, %v4372_v21  ;;  %v4359_v22 = vor.u32 %v4673_v36, %v4356_v34  ;;  %v4436_v21 = vld [vmem:[#allocation11 + $0x3b8] sm:$0xf0] }
 0x292   : > { %2343 = vmatmul.bf16.gmra.mxu2 %v5691_v27  ;;  %2372 = vmatmul.bf16.gmra.mxu3 %v5691_v27 }
 0x293   : > { %3065 = vmatpush.bf16.msrb.mxu2 %v4387_v24  ;;  %3246 = vmatpush.bf16.msra.mxu0 %v4467_v1 }
 0x295   : > { %2915 = vmatpush.bf16.msrb.mxu1 %v4287_v44  ;;  %v4460_v44 = vld [vmem:[#allocation11 + $0x3e8] sm:$0xf0] }
 0x296   : > { %v4463_v28 = vor.u32 %v4699_v2, %v4460_v44  ;;  %v4672_v2 = vld [vmem:[#allocation11 + $0x304] sm:$0xf0] }
 0x297   : > { %3066 = vmatpush.bf16.msrb.mxu2 %v4379_v20  ;;  %3247 = vmatpush.bf16.msra.mxu0 %v4459_v48  ;;  %v4444_v20 = vld [vmem:[#allocation11 + $0x3c8] sm:$0xf0] }
 0x299   : > { %3275 = vmatpush.bf16.msra.mxu1 %v4471_v4  ;;  %v4692_v4 = vld [vmem:[#allocation11 + $0x3a4] sm:$0xf0] }
 0x29a   : > { %2526 = vmatmul.bf16.gmra.mxu0 %v2413_v46  ;;  %2555 = vmatmul.bf16.gmra.mxu1 %v2413_v46  ;;  %v4399_v46 = vor.u32 %v4683_v18, %v4396_v17  ;;  %v4364_v18 = vld [vmem:[#allocation11 + $0x328] sm:$0xf0]  ;;  %v4698_v17 = vld [vmem:[#allocation11 + $0x3d4] sm:$0xf0] }
 0x29c   : > { %3093 = vmatpush.bf16.msrb.mxu3 %v4399_v46  ;;  %v4367_v46 = vor.u32 %v4675_v57, %v4364_v18 }
 0x29d   : > { %3276 = vmatpush.bf16.msra.mxu1 %v4463_v28  ;;  %v4671_v28 = vld [vmem:[#allocation11 + $0x304] sm:$0xf] }
 0x29e   : > { %v4351_v18 = vor.u32 %v4671_v28, %v4348_v60  ;;  %v4516_v60 = vld [vmem:[#allocation11 + $0x458] sm:$0xf0] }
 0x2a0   : > { %3094 = vmatpush.bf16.msrb.mxu3 %v4391_v59  ;;  %v4442_v59 = vld [vmem:[#allocation11 + $0x3c0] sm:$0xf] }
 0x2a1   : > { %v4443_v55 = vor.u32 %v4696_v63, %v4442_v59  ;;  %3277 = vmatpush.bf16.msra.mxu1 %v4455_v56  ;;  %v4687_v59 = vld [vmem:[#allocation11 + $0x384] sm:$0xf] }
 0x2a2   : > { %2348 = vmatmul.bf16.gmra.mxu2 %v5703_v49  ;;  %2377 = vmatmul.bf16.gmra.mxu3 %v5703_v49 }
 0x2a4   : > { %3095 = vmatpush.bf16.msrb.mxu3 %v4383_v42 }
 0x2a8   : > { %3096 = vmatpush.bf16.msrb.mxu3 %v4375_v37  ;;  %v4426_v37 = vld [vmem:[#allocation11 + $0x3a0] sm:$0xf] }
 0x2aa   : > { %2531 = vmatmul.bf16.gmra.mxu0 %v2414_v29  ;;  %2560 = vmatmul.bf16.gmra.mxu1 %v2414_v29 }
 0x2ac   : > { %3097 = vmatpush.bf16.msrb.mxu3 %v4367_v46  ;;  %v4420_v46 = vld [vmem:[#allocation11 + $0x398] sm:$0xf0] }
 0x2b0   : > { %3098 = vmatpush.bf16.msrb.mxu3 %v4359_v22 }
 0x2b2   : > { %2353 = vmatmul.bf16.gmra.mxu2 %v5715_v54  ;;  %2382 = vmatmul.bf16.gmra.mxu3 %v5715_v54 }
 0x2b4   : > { %3099 = vmatpush.bf16.msrb.mxu3 %v4351_v18 }
 0x2ba   : > { %2536 = vmatmul.bf16.gmra.mxu0 %v2415_v45  ;;  %2565 = vmatmul.bf16.gmra.mxu1 %v2415_v45  ;;  %v4451_v45 = vor.u32 %v4698_v17, %v4450_v14  ;;  %v4690_v14 = vld [vmem:[#allocation11 + $0x394] sm:$0xf0]  ;;  %v4689_v17 = vld [vmem:[#allocation11 + $0x394] sm:$0xf] }
 0x2bb   : > { %v4423_v38 = vor.u32 %v4689_v17, %v4420_v46  ;;  %v2955_v17 = vld [vmem:[#allocation3 + $0x30] sm:$0xff]  ;;  %v2954_v46 = vld [vmem:[#allocation3 + $0x20] sm:$0xff] }
 0x2bc   : > { %3248 = vmatpush.bf16.msra.mxu0 %v4451_v45  ;;  %v4419_v45 = vor.u32 %v4690_v14, %v4418_v41 }
 0x2c0   : > { %3249 = vmatpush.bf16.msra.mxu0 %v4443_v55 }
 0x2c2   : > { %2704 = vmatmul.bf16.vlgmr.msra.gmra.mxu2 %v5626_v10  ;;  %2733 = vmatmul.bf16.vlgmr.msra.gmra.mxu3 %v5626_v10  ;;  %v4678_v10 = vld [vmem:[#allocation11 + $0x334] sm:$0xf0] }
 0x2c3   : > { %v4371_v12 = vor.u32 %v4678_v10, %v4370_v32  ;;  %v4434_v32 = vld [vmem:[#allocation11 + $0x3b0] sm:$0xf]  ;;  %v4694_v10 = vld [vmem:[#allocation11 + $0x3b4] sm:$0xf0] }
 0x2c4   : > { %v4435_v1 = vor.u32 %v4694_v10, %v4434_v32 }
 0x2c5   : > { %v2034_v31 = vpop.f32.mrf.mxu2  ;;  %v2063_v62 = vpop.f32.mrf.mxu3  ;;  %3067 = vmatpush.bf16.msrb.mxu2 %v4371_v12  ;;  %v4693_v12 = vld [vmem:[#allocation11 + $0x3b4] sm:$0xf] }
 0x2c6   : > { %3250 = vmatpush.bf16.msra.mxu0 %v4435_v1  ;;  %v4716_v1 = vld [vmem:[#allocation11 + $0x464] sm:$0xf0] }
 0x2c7   : > { %v2172_v50 = vpop.f32.mrf.mxu0  ;;  %v2201_v51 = vpop.f32.mrf.mxu1 }
 0x2c8   : > { %v5727_v9 = vadd.f32 %v2172_v50, %v2034_v31  ;;  %v5729_v43 = vadd.f32 %v2201_v51, %v2063_v62  ;;  %v4447_v31 = vor.u32 %v4695_v47, %v4444_v20  ;;  %v2779_v62 = vpack.c.bf16 %v5699_v39, %v5685_v35  ;;  %v4354_v51 = vld [vmem:[#allocation11 + $0x310] sm:$0xf]  ;;  %v4412_v47 = vld [vmem:[#allocation11 + $0x388] sm:$0xf0] }
 0x2c9   : > { %3068 = vmatpush.bf16.msrb.mxu2 %v4363_v61  ;;  %v4439_v35 = vor.u32 %v4693_v12, %v4436_v21  ;;  %v4715_v12 = vld [vmem:[#allocation11 + $0x464] sm:$0xf] }
 0x2ca   : > { %2887 = vmatmul.bf16.vlgmr.msrb.gmra.mxu0 %v2778_v11  ;;  %2916 = vmatmul.bf16.vlgmr.msrb.gmra.mxu1 %v2778_v11  ;;  %v4674_v11 = vld [vmem:[#allocation11 + $0x314] sm:$0xf0] }
 0x2cb   : > { %v4355_v30 = vor.u32 %v4674_v11, %v4354_v51  ;;  %3278 = vmatpush.bf16.msra.mxu1 %v4447_v31  ;;  %v4718_v51 = vld [vmem:[#allocation11 + $0x474] sm:$0xf0]  ;;  %v4717_v11 = vld [vmem:[#allocation11 + $0x474] sm:$0xf] }
 0x2cd   : > { %v2036_v19 = vpop.f32.mrf.mxu2  ;;  %v2065_v53 = vpop.f32.mrf.mxu3  ;;  %3069 = vmatpush.bf16.msrb.mxu2 %v4355_v30  ;;  %v4532_v30 = vld [vmem:[#allocation11 + $0x478] sm:$0xf0] }
 0x2ce   : > { %v4535_v34 = vor.u32 %v4717_v11, %v4532_v30  ;;  %v3137_v30 = vld [vmem:[#allocation3 + $0x21] sm:$0xff] }
 0x2cf   : > { %v2174_v29 = vpop.f32.mrf.mxu0  ;;  %v2203_v0 = vpop.f32.mrf.mxu1  ;;  %3279 = vmatpush.bf16.msra.mxu1 %v4439_v35 }
 0x2d0   : > { %v5731_v8 = vadd.f32 %v2174_v29, %v2036_v19  ;;  %v5733_v33 = vadd.f32 %v2203_v0, %v2065_v53  ;;  %v4691_v19 = vld [vmem:[#allocation11 + $0x3a4] sm:$0xf]  ;;  %v4427_v53 = vor.u32 %v4692_v4, %v4426_v37  ;;  %v4347_v0 = vor.u32 %v4672_v2, %v4346_v52  ;;  %3458 = vmatpush.bf16.msra.mxu3 %v4535_v34  ;;  %v5761_v4 = vld [vmem:[#allocation3 + $0x82] sm:$0xff] }
 0x2d1   : > { %v4431_v29 = vor.u32 %v4691_v19, %v4428_v23  ;;  %v2781_v2 = vpack.c.bf16 %v5761_v4, %v5709_v16 }
 0x2d2   : > { %2709 = vmatmul.bf16.gmra.mxu2 %v5650_v40  ;;  %2738 = vmatmul.bf16.gmra.mxu3 %v5650_v40 }
 0x2d3   : > { %3251 = vmatpush.bf16.msra.mxu0 %v4427_v53  ;;  %3070 = vmatpush.bf16.msrb.mxu2 %v4347_v0  ;;  %v4714_v0 = vld [vmem:[#allocation11 + $0x454] sm:$0xf0] }
 0x2d4   : > { %3280 = vmatpush.bf16.msra.mxu1 %v4431_v29  ;;  %v4514_v29 = vld [vmem:[#allocation11 + $0x450] sm:$0xf] }
 0x2d5   : > { %v2039_v24 = vpop.f32.mrf.mxu2  ;;  %v2068_v5 = vpop.f32.mrf.mxu3  ;;  %v4515_v28 = vor.u32 %v4714_v0, %v4514_v29  ;;  %v4708_v29 = vld [vmem:[#allocation11 + $0x424] sm:$0xf0]  ;;  %v4707_v0 = vld [vmem:[#allocation11 + $0x424] sm:$0xf] }
 0x2d7   : > { %v2177_v7 = vpop.f32.mrf.mxu0  ;;  %v2206_v42 = vpop.f32.mrf.mxu1  ;;  %3252 = vmatpush.bf16.msra.mxu0 %v4419_v45 }
 0x2d8   : > { %v5739_v40 = vadd.f32 %v2177_v7, %v2039_v24  ;;  %v5741_v50 = vadd.f32 %v2206_v42, %v2068_v5  ;;  %v4410_v24 = vld [vmem:[#allocation11 + $0x380] sm:$0xf]  ;;  %v4688_v5 = vld [vmem:[#allocation11 + $0x384] sm:$0xf0]  ;;  %3281 = vmatpush.bf16.msra.mxu1 %v4423_v38  ;;  %v4415_v7 = vor.u32 %v4687_v59, %v4412_v47  ;;  %v2780_v42 = vpack.c.bf16 %v5711_v3, %v5697_v58  ;;  %v4508_v47 = vld [vmem:[#allocation11 + $0x448] sm:$0xf0] }
 0x2d9   : > { %v4411_v63 = vor.u32 %v4688_v5, %v4410_v24  ;;  %v4522_v3 = vld [vmem:[#allocation11 + $0x460] sm:$0xf]  ;;  %v2962_v59 = vpack.c.bf16 %v2955_v17, %v2954_v46 }
 0x2da   : > { %2892 = vmatmul.bf16.gmra.mxu0 %v2779_v62  ;;  %2921 = vmatmul.bf16.gmra.mxu1 %v2779_v62  ;;  %v4530_v62 = vld [vmem:[#allocation11 + $0x470] sm:$0xf]  ;;  %v4506_v38 = vld [vmem:[#allocation11 + $0x440] sm:$0xf] }
 0x2db   : > { %3253 = vmatpush.bf16.msra.mxu0 %v4411_v63  ;;  %v4531_v36 = vor.u32 %v4718_v51, %v4530_v62 }
 0x2dc   : > { %3282 = vmatpush.bf16.msra.mxu1 %v4415_v7 }
 0x2dd   : > { %v2041_v39 = vpop.f32.mrf.mxu2  ;;  %v2070_v15 = vpop.f32.mrf.mxu3  ;;  %3429 = vmatpush.bf16.msra.mxu2 %v4531_v36 }
 0x2df   : > { %v2179_v48 = vpop.f32.mrf.mxu0  ;;  %v2208_v44 = vpop.f32.mrf.mxu1 }
 0x2e0   : > { %v5743_v57 = vadd.f32 %v2179_v48, %v2041_v39  ;;  %v5745_v61 = vadd.f32 %v2208_v44, %v2070_v15  ;;  %v4523_v39 = vor.u32 %v4716_v1, %v4522_v3  ;;  %v4524_v15 = vld [vmem:[#allocation11 + $0x468] sm:$0xf0]  ;;  %v4709_v3 = vld [vmem:[#allocation11 + $0x434] sm:$0xf] }
 0x2e1   : > { %v4527_v37 = vor.u32 %v4715_v12, %v4524_v15  ;;  %v4500_v12 = vld [vmem:[#allocation11 + $0x438] sm:$0xf0] }
 0x2e2   : > { %2714 = vmatmul.bf16.gmra.mxu2 %v5668_v26  ;;  %2743 = vmatmul.bf16.gmra.mxu3 %v5668_v26 }
 0x2e3   : > { %3430 = vmatpush.bf16.msra.mxu2 %v4523_v39  ;;  %3459 = vmatpush.bf16.msra.mxu3 %v4527_v37  ;;  %v4503_v39 = vor.u32 %v4709_v3, %v4500_v12  ;;  %v2957_v37 = vld [vmem:[#allocation3 + $0x50] sm:$0xff]  ;;  %v4704_v3 = vld [vmem:[#allocation11 + $0x404] sm:$0xf0] }
 0x2e5   : > { %v2044_v6 = vpop.f32.mrf.mxu2  ;;  %v2073_v56 = vpop.f32.mrf.mxu3 }
 0x2e7   : > { %v2182_v55 = vpop.f32.mrf.mxu0  ;;  %v2211_v20 = vpop.f32.mrf.mxu1  ;;  %3431 = vmatpush.bf16.msra.mxu2 %v4515_v28 }
 0x2e8   : > { %v5751_v31 = vadd.f32 %v2182_v55, %v2044_v6  ;;  %v5753_v26 = vadd.f32 %v2211_v20, %v2073_v56  ;;  %v4712_v6 = vld [vmem:[#allocation11 + $0x444] sm:$0xf0]  ;;  %v4711_v56 = vld [vmem:[#allocation11 + $0x444] sm:$0xf]  ;;  %v3138_v20 = vld [vmem:[#allocation3 + $0x31] sm:$0xff] }
 0x2e9   : > { %v4507_v63 = vor.u32 %v4712_v6, %v4506_v38  ;;  %v4511_v55 = vor.u32 %v4711_v56, %v4508_v47  ;;  %v3145_v34 = vpack.c.bf16 %v3138_v20, %v3137_v30  ;;  %v3139_v6 = vld [vmem:[#allocation3 + $0x41] sm:$0xff]  ;;  %v4705_v20 = vld [vmem:[#allocation11 + $0x414] sm:$0xf] }
 0x2ea   : > { %2897 = vmatmul.bf16.gmra.mxu0 %v2780_v42  ;;  %2926 = vmatmul.bf16.gmra.mxu1 %v2780_v42  ;;  %v4482_v47 = vld [vmem:[#allocation11 + $0x410] sm:$0xf] }
 0x2eb   : > { %3432 = vmatpush.bf16.msra.mxu2 %v4507_v63  ;;  %v2958_v30 = vld [vmem:[#allocation3 + $0x60] sm:$0xff] }
 0x2ed   : > { %v2046_v32 = vpop.f32.mrf.mxu2  ;;  %v2075_v10 = vpop.f32.mrf.mxu3 }
 0x2ef   : > { %v2184_v22 = vpop.f32.mrf.mxu0  ;;  %v2213_v58 = vpop.f32.mrf.mxu1 }
 0x2f0   : > { %v5755_v21 = vadd.f32 %v2184_v22, %v2046_v32  ;;  %v5757_v35 = vadd.f32 %v2213_v58, %v2075_v10  ;;  %v4498_v22 = vld [vmem:[#allocation11 + $0x430] sm:$0xf]  ;;  %v4710_v58 = vld [vmem:[#allocation11 + $0x434] sm:$0xf0] }
 0x2f1   : > { %v4499_v1 = vor.u32 %v4710_v58, %v4498_v22  ;;  %v4474_v58 = vld [vmem:[#allocation11 + $0x400] sm:$0xf] }
 0x2f2   : > { %2719 = vmatmul.bf16.gmra.mxu2 %v5678_v25  ;;  %2748 = vmatmul.bf16.gmra.mxu3 %v5678_v25  ;;  %v4713_v25 = vld [vmem:[#allocation11 + $0x454] sm:$0xf] }
 0x2f3   : > { %v4519_v41 = vor.u32 %v4713_v25, %v4516_v60  ;;  %3433 = vmatpush.bf16.msra.mxu2 %v4499_v1  ;;  %v4492_v60 = vld [vmem:[#allocation11 + $0x428] sm:$0xf0]  ;;  %v4703_v1 = vld [vmem:[#allocation11 + $0x404] sm:$0xf] }
 0x2f5   : > { %v2049_v19 = vpop.f32.mrf.mxu2  ;;  %v2078_v53 = vpop.f32.mrf.mxu3  ;;  %3460 = vmatpush.bf16.msra.mxu3 %v4519_v41 }
 0x2f7   : > { %v2187_v23 = vpop.f32.mrf.mxu0  ;;  %v2216_v52 = vpop.f32.mrf.mxu1 }
 0x2f8   : > { %v5765_v48 = vadd.f32 %v2187_v23, %v2049_v19  ;;  %v5767_v44 = vadd.f32 %v2216_v52, %v2078_v53  ;;  %v2956_v53 = vld [vmem:[#allocation3 + $0x40] sm:$0xff] }
 0x2f9   : > { %3461 = vmatpush.bf16.msra.mxu3 %v4511_v55  ;;  %v2963_v25 = vpack.c.bf16 %v2957_v37, %v2956_v53  ;;  %v4706_v55 = vld [vmem:[#allocation11 + $0x414] sm:$0xf0] }
 0x2fa   : > { %2902 = vmatmul.bf16.gmra.mxu0 %v2781_v2  ;;  %2931 = vmatmul.bf16.gmra.mxu1 %v2781_v2  ;;  %v4490_v2 = vld [vmem:[#allocation11 + $0x420] sm:$0xf] }
 0x2fb   : > { %v4491_v28 = vor.u32 %v4708_v29, %v4490_v2  ;;  %v3141_v29 = vld [vmem:[#allocation3 + $0x61] sm:$0xff] }
 0x2fd   : > { %v2051_v18 = vpop.f32.mrf.mxu2  ;;  %v2080_v14 = vpop.f32.mrf.mxu3  ;;  %3462 = vmatpush.bf16.msra.mxu3 %v4503_v39  ;;  %3434 = vmatpush.bf16.msra.mxu2 %v4491_v28  ;;  %v4475_v39 = vor.u32 %v4704_v3, %v4474_v58 }
 0x2ff   : > { %v2189_v45 = vpop.f32.mrf.mxu0  ;;  %v2218_v16 = vpop.f32.mrf.mxu1 }
 0x300   : > { %v5769_v24 = vadd.f32 %v2189_v45, %v2051_v18  ;;  %v5771_v5 = vadd.f32 %v2218_v16, %v2080_v14  ;;  %v4495_v14 = vor.u32 %v4707_v0, %v4492_v60 }
 0x302   : > { %3071 = vmatmul.bf16.vlgmr.msrb.gmra.mxu2 %v2962_v59  ;;  %3100 = vmatmul.bf16.vlgmr.msrb.gmra.mxu3 %v2962_v59 }
 0x303   : > { %3463 = vmatpush.bf16.msra.mxu3 %v4495_v14 }
 0x305   : > { %v2339_v7 = vpop.f32.mrf.mxu2  ;;  %v2368_v42 = vpop.f32.mrf.mxu3 }
 0x306   : > { %v2388_v62 = vadd.f32 %v2339_v7, %v5727_v9  ;;  %v2389_v51 = vadd.f32 %v2368_v42, %v5729_v43  ;;  %v4483_v7 = vor.u32 %v4706_v55, %v4482_v47  ;;  %v4484_v42 = vld [vmem:[#allocation11 + $0x418] sm:$0xf0] }
 0x307   : > { %v2522_v11 = vpop.f32.mrf.mxu0  ;;  %v2551_v36 = vpop.f32.mrf.mxu1 }
 0x308   : > { %v5775_v32 = vadd.f32 %v2522_v11, %v2388_v62  ;;  %v5777_v10 = vadd.f32 %v2551_v36, %v2389_v51  ;;  %v4487_v62 = vor.u32 %v4705_v20, %v4484_v42  ;;  %v2959_v11 = vld [vmem:[#allocation3 + $0x70] sm:$0xff]  ;;  %3435 = vmatpush.bf16.msra.mxu2 %v4483_v7 }
 0x309   : > { %v2964_v12 = vpack.c.bf16 %v2959_v11, %v2958_v30 }
 0x30a   : > { %3254 = vmatmul.bf16.vlgmr.msra.gmra.mxu0 %v3145_v34  ;;  %3283 = vmatmul.bf16.vlgmr.msra.gmra.mxu1 %v3145_v34 }
 0x30b   : > { %3464 = vmatpush.bf16.msra.mxu3 %v4487_v62 }
 0x30c   : > { %3436 = vmatpush.bf16.msra.mxu2 %v4475_v39 }
 0x30d   : > { %v2341_v15 = vpop.f32.mrf.mxu2  ;;  %v2370_v9 = vpop.f32.mrf.mxu3 }
 0x30e   : > { %v2390_v43 = vadd.f32 %v2341_v15, %v5731_v8  ;;  %v2391_v19 = vadd.f32 %v2370_v9, %v5733_v33  ;;  %v3140_v8 = vld [vmem:[#allocation3 + $0x51] sm:$0xff]  ;;  %v4476_v15 = vld [vmem:[#allocation11 + $0x408] sm:$0xf0] }
 0x30f   : > { %v2524_v23 = vpop.f32.mrf.mxu0  ;;  %v2553_v52 = vpop.f32.mrf.mxu1  ;;  %v3146_v56 = vpack.c.bf16 %v3140_v8, %v3139_v6  ;;  %v3144_v6 = vld [vmem:[#allocation3 + $0x91] sm:$0xff] }
 0x310   : > { %v5781_v41 = vadd.f32 %v2524_v23, %v2390_v43  ;;  %v5783_v18 = vadd.f32 %v2553_v52, %v2391_v19  ;;  %v4479_v43 = vor.u32 %v4703_v1, %v4476_v15 }
 0x312   : > { %3076 = vmatmul.bf16.gmra.mxu2 %v2963_v25  ;;  %3105 = vmatmul.bf16.gmra.mxu3 %v2963_v25 }
 0x313   : > { %3465 = vmatpush.bf16.msra.mxu3 %v4479_v43 }
 0x315   : > { %v2344_v33 = vpop.f32.mrf.mxu2  ;;  %v2373_v17 = vpop.f32.mrf.mxu3 }
 0x316   : > { %v2392_v46 = vadd.f32 %v2344_v33, %v5739_v40  ;;  %v2393_v45 = vadd.f32 %v2373_v17, %v5741_v50 }
 0x317   : > { %v2527_v16 = vpop.f32.mrf.mxu0  ;;  %v2556_v38 = vpop.f32.mrf.mxu1 }
 0x318   : > { %v5787_v59 = vadd.f32 %v2527_v16, %v2392_v46  ;;  %v5789_v63 = vadd.f32 %v2556_v38, %v2393_v45  ;;  %v4798_v46 = vld [vmem:[#allocation3] sm:$0xff] }
 0x319   : > { %v3143_v38 = vld [vmem:[#allocation3 + $0x81] sm:$0xff] }
 0x31a   : > { %3259 = vmatmul.bf16.gmra.mxu0 %v3146_v56  ;;  %3288 = vmatmul.bf16.gmra.mxu1 %v3146_v56 }
 0x31d   : > { %v2346_v51 = vpop.f32.mrf.mxu2  ;;  %v2375_v40 = vpop.f32.mrf.mxu3 }
 0x31e   : > { %v2394_v50 = vadd.f32 %v2346_v51, %v5743_v57  ;;  %v2395_v36 = vadd.f32 %v2375_v40, %v5745_v61  ;;  %v3142_v57 = vld [vmem:[#allocation3 + $0x71] sm:$0xff] }
 0x31f   : > { %v2529_v34 = vpop.f32.mrf.mxu0  ;;  %v2558_v22 = vpop.f32.mrf.mxu1  ;;  %v3147_v0 = vpack.c.bf16 %v3142_v57, %v3141_v29 }
 0x320   : > { %v5793_v9 = vadd.f32 %v2529_v34, %v2394_v50  ;;  %v5795_v37 = vadd.f32 %v2558_v22, %v2395_v36 }
 0x322   : > { %3081 = vmatmul.bf16.gmra.mxu2 %v2964_v12  ;;  %3110 = vmatmul.bf16.gmra.mxu3 %v2964_v12 }
 0x325   : > { %v2349_v61 = vpop.f32.mrf.mxu2  ;;  %v2378_v19 = vpop.f32.mrf.mxu3 }
 0x326   : > { %v2396_v53 = vadd.f32 %v2349_v61, %v5751_v31  ;;  %v2397_v23 = vadd.f32 %v2378_v19, %v5753_v26  ;;  %v2965_v26 = vpack.c.bf16 %v4798_v46, %v5719_v13 }
 0x327   : > { %v2532_v52 = vpop.f32.mrf.mxu0  ;;  %v2561_v2 = vpop.f32.mrf.mxu1 }
 0x328   : > { %v5799_v25 = vadd.f32 %v2532_v52, %v2396_v53  ;;  %v5801_v28 = vadd.f32 %v2561_v2, %v2397_v23  ;;  %v3327_v23 = vld [vmem:[#allocation3 + $0x92] sm:$0xff] }
 0x32a   : > { %3264 = vmatmul.bf16.gmra.mxu0 %v3147_v0  ;;  %3293 = vmatmul.bf16.gmra.mxu1 %v3147_v0 }
 0x32d   : > { %v2351_v60 = vpop.f32.mrf.mxu2  ;;  %v2380_v14 = vpop.f32.mrf.mxu3 }
 0x32e   : > { %v2398_v8 = vadd.f32 %v2351_v60, %v5755_v21  ;;  %v2399_v33 = vadd.f32 %v2380_v14, %v5757_v35  ;;  %v3148_v35 = vpack.c.bf16 %v3144_v6, %v3143_v38 }
 0x32f   : > { %v2534_v17 = vpop.f32.mrf.mxu0  ;;  %v2563_v31 = vpop.f32.mrf.mxu1 }
 0x330   : > { %v2581_v45 = vadd.f32 %v2534_v17, %v2398_v8  ;;  %v2582_v16 = vadd.f32 %v2563_v31, %v2399_v33 }
 0x332   : > { %3086 = vmatmul.bf16.gmra.mxu2 %v2965_v26  ;;  %3115 = vmatmul.bf16.gmra.mxu3 %v2965_v26 }
 0x335   : > { %v2354_v56 = vpop.f32.mrf.mxu2  ;;  %v2383_v47 = vpop.f32.mrf.mxu3 }
 0x336   : > { %v2400_v55 = vadd.f32 %v2354_v56, %v5765_v48  ;;  %v2401_v20 = vadd.f32 %v2383_v47, %v5767_v44 }
 0x337   : > { %v2537_v21 = vpop.f32.mrf.mxu0  ;;  %v2566_v7 = vpop.f32.mrf.mxu1 }
 0x338   : > { %v2583_v42 = vadd.f32 %v2537_v21, %v2400_v55  ;;  %v2584_v62 = vadd.f32 %v2566_v7, %v2401_v20 }
 0x33a   : > { %3269 = vmatmul.bf16.gmra.mxu0 %v3148_v35  ;;  %3298 = vmatmul.bf16.gmra.mxu1 %v3148_v35 }
 0x33d   : > { %v2356_v13 = vpop.f32.mrf.mxu2  ;;  %v2385_v51 = vpop.f32.mrf.mxu3 }
 0x33e   : > { %v2402_v40 = vadd.f32 %v2356_v13, %v5769_v24  ;;  %v2403_v11 = vadd.f32 %v2385_v51, %v5771_v5 }
 0x33f   : > { %v2539_v50 = vpop.f32.mrf.mxu0  ;;  %v2568_v36 = vpop.f32.mrf.mxu1 }
 0x340   : > { %v2585_v30 = vadd.f32 %v2539_v50, %v2402_v40  ;;  %v2586_v34 = vadd.f32 %v2568_v36, %v2403_v11 }
 0x342   : > { %3437 = vmatmul.bf16.vlgmr.msra.gmra.mxu2 %v5691_v27  ;;  %3466 = vmatmul.bf16.vlgmr.msra.gmra.mxu3 %v5691_v27 }
 0x345   : > { %v2705_v48 = vpop.f32.mrf.mxu2  ;;  %v2734_v44 = vpop.f32.mrf.mxu3 }
 0x346   : > { %v5813_v22 = vadd.f32 %v2705_v48, %v5775_v32  ;;  %v5816_v58 = vadd.f32 %v2734_v44, %v5777_v10 }
 0x347   : > { %v2888_v43 = vpop.f32.mrf.mxu0  ;;  %v2917_v57 = vpop.f32.mrf.mxu1 }
 0x34d   : > { %v2707_v3 = vpop.f32.mrf.mxu2  ;;  %v2736_v24 = vpop.f32.mrf.mxu3 }
 0x34e   : > { %v5819_v5 = vadd.f32 %v2707_v3, %v5781_v41  ;;  %v5822_v1 = vadd.f32 %v2736_v24, %v5783_v18 }
 0x34f   : > { %v5846_v19 = vpop.f32.mrf.mxu0 }
 0x352   : > { %3442 = vmatmul.bf16.gmra.mxu2 %v5703_v49  ;;  %3471 = vmatmul.bf16.gmra.mxu3 %v5703_v49 }
 0x355   : > { %v2710_v27 = vpop.f32.mrf.mxu2  ;;  %v2739_v12 = vpop.f32.mrf.mxu3 }
 0x356   : > { %v5827_v32 = vadd.f32 %v2710_v27, %v5787_v59  ;;  %v5830_v10 = vadd.f32 %v2739_v12, %v5789_v63 }
 0x35d   : > { %v2712_v39 = vpop.f32.mrf.mxu2  ;;  %v2741_v15 = vpop.f32.mrf.mxu3 }
 0x35e   : > { %v5833_v41 = vadd.f32 %v2712_v39, %v5793_v9  ;;  %v5836_v18 = vadd.f32 %v2741_v15, %v5795_v37  ;;  %v5848_v9 = vpop.f32.mrf.mxu1  ;;  %v2937_v39 = vadd.f32 %v2888_v43, %v5813_v22  ;;  %v2938_v15 = vadd.f32 %v2917_v57, %v5816_v58 }
 0x35f   : > { %v2940_v22 = vadd.f32 %v5848_v9, %v5822_v1 }
 0x362   : > { %3447 = vmatmul.bf16.gmra.mxu2 %v5715_v54  ;;  %3476 = vmatmul.bf16.gmra.mxu3 %v5715_v54  ;;  %v3331_v54 = vpack.c.bf16 %v3327_v23, %v5761_v4 }
 0x365   : > { %v2715_v49 = vpop.f32.mrf.mxu2  ;;  %v2744_v59 = vpop.f32.mrf.mxu3 }
 0x366   : > { %v5841_v61 = vadd.f32 %v2715_v49, %v5799_v25  ;;  %v5844_v63 = vadd.f32 %v2744_v59, %v5801_v28  ;;  %v5855_v25 = vpop.f32.mrf.mxu0  ;;  %v5857_v28 = vpop.f32.mrf.mxu1 }
 0x36d   : > { %v2717_v37 = vpop.f32.mrf.mxu2  ;;  %v2746_v53 = vpop.f32.mrf.mxu3 }
 0x36e   : > { %v5850_v52 = vadd.f32 %v2717_v37, %v2581_v45  ;;  %v5852_v2 = vadd.f32 %v2746_v53, %v2582_v16  ;;  %v5867_v46 = vpop.f32.mrf.mxu0  ;;  %v5869_v4 = vpop.f32.mrf.mxu1  ;;  %v3503_v37 = vld [vmem:[#allocation12] sm:$0x3] }
 0x36f   : > { %v5910_v23 = vperm.slane %v3503_v37, 0 }
 0x372   : > { %3452 = vmatmul.bf16.gmra.mxu2 %v3331_v54  ;;  %3481 = vmatmul.bf16.gmra.mxu3 %v3331_v54 }
 0x375   : > { %v2720_v29 = vpop.f32.mrf.mxu2  ;;  %v2749_v0 = vpop.f32.mrf.mxu3 }
 0x376   : > { %v5859_v60 = vadd.f32 %v2720_v29, %v2583_v42  ;;  %v5861_v14 = vadd.f32 %v2749_v0, %v2584_v62  ;;  %v5871_v16 = vpop.f32.mrf.mxu0  ;;  %v5873_v38 = vpop.f32.mrf.mxu1  ;;  %v5912_v29 = vperm.slane %v3503_v37, 1 }
 0x37d   : > { %v2722_v8 = vpop.f32.mrf.mxu2  ;;  %v2751_v33 = vpop.f32.mrf.mxu3 }
 0x37e   : > { %v5863_v17 = vadd.f32 %v2722_v8, %v2585_v30  ;;  %v5865_v31 = vadd.f32 %v2751_v33, %v2586_v34  ;;  %v5875_v47 = vpop.f32.mrf.mxu0  ;;  %v5877_v55 = vpop.f32.mrf.mxu1  ;;  %v2939_v33 = vadd.f32 %v5846_v19, %v5819_v5 }
 0x385   : > { %v3072_v26 = vpop.f32.mrf.mxu2  ;;  %v3101_v45 = vpop.f32.mrf.mxu3 }
 0x386   : > { %v5883_v42 = vpop.f32.mrf.mxu0  ;;  %v5885_v62 = vpop.f32.mrf.mxu1  ;;  %v3121_v49 = vadd.f32 %v3072_v26, %v2937_v39  ;;  %v3122_v59 = vadd.f32 %v3101_v45, %v2938_v15  ;;  %v2941_v15 = vadd.f32 %v5855_v25, %v5827_v32 }
 0x38d   : > { %v3074_v6 = vpop.f32.mrf.mxu2  ;;  %v3103_v56 = vpop.f32.mrf.mxu3 }
 0x38e   : > { %v5891_v40 = vpop.f32.mrf.mxu0  ;;  %v5893_v11 = vpop.f32.mrf.mxu1  ;;  %v3123_v45 = vadd.f32 %v3074_v6, %v2939_v33 }
 0x395   : > { %v3077_v20 = vpop.f32.mrf.mxu2  ;;  %v3106_v21 = vpop.f32.mrf.mxu3 }
 0x396   : > { %v3255_v30 = vpop.f32.mrf.mxu0  ;;  %v3284_v34 = vpop.f32.mrf.mxu1 }
 0x397   : > { %v3304_v53 = vadd.f32 %v3255_v30, %v3121_v49  ;;  %v3305_v54 = vadd.f32 %v3284_v34, %v3122_v59  ;;  %v3124_v30 = vadd.f32 %v3103_v56, %v2940_v22  ;;  %v2942_v49 = vadd.f32 %v5857_v28, %v5830_v10 }
 0x398   : > { %v2943_v10 = vadd.f32 %v5867_v46, %v5833_v41  ;;  %v2944_v28 = vadd.f32 %v5869_v4, %v5836_v18  ;;  %v2945_v4 = vadd.f32 %v5871_v16, %v5841_v61 }
 0x39d   : > { %v5879_v7 = vpop.f32.mrf.mxu2  ;;  %v5881_v35 = vpop.f32.mrf.mxu3 }
 0x39e   : > { %v3257_v3 = vpop.f32.mrf.mxu0  ;;  %v3286_v24 = vpop.f32.mrf.mxu1 }
 0x39f   : > { %v3306_v19 = vadd.f32 %v3257_v3, %v3123_v45  ;;  %v3307_v9 = vadd.f32 %v3286_v24, %v3124_v30  ;;  %v3127_v45 = vadd.f32 %v5879_v7, %v2943_v10  ;;  %v3128_v30 = vadd.f32 %v5881_v35, %v2944_v28 }
 0x3a0   : > { %v2946_v7 = vadd.f32 %v5873_v38, %v5844_v63 }
 0x3a5   : > { %v5887_v13 = vpop.f32.mrf.mxu2  ;;  %v5889_v51 = vpop.f32.mrf.mxu3 }
 0x3a6   : > { %v3260_v58 = vpop.f32.mrf.mxu0  ;;  %v3289_v43 = vpop.f32.mrf.mxu1 }
 0x3ad   : > { %v5895_v50 = vpop.f32.mrf.mxu2  ;;  %v5897_v36 = vpop.f32.mrf.mxu3 }
 0x3b5   : > { %v5899_v48 = vpop.f32.mrf.mxu2  ;;  %v5901_v44 = vpop.f32.mrf.mxu3 }
 0x3bd   : > { %v5904_v27 = vpop.f32.mrf.mxu2  ;;  %v5906_v12 = vpop.f32.mrf.mxu3 }
 0x3c5   : > { %v3438_v0 = vpop.f32.mrf.mxu2  ;;  %v3467_v8 = vpop.f32.mrf.mxu3 }
 0x3c6   : > { %v3487_v57 = vadd.f32 %v3438_v0, %v3304_v53  ;;  %v3488_v26 = vadd.f32 %v3467_v8, %v3305_v54  ;;  %v3125_v53 = vadd.f32 %v3077_v20, %v2941_v15  ;;  %v3126_v54 = vadd.f32 %v3106_v21, %v2942_v49  ;;  %v3262_v0 = vpop.f32.mrf.mxu0  ;;  %v3291_v8 = vpop.f32.mrf.mxu1 }
 0x3c7   : > { %v3311_v41 = vadd.f32 %v3291_v8, %v3128_v30 }
 0x3c8   : > { %v3509_v39 = vadd.f32 %v5910_v23, %v3487_v57  ;;  %v3510_v34 = vadd.f32 %v5912_v29, %v3488_v26  ;;  %v3308_v57 = vadd.f32 %v3260_v58, %v3125_v53  ;;  %v3309_v26 = vadd.f32 %v3289_v43, %v3126_v54 }
 0x3ca   : > { %v3525_v5 = vmax.f32 %v3509_v39, 0.0  ;;  %v3526_v1 = vmax.f32 %v3510_v34, 0.0 }
 0x3cc   : > { %3541 = vst [vmem:[%s5923_s8] sm:$0xff] %v3525_v5 }
 0x3cd   : > { %3542 = vst [vmem:[%s5923_s8 + $0x8] sm:$0xff] %v3526_v1  ;;  %v3440_v6 = vpop.f32.mrf.mxu2  ;;  %v3469_v56 = vpop.f32.mrf.mxu3 }
 0x3ce   : > { %v3489_v59 = vadd.f32 %v3440_v6, %v3306_v19  ;;  %v3490_v37 = vadd.f32 %v3469_v56, %v3307_v9  ;;  %v3265_v39 = vpop.f32.mrf.mxu0  ;;  %v3294_v34 = vpop.f32.mrf.mxu1  ;;  %v3310_v19 = vadd.f32 %v3262_v0, %v3127_v45  ;;  %v3129_v6 = vadd.f32 %v5887_v13, %v2945_v4 }
 0x3cf   : > { %v3130_v56 = vadd.f32 %v5889_v51, %v2946_v7  ;;  %v2947_v13 = vadd.f32 %v5875_v47, %v5850_v52  ;;  %v2948_v51 = vadd.f32 %v5877_v55, %v5852_v2  ;;  %v2949_v2 = vadd.f32 %v5883_v42, %v5859_v60 }
 0x3d0   : > { %v3511_v3 = vadd.f32 %v5910_v23, %v3489_v59  ;;  %v3512_v24 = vadd.f32 %v5912_v29, %v3490_v37  ;;  %v3312_v61 = vadd.f32 %v3265_v39, %v3129_v6  ;;  %v2950_v55 = vadd.f32 %v5885_v62, %v5861_v14 }
 0x3d1   : > { %v3313_v16 = vadd.f32 %v3294_v34, %v3130_v56  ;;  %v2951_v62 = vadd.f32 %v5891_v40, %v5863_v17 }
 0x3d2   : > { %v3527_v33 = vmax.f32 %v3511_v3, 0.0  ;;  %v3528_v22 = vmax.f32 %v3512_v24, 0.0  ;;  %v3131_v3 = vadd.f32 %v5895_v50, %v2947_v13  ;;  %v3132_v24 = vadd.f32 %v5897_v36, %v2948_v51 }
 0x3d4   : > { %3543 = vst [vmem:[%s5923_s8 + $0x10] sm:$0xff] %v3527_v33 }
 0x3d5   : > { %3544 = vst [vmem:[%s5923_s8 + $0x18] sm:$0xff] %v3528_v22  ;;  %v3443_v32 = vpop.f32.mrf.mxu2  ;;  %v3472_v25 = vpop.f32.mrf.mxu3 }
 0x3d6   : > { %v3491_v20 = vadd.f32 %v3443_v32, %v3308_v57  ;;  %v3492_v21 = vadd.f32 %v3472_v25, %v3309_v26  ;;  %v3267_v53 = vpop.f32.mrf.mxu0  ;;  %v3296_v54 = vpop.f32.mrf.mxu1 }
 0x3d7   : > { %v3314_v32 = vadd.f32 %v3267_v53, %v3131_v3  ;;  %v3315_v25 = vadd.f32 %v3296_v54, %v3132_v24 }
 0x3d8   : > { %v3513_v58 = vadd.f32 %v5910_v23, %v3491_v20  ;;  %v3514_v43 = vadd.f32 %v5912_v29, %v3492_v21  ;;  %v3133_v20 = vadd.f32 %v5899_v48, %v2949_v2  ;;  %v3134_v21 = vadd.f32 %v5901_v44, %v2950_v55 }
 0x3d9   : > { %v2952_v48 = vadd.f32 %v5893_v11, %v5865_v31 }
 0x3da   : > { %v3529_v5 = vmax.f32 %v3513_v58, 0.0  ;;  %v3530_v1 = vmax.f32 %v3514_v43, 0.0 }
 0x3dc   : > { %3545 = vst [vmem:[%s5923_s8 + $0x20] sm:$0xff] %v3529_v5  ;;  %v3135_v5 = vadd.f32 %v5904_v27, %v2951_v62 }
 0x3dd   : > { %3546 = vst [vmem:[%s5923_s8 + $0x28] sm:$0xff] %v3530_v1  ;;  %v3445_v18 = vpop.f32.mrf.mxu2  ;;  %v3474_v46 = vpop.f32.mrf.mxu3  ;;  %v3136_v1 = vadd.f32 %v5906_v12, %v2952_v48 }
 0x3de   : > { %v3493_v35 = vadd.f32 %v3445_v18, %v3310_v19  ;;  %v3494_v9 = vadd.f32 %v3474_v46, %v3311_v41  ;;  %v3270_v10 = vpop.f32.mrf.mxu0  ;;  %v3299_v28 = vpop.f32.mrf.mxu1 }
 0x3df   : > { %v3316_v39 = vadd.f32 %v3270_v10, %v3133_v20  ;;  %v3317_v60 = vadd.f32 %v3299_v28, %v3134_v21 }
 0x3e0   : > { %v3515_v15 = vadd.f32 %v5910_v23, %v3493_v35  ;;  %v3516_v49 = vadd.f32 %v5912_v29, %v3494_v9 }
 0x3e2   : > { %v3531_v59 = vmax.f32 %v3515_v15, 0.0  ;;  %v3532_v37 = vmax.f32 %v3516_v49, 0.0 }
 0x3e4   : > { %3547 = vst [vmem:[%s5923_s8 + $0x30] sm:$0xff] %v3531_v59 }
 0x3e5   : > { %3548 = vst [vmem:[%s5923_s8 + $0x38] sm:$0xff] %v3532_v37  ;;  %v3448_v63 = vpop.f32.mrf.mxu2  ;;  %v3477_v38 = vpop.f32.mrf.mxu3 }
 0x3e6   : > { %v3495_v0 = vadd.f32 %v3448_v63, %v3312_v61  ;;  %v3496_v8 = vadd.f32 %v3477_v38, %v3313_v16  ;;  %v3272_v18 = vpop.f32.mrf.mxu0  ;;  %v3301_v46 = vpop.f32.mrf.mxu1 }
 0x3e7   : > { %v3318_v17 = vadd.f32 %v3272_v18, %v3135_v5  ;;  %v3319_v40 = vadd.f32 %v3301_v46, %v3136_v1 }
 0x3e8   : > { %v3517_v33 = vadd.f32 %v5910_v23, %v3495_v0  ;;  %v3518_v22 = vadd.f32 %v5912_v29, %v3496_v8 }
 0x3ea   : > { %v3533_v57 = vmax.f32 %v3517_v33, 0.0  ;;  %v3534_v26 = vmax.f32 %v3518_v22, 0.0 }
 0x3ec   : > { %3549 = vst [vmem:[%s5923_s8 + $0x40] sm:$0xff] %v3533_v57 }
 0x3ed   : > { %3550 = vst [vmem:[%s5923_s8 + $0x48] sm:$0xff] %v3534_v26  ;;  %v3450_v52 = vpop.f32.mrf.mxu2  ;;  %v3479_v47 = vpop.f32.mrf.mxu3 }
 0x3ee   : > { %v3497_v50 = vadd.f32 %v3450_v52, %v3314_v32  ;;  %v3498_v36 = vadd.f32 %v3479_v47, %v3315_v25 }
 0x3f0   : > { %v3519_v45 = vadd.f32 %v5910_v23, %v3497_v50  ;;  %v3520_v30 = vadd.f32 %v5912_v29, %v3498_v36 }
 0x3f2   : > { %v3535_v58 = vmax.f32 %v3519_v45, 0.0  ;;  %v3536_v43 = vmax.f32 %v3520_v30, 0.0 }
 0x3f4   : > { %3551 = vst [vmem:[%s5923_s8 + $0x50] sm:$0xff] %v3535_v58 }
 0x3f5   : > { %3552 = vst [vmem:[%s5923_s8 + $0x58] sm:$0xff] %v3536_v43  ;;  %v3453_v14 = vpop.f32.mrf.mxu2  ;;  %v3482_v42 = vpop.f32.mrf.mxu3 }
 0x3f6   : > { %v3499_v44 = vadd.f32 %v3453_v14, %v3316_v39  ;;  %v3500_v34 = vadd.f32 %v3482_v42, %v3317_v60 }
 0x3f8   : > { %v3521_v19 = vadd.f32 %v5910_v23, %v3499_v44  ;;  %v3522_v41 = vadd.f32 %v5912_v29, %v3500_v34 }
 0x3fa   : > { %v3537_v4 = vmax.f32 %v3521_v19, 0.0  ;;  %v3538_v7 = vmax.f32 %v3522_v41, 0.0 }
 0x3fc   : > { %3553 = vst [vmem:[%s5923_s8 + $0x60] sm:$0xff] %v3537_v4 }
 0x3fd   : > { %3554 = vst [vmem:[%s5923_s8 + $0x68] sm:$0xff] %v3538_v7  ;;  %v3455_v31 = vpop.f32.mrf.mxu2  ;;  %v3484_v11 = vpop.f32.mrf.mxu3 }
 0x3fe   : > { %v3501_v35 = vadd.f32 %v3455_v31, %v3318_v17  ;;  %v3502_v27 = vadd.f32 %v3484_v11, %v3319_v40 }
 0x400   : > { %v3523_v12 = vadd.f32 %v5910_v23, %v3501_v35  ;;  %v3524_v9 = vadd.f32 %v5912_v29, %v3502_v27 }
 0x402   : > { %v3539_v6 = vmax.f32 %v3523_v12, 0.0  ;;  %v3540_v56 = vmax.f32 %v3524_v9, 0.0 }
 0x404   : > { %3555 = vst [vmem:[%s5923_s8 + $0x70] sm:$0xff] %v3539_v6 }
 0x405   : > { %3556 = vst [vmem:[%s5923_s8 + $0x78] sm:$0xff] %v3540_v56 }
 0x406 PF: > { %s21_s24 = sadd.s32 1, %s5001_s24  }
 0x407   : > { %p18_p8 = scmp.ge.s32.totalorder %s21_s24, 4  }
 0x409   :  { %20 = sbr.rel (!%p18_p8) target bundleno = 4 (0x4), region = 133 }
 0x40e   :  { %3581 = vsyncpa [#allocation5], 1 }
 0x40f   :  { %3583 = vsyncpa [#allocation5 + $0x1], 1 }
 0x410   :  { %3584 = vsyncpa [#allocation7], 1 }
 0x411   :  { %3585 = vsyncpa [#allocation10], 1 }
 0x412   :  { %3586 = vsyncpa [#allocation13], 1 }

</bundles_post_ra>
